<compile_context>
chip_gen: v6e
topology: v6e:2x2x1
jax: 0.10.0
libtpu: 0.0.40
codegen_flags: <defaults>
</compile_context>

<pallas_src>
import jax
import jax.numpy as jnp
from jax.experimental import pallas as pl
from jax.experimental.pallas import tpu as pltpu

LANE = 128


# ----------------------------------------------------------------------------
# chip-aware sizing
# ----------------------------------------------------------------------------
def _chip_config():
    small = {"vmem_limit": 48 * 1024 * 1024, "max_tile_rows": 256}   # v7x-safe
    big = {"vmem_limit": 96 * 1024 * 1024, "max_tile_rows": 512}     # v5e/v6e
    kind = ""
    try:
        kind = jax.devices()[0].device_kind.lower()
    except Exception:
        pass
    if "v7" in kind:
        return small
    if ("v5" in kind) or ("v6" in kind):
        return big
    try:  # unknown kind: fall back to a hardware query, else stay conservative
        cap = int(getattr(pltpu.get_tpu_info(), "vmem_capacity_bytes", 0))
        if cap >= 100 * 1024 * 1024:
            return big
    except Exception:
        pass
    return small


# ----------------------------------------------------------------------------
# layout helpers (pure reshape glue; padding only when strictly needed)
# ----------------------------------------------------------------------------
def _plan(npix, cap):
    """Return (total_rows, tile_rows) for a rows-of-128-lanes layout.

    Prefers exact tilings (no row padding). Falls back to padding rows up to
    the next divisible size (a handful of rows, not a full tile multiple)."""
    cap = max(8, cap - cap % 8)
    rows0 = -(-npix // LANE)
    if rows0 <= cap:
        return rows0, rows0                       # single tile (block == full dims)
    lo = max(8, (cap // 2) - (cap // 2) % 8)
    for tr in range(cap, lo - 1, -8):
        if rows0 % tr == 0:
            return rows0, tr                      # exact tiling, zero row padding
    nt = -(-rows0 // cap)
    tr = -(-rows0 // nt)
    tr += (-tr) % 8
    return nt * tr, tr


def _fold(x, rows, pad_value):
    """(..., npix) -> (..., rows, LANE); pads the pixel axis only if needed."""
    npix = x.shape[-1]
    pad = rows * LANE - npix
    if pad:
        cfg = [(0, 0)] * (x.ndim - 1) + [(0, pad)]
        x = jnp.pad(x, cfg, constant_values=pad_value)
    return x.reshape(x.shape[:-1] + (rows, LANE))


def _unfold(x, b, c, h, w):
    npix = h * w
    flat = x.reshape(b, c, -1)
    if flat.shape[-1] != npix:                    # slice only if padding occurred
        flat = flat[:, :, :npix]
    return flat.reshape(b, c, h, w)


def _safe_div(num, den):
    ok = den > 0.0
    return jnp.where(ok, num / jnp.where(ok, den, 1.0), 0.0)


def _n_slots(task, n):
    return 2 * n + 2 if task == "sal" else n + 1


def _bytes_per_row(plans):
    """Approx bytes of blocked data per tile row (inputs + large outputs)."""
    total = 0
    for p in plans:
        task, c = p["task"], p["c"]
        if task in ("semseg", "human_parts", "sal"):
            total += LANE * 4                                   # int32 labels
        else:
            total += p["gc"] * LANE * 4                         # float gt
        for pr in p["preds"]:
            ib = c * LANE * pr.dtype.itemsize
            total += ib                                         # pred input
            if task in ("semseg", "human_parts", "normals"):
                total += ib                                     # big output
    return max(total, 1)


# ----------------------------------------------------------------------------
# per-task tile bodies (operate on the current (1, C, TR, LANE) blocks)
# ----------------------------------------------------------------------------
def _nll_tile(c, labels_ref, pred_refs, logp_refs, put, soff):
    """semseg / human_parts: streamed log_softmax over C + NLL partials."""
    y = labels_ref[0]                                           # (TR, LANE) int32
    n = len(pred_refs)
    put(soff + n, jnp.sum((y != -1).astype(jnp.float32)))
    for s in range(n):
        pr, lr = pred_refs[s], logp_refs[s]
        # pass 1: channel max
        m = pr[0, 0].astype(jnp.float32)
        for ch in range(1, c):
            m = jnp.maximum(m, pr[0, ch].astype(jnp.float32))
        # pass 2: sum-exp
        sexp = jnp.zeros_like(m)
        for ch in range(c):
            sexp = sexp + jnp.exp(pr[0, ch].astype(jnp.float32) - m)
        lse = m + jnp.log(sexp)
        # pass 3: write logp and gather the target channel via compare
        picked = jnp.zeros_like(m)
        for ch in range(c):
            lp = pr[0, ch].astype(jnp.float32) - lse
            lr[0, ch] = lp.astype(lr.dtype)
            picked = picked + jnp.where(y == ch, lp, 0.0)       # 0 where y == -1
        put(soff + s, -jnp.sum(picked))


def _depth_tile(gt_ref, pred_refs, put, soff):
    """depth: per-tile sum(|pred - gt| * mask) and valid-pixel count."""
    g = gt_ref[0].astype(jnp.float32)                           # (GC, TR, LANE)
    mask = (jnp.sum(g, axis=0) != 0.0).astype(jnp.float32)
    n = len(pred_refs)
    put(soff + n, jnp.sum(mask))
    for s in range(n):
        p = pred_refs[s][0].astype(jnp.float32)
        d = jnp.sum(jnp.abs(p - g), axis=0)                     # reduce C, then mask
        put(soff + s, jnp.sum(d * mask))


def _normals_tile(gt_ref, pred_refs, pn_refs, put, soff):
    """normals: L2-normalize pred over C, masked dot partials + valid count."""
    g = gt_ref[0].astype(jnp.float32)                           # (C, TR, LANE)
    mask = (jnp.sum(g, axis=0) != 0.0).astype(jnp.float32)
    n = len(pred_refs)
    put(soff + n, jnp.sum(mask))
    for s in range(n):
        p = pred_refs[s][0].astype(jnp.float32)
        # eps keeps all-zero / padded vectors finite (reference gt is used raw,
        # only the prediction is normalized -- matches finalize()).
        inv = jax.lax.rsqrt(jnp.sum(p * p, axis=0, keepdims=True) + 1e-12)
        pn = p * inv
        pn_refs[s][0] = pn.astype(pn_refs[s].dtype)
        put(soff + s, jnp.sum(jnp.sum(pn * g, axis=0) * mask))


def _sal_tile(labels_ref, pred_refs, put, soff):
    """sal: single-pass partials; GLOBAL class weights applied outside."""
    y = labels_ref[0]                                           # (TR, LANE) int32
    is_neg = y == 0
    is_pos = y == 1
    n = len(pred_refs)
    c_neg = jnp.sum(is_neg.astype(jnp.float32))
    c_pos = jnp.sum(is_pos.astype(jnp.float32))
    put(soff + 2 * n, c_neg)
    put(soff + 2 * n + 1, c_neg + c_pos)
    for s in range(n):
        x = pred_refs[s]
        x0 = x[0, 0].astype(jnp.float32)
        x1 = x[0, 1].astype(jnp.float32)
        m = jnp.maximum(x0, x1)
        z0 = x0 - m
        z1 = x1 - m
        lse = jnp.log(jnp.exp(z0) + jnp.exp(z1))
        put(soff + s, jnp.sum(jnp.where(is_neg, lse - z0, 0.0)))
        put(soff + n + s, jnp.sum(jnp.where(is_pos, lse - z1, 0.0)))


# ----------------------------------------------------------------------------
# fused kernel: all tasks of one (B, H, W) group in a single grid
# ----------------------------------------------------------------------------
def _make_fused_kernel(descs):
    """descs: tuple of (task, n_streams, channels, scalar_offset)."""
    n_in = sum(1 + n for (_, n, _, _) in descs)

    def kernel(*refs):
        in_refs = refs[:n_in]
        out_refs = refs[n_in:]
        scal_ref = out_refs[-1]                                 # (1, 1, 1, S)

        def put(slot, val):
            scal_ref[:, :, :, slot:slot + 1] = jnp.full((1, 1, 1, 1), val,
                                                        jnp.float32)

        ii = 0
        oi = 0
        for (task, n, c, soff) in descs:
            gt_ref = in_refs[ii]
            pred_refs = in_refs[ii + 1: ii + 1 + n]
            ii += 1 + n
            if task in ("semseg", "human_parts"):
                logp_refs = out_refs[oi: oi + n]
                oi += n
                _nll_tile(c, gt_ref, pred_refs, logp_refs, put, soff)
            elif task == "depth":
                _depth_tile(gt_ref, pred_refs, put, soff)
            elif task == "normals":
                pn_refs = out_refs[oi: oi + n]
                oi += n
                _normals_tile(gt_ref, pred_refs, pn_refs, put, soff)
            elif task == "sal":
                _sal_tile(gt_ref, pred_refs, put, soff)
            else:
                raise NotImplementedError(task)

    return kernel


def _run_group(plans, b, h, w, cfg):
    """Run all task plans sharing (b, h, w) in ONE pallas_call.

    Returns a list of (finalized_preds, losses), aligned with `plans`."""
    npix = h * w
    budget = int(cfg["vmem_limit"] * 0.7)        # leave headroom for temporaries
    bpr = _bytes_per_row(plans)
    tr_cap = max(8, (budget // (2 * bpr)) // 8 * 8)   # x2 for double buffering
    rows, tr = _plan(npix, min(cfg["max_tile_rows"], tr_cap))
    nt = rows // tr
    grid = (b, nt)

    in_arrays, in_specs = [], []
    out_shapes, out_specs = [], []
    descs = []
    soff = 0
    for p in plans:
        task, c = p["task"], p["c"]
        n = len(p["preds"])
        if task in ("semseg", "human_parts", "sal"):
            labels = _fold(p["gt"].reshape(b, npix).astype(jnp.int32), rows, -1)
            in_arrays.append(labels)
            in_specs.append(pl.BlockSpec((1, tr, LANE), lambda i, t: (i, t, 0)))
        else:
            gc = p["gc"]
            gt_f = _fold(p["gt"].reshape(b, gc, npix).astype(jnp.float32),
                         rows, 0.0)
            in_arrays.append(gt_f)
            in_specs.append(
                pl.BlockSpec((1, gc, tr, LANE), lambda i, t: (i, 0, t, 0)))
        pred_spec = pl.BlockSpec((1, c, tr, LANE), lambda i, t: (i, 0, t, 0))
        for pr in p["preds"]:
            in_arrays.append(_fold(pr.reshape(b, c, npix), rows, 0.0))
            in_specs.append(pred_spec)
        if task in ("semseg", "human_parts", "normals"):
            for pr in p["preds"]:
                # TODO(synk): emit bf16 here when downstream tolerates it (halves
                # the largest HBM write stream); kept native dtype to preserve
                # the reference module's output semantics.
                out_shapes.append(jax.ShapeDtypeStruct((b, c, rows, LANE),
                                                       pr.dtype))
                out_specs.append(pred_spec)
        descs.append((task, n, c, soff))
        soff += _n_slots(task, n)

    s_total = soff
    out_shapes.append(jax.ShapeDtypeStruct((b, nt, 1, s_total), jnp.float32))
    out_specs.append(pl.BlockSpec((1, 1, 1, s_total), lambda i, t: (i, t, 0, 0)))

    outs = pl.pallas_call(
        _make_fused_kernel(tuple(descs)),
        grid=grid,
        in_specs=in_specs,
        out_specs=tuple(out_specs),
        out_shape=tuple(out_shapes),
        compiler_params=pltpu.CompilerParams(
            dimension_semantics=("parallel", "parallel"),
            vmem_limit_bytes=cfg["vmem_limit"],
        ),
    )(*in_arrays)

    outs = list(outs)
    scal_sums = jnp.sum(outs[-1], axis=(0, 1, 2))               # (s_total,)

    results = []
    big = 0
    for (task, n, c, soff), p in zip(descs, plans):
        if task in ("semseg", "human_parts"):
            cnt = scal_sums[soff + n]
            finals = [_unfold(outs[big + s], b, c, h, w) for s in range(n)]
            big += n
            # guard covers "human_parts: all labels == -1 -> loss 0"
            losses = [_safe_div(scal_sums[soff + s], cnt) for s in range(n)]
        elif task == "depth":
            cnt = scal_sums[soff + n]
            finals = list(p["preds"])                            # finalize = id
            losses = [_safe_div(scal_sums[soff + s], cnt) for s in range(n)]
        elif task == "normals":
            cnt = scal_sums[soff + n]
            finals = [_unfold(outs[big + s], b, c, h, w) for s in range(n)]
            big += n
            losses = [jnp.where(cnt > 0.0,
                                1.0 - _safe_div(scal_sums[soff + s], cnt), 0.0)
                      for s in range(n)]
        elif task == "sal":
            c_neg = scal_sums[soff + 2 * n]
            c_tot = scal_sums[soff + 2 * n + 1]
            c_pos = c_tot - c_neg
            w_pos = _safe_div(c_neg, c_tot)      # class weights from GLOBAL stats
            w_neg = 1.0 - w_pos
            denom = w_neg * c_neg + w_pos * c_pos
            finals = list(p["preds"])                            # finalize = id
            losses = [_safe_div(w_neg * scal_sums[soff + s]
                                + w_pos * scal_sums[soff + n + s], denom)
                      for s in range(n)]
        else:
            raise NotImplementedError(task)
        results.append((finals, losses))
    return results


# ----------------------------------------------------------------------------
# PADNetLoss module equivalent
# ----------------------------------------------------------------------------
def make_loss_weighting(weights):
    # TODO(synk): original code receives `loss_weighting` as an opaque callable
    # (despite the `dict` annotation); implemented as a weighted sum of all
    # initial + final task losses.
    def fn(losses):
        total = jnp.zeros((), jnp.float32)
        for scope in ("initial", "final"):
            for task, l in losses[scope].items():
                total = total + jnp.float32(weights[task]) * l
        return total
    return fn


class PADNetLoss:
    def __init__(self, tasks, auxilary_tasks, loss_weighting):
        self.tasks = tasks
        self.auxilary_tasks = auxilary_tasks
        self.loss_weighting = loss_weighting
        self._cfg = _chip_config()

    @staticmethod
    def _make_plan(task, scopes, streams, gt_arr):
        b, c, h, w = streams[0].shape
        gc = gt_arr.shape[1] if gt_arr.ndim == 4 else 1
        return {"task": task, "scopes": scopes, "preds": streams,
                "gt": gt_arr, "c": c, "gc": gc}

    def __call__(self, pred, gt):
        preds = {"initial": {}, "final": {}}
        losses = {"initial": {}, "final": {}}

        # One "plan" per task; a task in both auxilary and final lists runs its
        # two prediction streams together, sharing a single read of gt.
        plans = []
        handled_final = set()
        for task in self.auxilary_tasks:
            streams = [pred[f"initial_{task}"]]
            scopes = ["initial"]
            if task in self.tasks and pred[task].shape == streams[0].shape:
                streams.append(pred[task])
                scopes.append("final")
                handled_final.add(task)
            plans.append(self._make_plan(task, scopes, streams, gt[task]))
        for task in self.tasks:
            if task in handled_final:
                continue
            plans.append(self._make_plan(task, ["final"], [pred[task]], gt[task]))

        # Group tasks sharing (batch, H, W) into a single fused pallas_call.
        groups = {}
        for p in plans:
            b, _, h, w = p["preds"][0].shape
            groups.setdefault((b, h, w), []).append(p)
        for (b, h, w), group in groups.items():
            for p, (finals, ls) in zip(group,
                                       _run_group(group, b, h, w, self._cfg)):
                for scope, f, l in zip(p["scopes"], finals, ls):
                    preds[scope][p["task"]] = f
                    losses[scope][p["task"]] = l

        losses["total"] = self.loss_weighting(losses)
        return losses, preds


# ----------------------------------------------------------------------------
# demo
# ----------------------------------------------------------------------------
if __name__ == "__main__":
    key = jax.random.PRNGKey(0)
    ks = jax.random.split(key, 16)
    B, H, W = 2, 16, 16
    n_ch = {"semseg": 4, "human_parts": 5, "depth": 1, "normals": 3, "sal": 2}
    tasks = ["semseg", "human_parts", "depth", "normals", "sal"]

    pred, gt = {}, {}
    i = 0
    for t in tasks:
        pred[f"initial_{t}"] = jax.random.normal(ks[i], (B, n_ch[t], H, W),
                                                 jnp.float32); i += 1
        pred[t] = jax.random.normal(ks[i], (B, n_ch[t], H, W), jnp.float32); i += 1

    gt["semseg"] = jax.random.randint(ks[i], (B, H, W), -1, n_ch["semseg"]); i += 1
    gt["human_parts"] = jax.random.randint(ks[i], (B, H, W), -1,
                                           n_ch["human_parts"]); i += 1
    keep = (jax.random.uniform(ks[i], (B, 1, H, W)) > 0.2).astype(jnp.float32); i += 1
    gt["depth"] = jax.random.uniform(ks[i], (B, 1, H, W), jnp.float32) * keep; i += 1
    gt["normals"] = jax.random.normal(ks[i], (B, n_ch["normals"], H, W),
                                      jnp.float32); i += 1
    gt["sal"] = jax.random.randint(ks[i], (B, H, W), -1, 2); i += 1

    weights = {t: 1.0 for t in tasks}
    loss_fn = PADNetLoss(tasks, tasks, make_loss_weighting(weights))

    losses, preds_out = loss_fn(pred, gt)
    jax.block_until_ready(losses["total"])
    for scope in ("initial", "final"):
        for t in tasks:
            jax.block_until_ready(losses[scope][t])
            jax.block_until_ready(preds_out[scope][t])

    print("KERNEL_OK")
</pallas_src>

<mosaic_0001>
module attributes {stable_mosaic.version = 11 : i64} {
  func.func @kernel(%arg0: i32, %arg1: i32, %arg2: memref<1x2x128xi32, #tpu.memory_space<vmem>>, %arg3: memref<1x4x2x128xf32, #tpu.memory_space<vmem>>, %arg4: memref<1x4x2x128xf32, #tpu.memory_space<vmem>>, %arg5: memref<1x2x128xi32, #tpu.memory_space<vmem>>, %arg6: memref<1x5x2x128xf32, #tpu.memory_space<vmem>>, %arg7: memref<1x5x2x128xf32, #tpu.memory_space<vmem>>, %arg8: memref<1x1x2x128xf32, #tpu.memory_space<vmem>>, %arg9: memref<1x1x2x128xf32, #tpu.memory_space<vmem>>, %arg10: memref<1x1x2x128xf32, #tpu.memory_space<vmem>>, %arg11: memref<1x3x2x128xf32, #tpu.memory_space<vmem>>, %arg12: memref<1x3x2x128xf32, #tpu.memory_space<vmem>>, %arg13: memref<1x3x2x128xf32, #tpu.memory_space<vmem>>, %arg14: memref<1x2x128xi32, #tpu.memory_space<vmem>>, %arg15: memref<1x2x2x128xf32, #tpu.memory_space<vmem>>, %arg16: memref<1x2x2x128xf32, #tpu.memory_space<vmem>>, %arg17: memref<1x4x2x128xf32, #tpu.memory_space<vmem>>, %arg18: memref<1x4x2x128xf32, #tpu.memory_space<vmem>>, %arg19: memref<1x5x2x128xf32, #tpu.memory_space<vmem>>, %arg20: memref<1x5x2x128xf32, #tpu.memory_space<vmem>>, %arg21: memref<1x3x2x128xf32, #tpu.memory_space<vmem>>, %arg22: memref<1x3x2x128xf32, #tpu.memory_space<vmem>>, %arg23: memref<1x1x1x18xf32, #tpu.memory_space<vmem>>) attributes {dimension_semantics = [#tpu.dimension_semantics<parallel>, #tpu.dimension_semantics<parallel>], iteration_bounds = array<i64: 2, 1>, scalar_prefetch = 0 : i64, scratch_operands = 0 : i64, tpu.core_type = #tpu.core_type<tc>, window_params = [{transform_indices = @transform_0, window_bounds = array<i64: 1, 2, 128>}, {transform_indices = @transform_1, window_bounds = array<i64: 1, 4, 2, 128>}, {transform_indices = @transform_2, window_bounds = array<i64: 1, 4, 2, 128>}, {transform_indices = @transform_3, window_bounds = array<i64: 1, 2, 128>}, {transform_indices = @transform_4, window_bounds = array<i64: 1, 5, 2, 128>}, {transform_indices = @transform_5, window_bounds = array<i64: 1, 5, 2, 128>}, {transform_indices = @transform_6, window_bounds = array<i64: 1, 1, 2, 128>}, {transform_indices = @transform_7, window_bounds = array<i64: 1, 1, 2, 128>}, {transform_indices = @transform_8, window_bounds = array<i64: 1, 1, 2, 128>}, {transform_indices = @transform_9, window_bounds = array<i64: 1, 3, 2, 128>}, {transform_indices = @transform_10, window_bounds = array<i64: 1, 3, 2, 128>}, {transform_indices = @transform_11, window_bounds = array<i64: 1, 3, 2, 128>}, {transform_indices = @transform_12, window_bounds = array<i64: 1, 2, 128>}, {transform_indices = @transform_13, window_bounds = array<i64: 1, 2, 2, 128>}, {transform_indices = @transform_14, window_bounds = array<i64: 1, 2, 2, 128>}, {transform_indices = @transform_15, window_bounds = array<i64: 1, 4, 2, 128>}, {transform_indices = @transform_16, window_bounds = array<i64: 1, 4, 2, 128>}, {transform_indices = @transform_17, window_bounds = array<i64: 1, 5, 2, 128>}, {transform_indices = @transform_18, window_bounds = array<i64: 1, 5, 2, 128>}, {transform_indices = @transform_19, window_bounds = array<i64: 1, 3, 2, 128>}, {transform_indices = @transform_20, window_bounds = array<i64: 1, 3, 2, 128>}, {transform_indices = @transform_21, window_bounds = array<i64: 1, 1, 1, 18>}]} {
    %c0 = arith.constant 0 : index
    %c0_0 = arith.constant 0 : index
    %c0_1 = arith.constant 0 : index
    %0 = vector.load %arg2[%c0, %c0_0, %c0_1] : memref<1x2x128xi32, #tpu.memory_space<vmem>>, vector<1x2x128xi32>
    %1 = vector.shape_cast %0 : vector<1x2x128xi32> to vector<2x128xi32>
    %c-1_i32 = arith.constant -1 : i32
    %2 = vector.broadcast %c-1_i32 : i32 to vector<2x128xi32>
    %3 = arith.cmpi ne, %1, %2 : vector<2x128xi32>
    %4 = arith.extui %3 : vector<2x128xi1> to vector<2x128xi32>
    %5 = arith.sitofp %4 : vector<2x128xi32> to vector<2x128xf32>
    %6 = vector.shape_cast %5 : vector<2x128xf32> to vector<1x2x128xf32>
    %cst = arith.constant dense<0.000000e+00> : vector<1xf32>
    %7 = vector.multi_reduction <add>, %6, %cst [1, 2] : vector<1x2x128xf32> to vector<1xf32>
    %8 = vector.shape_cast %7 : vector<1xf32> to vector<1x1x1xf32>
    %9 = vector.extract %8[0, 0, 0] : f32 from vector<1x1x1xf32>
    %10 = vector.broadcast %9 : f32 to vector<1x1x1x1xf32>
    %c0_2 = arith.constant 0 : index
    %c0_3 = arith.constant 0 : index
    %c0_4 = arith.constant 0 : index
    %c2 = arith.constant 2 : index
    %11 = vector.load %arg23[%c0_2, %c0_3, %c0_4, %c2] : memref<1x1x1x18xf32, #tpu.memory_space<vmem>>, vector<1x1x1x1xf32>
    tpu.vector_store %arg23[%c0_2, %c0_3, %c0_4, %c2], %10 {strides = array<i32>} : memref<1x1x1x18xf32, #tpu.memory_space<vmem>>, vector<1x1x1x1xf32>,
    %c0_5 = arith.constant 0 : index
    %c0_6 = arith.constant 0 : index
    %c0_7 = arith.constant 0 : index
    %c0_8 = arith.constant 0 : index
    %12 = vector.load %arg3[%c0_5, %c0_6, %c0_7, %c0_8] : memref<1x4x2x128xf32, #tpu.memory_space<vmem>>, vector<1x1x2x128xf32>
    %13 = vector.shape_cast %12 : vector<1x1x2x128xf32> to vector<2x128xf32>
    %c0_9 = arith.constant 0 : index
    %c1 = arith.constant 1 : index
    %c0_10 = arith.constant 0 : index
    %c0_11 = arith.constant 0 : index
    %14 = vector.load %arg3[%c0_9, %c1, %c0_10, %c0_11] : memref<1x4x2x128xf32, #tpu.memory_space<vmem>>, vector<1x1x2x128xf32>
    %15 = vector.shape_cast %14 : vector<1x1x2x128xf32> to vector<2x128xf32>
    %16 = arith.maximumf %13, %15 : vector<2x128xf32>
    %c0_12 = arith.constant 0 : index
    %c2_13 = arith.constant 2 : index
    %c0_14 = arith.constant 0 : index
    %c0_15 = arith.constant 0 : index
    %17 = vector.load %arg3[%c0_12, %c2_13, %c0_14, %c0_15] : memref<1x4x2x128xf32, #tpu.memory_space<vmem>>, vector<1x1x2x128xf32>
    %18 = vector.shape_cast %17 : vector<1x1x2x128xf32> to vector<2x128xf32>
    %19 = arith.maximumf %16, %18 : vector<2x128xf32>
    %c0_16 = arith.constant 0 : index
    %c3 = arith.constant 3 : index
    %c0_17 = arith.constant 0 : index
    %c0_18 = arith.constant 0 : index
    %20 = vector.load %arg3[%c0_16, %c3, %c0_17, %c0_18] : memref<1x4x2x128xf32, #tpu.memory_space<vmem>>, vector<1x1x2x128xf32>
    %21 = vector.shape_cast %20 : vector<1x1x2x128xf32> to vector<2x128xf32>
    %22 = arith.maximumf %19, %21 : vector<2x128xf32>
    %cst_19 = arith.constant 0.000000e+00 : f32
    %23 = vector.broadcast %cst_19 : f32 to vector<2x128xf32>
    %c0_20 = arith.constant 0 : index
    %c0_21 = arith.constant 0 : index
    %c0_22 = arith.constant 0 : index
    %c0_23 = arith.constant 0 : index
    %24 = vector.load %arg3[%c0_20, %c0_21, %c0_22, %c0_23] : memref<1x4x2x128xf32, #tpu.memory_space<vmem>>, vector<1x1x2x128xf32>
    %25 = vector.shape_cast %24 : vector<1x1x2x128xf32> to vector<2x128xf32>
    %26 = arith.subf %25, %22 : vector<2x128xf32>
    %27 = math.exp %26 : vector<2x128xf32>
    %28 = arith.addf %23, %27 : vector<2x128xf32>
    %c0_24 = arith.constant 0 : index
    %c1_25 = arith.constant 1 : index
    %c0_26 = arith.constant 0 : index
    %c0_27 = arith.constant 0 : index
    %29 = vector.load %arg3[%c0_24, %c1_25, %c0_26, %c0_27] : memref<1x4x2x128xf32, #tpu.memory_space<vmem>>, vector<1x1x2x128xf32>
    %30 = vector.shape_cast %29 : vector<1x1x2x128xf32> to vector<2x128xf32>
    %31 = arith.subf %30, %22 : vector<2x128xf32>
    %32 = math.exp %31 : vector<2x128xf32>
    %33 = arith.addf %28, %32 : vector<2x128xf32>
    %c0_28 = arith.constant 0 : index
    %c2_29 = arith.constant 2 : index
    %c0_30 = arith.constant 0 : index
    %c0_31 = arith.constant 0 : index
    %34 = vector.load %arg3[%c0_28, %c2_29, %c0_30, %c0_31] : memref<1x4x2x128xf32, #tpu.memory_space<vmem>>, vector<1x1x2x128xf32>
    %35 = vector.shape_cast %34 : vector<1x1x2x128xf32> to vector<2x128xf32>
    %36 = arith.subf %35, %22 : vector<2x128xf32>
    %37 = math.exp %36 : vector<2x128xf32>
    %38 = arith.addf %33, %37 : vector<2x128xf32>
    %c0_32 = arith.constant 0 : index
    %c3_33 = arith.constant 3 : index
    %c0_34 = arith.constant 0 : index
    %c0_35 = arith.constant 0 : index
    %39 = vector.load %arg3[%c0_32, %c3_33, %c0_34, %c0_35] : memref<1x4x2x128xf32, #tpu.memory_space<vmem>>, vector<1x1x2x128xf32>
    %40 = vector.shape_cast %39 : vector<1x1x2x128xf32> to vector<2x128xf32>
    %41 = arith.subf %40, %22 : vector<2x128xf32>
    %42 = math.exp %41 : vector<2x128xf32>
    %43 = arith.addf %38, %42 : vector<2x128xf32>
    %44 = math.log %43 : vector<2x128xf32>
    %45 = arith.addf %22, %44 : vector<2x128xf32>
    %cst_36 = arith.constant 0.000000e+00 : f32
    %46 = vector.broadcast %cst_36 : f32 to vector<2x128xf32>
    %c0_37 = arith.constant 0 : index
    %c0_38 = arith.constant 0 : index
    %c0_39 = arith.constant 0 : index
    %c0_40 = arith.constant 0 : index
    %47 = vector.load %arg3[%c0_37, %c0_38, %c0_39, %c0_40] : memref<1x4x2x128xf32, #tpu.memory_space<vmem>>, vector<1x1x2x128xf32>
    %48 = vector.shape_cast %47 : vector<1x1x2x128xf32> to vector<2x128xf32>
    %49 = arith.subf %48, %45 : vector<2x128xf32>
    %c0_41 = arith.constant 0 : index
    %c0_42 = arith.constant 0 : index
    %c0_43 = arith.constant 0 : index
    %c0_44 = arith.constant 0 : index
    %50 = vector.load %arg17[%c0_41, %c0_42, %c0_43, %c0_44] : memref<1x4x2x128xf32, #tpu.memory_space<vmem>>, vector<1x1x2x128xf32>
    %51 = vector.shape_cast %50 : vector<1x1x2x128xf32> to vector<2x128xf32>
    %52 = vector.shape_cast %49 : vector<2x128xf32> to vector<1x1x2x128xf32>
    tpu.vector_store %arg17[%c0_41, %c0_42, %c0_43, %c0_44], %52 {strides = array<i32>} : memref<1x4x2x128xf32, #tpu.memory_space<vmem>>, vector<1x1x2x128xf32>,
    %c0_i32 = arith.constant 0 : i32
    %53 = vector.broadcast %c0_i32 : i32 to vector<2x128xi32>
    %54 = arith.cmpi eq, %1, %53 : vector<2x128xi32>
    %cst_45 = arith.constant 0.000000e+00 : f32
    %55 = vector.broadcast %cst_45 : f32 to vector<2x128xf32>
    %56 = arith.select %54, %49, %55 : vector<2x128xi1>, vector<2x128xf32>
    %57 = arith.addf %46, %56 : vector<2x128xf32>
    %c0_46 = arith.constant 0 : index
    %c1_47 = arith.constant 1 : index
    %c0_48 = arith.constant 0 : index
    %c0_49 = arith.constant 0 : index
    %58 = vector.load %arg3[%c0_46, %c1_47, %c0_48, %c0_49] : memref<1x4x2x128xf32, #tpu.memory_space<vmem>>, vector<1x1x2x128xf32>
    %59 = vector.shape_cast %58 : vector<1x1x2x128xf32> to vector<2x128xf32>
    %60 = arith.subf %59, %45 : vector<2x128xf32>
    %c0_50 = arith.constant 0 : index
    %c1_51 = arith.constant 1 : index
    %c0_52 = arith.constant 0 : index
    %c0_53 = arith.constant 0 : index
    %61 = vector.load %arg17[%c0_50, %c1_51, %c0_52, %c0_53] : memref<1x4x2x128xf32, #tpu.memory_space<vmem>>, vector<1x1x2x128xf32>
    %62 = vector.shape_cast %61 : vector<1x1x2x128xf32> to vector<2x128xf32>
    %63 = vector.shape_cast %60 : vector<2x128xf32> to vector<1x1x2x128xf32>
    tpu.vector_store %arg17[%c0_50, %c1_51, %c0_52, %c0_53], %63 {strides = array<i32>} : memref<1x4x2x128xf32, #tpu.memory_space<vmem>>, vector<1x1x2x128xf32>,
    %c1_i32 = arith.constant 1 : i32
    %64 = vector.broadcast %c1_i32 : i32 to vector<2x128xi32>
    %65 = arith.cmpi eq, %1, %64 : vector<2x128xi32>
    %cst_54 = arith.constant 0.000000e+00 : f32
    %66 = vector.broadcast %cst_54 : f32 to vector<2x128xf32>
    %67 = arith.select %65, %60, %66 : vector<2x128xi1>, vector<2x128xf32>
    %68 = arith.addf %57, %67 : vector<2x128xf32>
    %c0_55 = arith.constant 0 : index
    %c2_56 = arith.constant 2 : index
    %c0_57 = arith.constant 0 : index
    %c0_58 = arith.constant 0 : index
    %69 = vector.load %arg3[%c0_55, %c2_56, %c0_57, %c0_58] : memref<1x4x2x128xf32, #tpu.memory_space<vmem>>, vector<1x1x2x128xf32>
    %70 = vector.shape_cast %69 : vector<1x1x2x128xf32> to vector<2x128xf32>
    %71 = arith.subf %70, %45 : vector<2x128xf32>
    %c0_59 = arith.constant 0 : index
    %c2_60 = arith.constant 2 : index
    %c0_61 = arith.constant 0 : index
    %c0_62 = arith.constant 0 : index
    %72 = vector.load %arg17[%c0_59, %c2_60, %c0_61, %c0_62] : memref<1x4x2x128xf32, #tpu.memory_space<vmem>>, vector<1x1x2x128xf32>
    %73 = vector.shape_cast %72 : vector<1x1x2x128xf32> to vector<2x128xf32>
    %74 = vector.shape_cast %71 : vector<2x128xf32> to vector<1x1x2x128xf32>
    tpu.vector_store %arg17[%c0_59, %c2_60, %c0_61, %c0_62], %74 {strides = array<i32>} : memref<1x4x2x128xf32, #tpu.memory_space<vmem>>, vector<1x1x2x128xf32>,
    %c2_i32 = arith.constant 2 : i32
    %75 = vector.broadcast %c2_i32 : i32 to vector<2x128xi32>
    %76 = arith.cmpi eq, %1, %75 : vector<2x128xi32>
    %cst_63 = arith.constant 0.000000e+00 : f32
    %77 = vector.broadcast %cst_63 : f32 to vector<2x128xf32>
    %78 = arith.select %76, %71, %77 : vector<2x128xi1>, vector<2x128xf32>
    %79 = arith.addf %68, %78 : vector<2x128xf32>
    %c0_64 = arith.constant 0 : index
    %c3_65 = arith.constant 3 : index
    %c0_66 = arith.constant 0 : index
    %c0_67 = arith.constant 0 : index
    %80 = vector.load %arg3[%c0_64, %c3_65, %c0_66, %c0_67] : memref<1x4x2x128xf32, #tpu.memory_space<vmem>>, vector<1x1x2x128xf32>
    %81 = vector.shape_cast %80 : vector<1x1x2x128xf32> to vector<2x128xf32>
    %82 = arith.subf %81, %45 : vector<2x128xf32>
    %c0_68 = arith.constant 0 : index
    %c3_69 = arith.constant 3 : index
    %c0_70 = arith.constant 0 : index
    %c0_71 = arith.constant 0 : index
    %83 = vector.load %arg17[%c0_68, %c3_69, %c0_70, %c0_71] : memref<1x4x2x128xf32, #tpu.memory_space<vmem>>, vector<1x1x2x128xf32>
    %84 = vector.shape_cast %83 : vector<1x1x2x128xf32> to vector<2x128xf32>
    %85 = vector.shape_cast %82 : vector<2x128xf32> to vector<1x1x2x128xf32>
    tpu.vector_store %arg17[%c0_68, %c3_69, %c0_70, %c0_71], %85 {strides = array<i32>} : memref<1x4x2x128xf32, #tpu.memory_space<vmem>>, vector<1x1x2x128xf32>,
    %c3_i32 = arith.constant 3 : i32
    %86 = vector.broadcast %c3_i32 : i32 to vector<2x128xi32>
    %87 = arith.cmpi eq, %1, %86 : vector<2x128xi32>
    %cst_72 = arith.constant 0.000000e+00 : f32
    %88 = vector.broadcast %cst_72 : f32 to vector<2x128xf32>
    %89 = arith.select %87, %82, %88 : vector<2x128xi1>, vector<2x128xf32>
    %90 = arith.addf %79, %89 : vector<2x128xf32>
    %91 = vector.shape_cast %90 : vector<2x128xf32> to vector<1x2x128xf32>
    %cst_73 = arith.constant dense<0.000000e+00> : vector<1xf32>
    %92 = vector.multi_reduction <add>, %91, %cst_73 [1, 2] : vector<1x2x128xf32> to vector<1xf32>
    %93 = vector.shape_cast %92 : vector<1xf32> to vector<1x1x1xf32>
    %94 = vector.extract %93[0, 0, 0] : f32 from vector<1x1x1xf32>
    %cst_74 = arith.constant 0.000000e+00 : f32
    %95 = arith.subf %cst_74, %94 : f32
    %96 = vector.broadcast %95 : f32 to vector<1x1x1x1xf32>
    %c0_75 = arith.constant 0 : index
    %c0_76 = arith.constant 0 : index
    %c0_77 = arith.constant 0 : index
    %c0_78 = arith.constant 0 : index
    %97 = vector.load %arg23[%c0_75, %c0_76, %c0_77, %c0_78] : memref<1x1x1x18xf32, #tpu.memory_space<vmem>>, vector<1x1x1x1xf32>
    tpu.vector_store %arg23[%c0_75, %c0_76, %c0_77, %c0_78], %96 {strides = array<i32>} : memref<1x1x1x18xf32, #tpu.memory_space<vmem>>, vector<1x1x1x1xf32>,
    %c0_79 = arith.constant 0 : index
    %c0_80 = arith.constant 0 : index
    %c0_81 = arith.constant 0 : index
    %c0_82 = arith.constant 0 : index
    %98 = vector.load %arg4[%c0_79, %c0_80, %c0_81, %c0_82] : memref<1x4x2x128xf32, #tpu.memory_space<vmem>>, vector<1x1x2x128xf32>
    %99 = vector.shape_cast %98 : vector<1x1x2x128xf32> to vector<2x128xf32>
    %c0_83 = arith.constant 0 : index
    %c1_84 = arith.constant 1 : index
    %c0_85 = arith.constant 0 : index
    %c0_86 = arith.constant 0 : index
    %100 = vector.load %arg4[%c0_83, %c1_84, %c0_85, %c0_86] : memref<1x4x2x128xf32, #tpu.memory_space<vmem>>, vector<1x1x2x128xf32>
    %101 = vector.shape_cast %100 : vector<1x1x2x128xf32> to vector<2x128xf32>
    %102 = arith.maximumf %99, %101 : vector<2x128xf32>
    %c0_87 = arith.constant 0 : index
    %c2_88 = arith.constant 2 : index
    %c0_89 = arith.constant 0 : index
    %c0_90 = arith.constant 0 : index
    %103 = vector.load %arg4[%c0_87, %c2_88, %c0_89, %c0_90] : memref<1x4x2x128xf32, #tpu.memory_space<vmem>>, vector<1x1x2x128xf32>
    %104 = vector.shape_cast %103 : vector<1x1x2x128xf32> to vector<2x128xf32>
    %105 = arith.maximumf %102, %104 : vector<2x128xf32>
    %c0_91 = arith.constant 0 : index
    %c3_92 = arith.constant 3 : index
    %c0_93 = arith.constant 0 : index
    %c0_94 = arith.constant 0 : index
    %106 = vector.load %arg4[%c0_91, %c3_92, %c0_93, %c0_94] : memref<1x4x2x128xf32, #tpu.memory_space<vmem>>, vector<1x1x2x128xf32>
    %107 = vector.shape_cast %106 : vector<1x1x2x128xf32> to vector<2x128xf32>
    %108 = arith.maximumf %105, %107 : vector<2x128xf32>
    %cst_95 = arith.constant 0.000000e+00 : f32
    %109 = vector.broadcast %cst_95 : f32 to vector<2x128xf32>
    %c0_96 = arith.constant 0 : index
    %c0_97 = arith.constant 0 : index
    %c0_98 = arith.constant 0 : index
    %c0_99 = arith.constant 0 : index
    %110 = vector.load %arg4[%c0_96, %c0_97, %c0_98, %c0_99] : memref<1x4x2x128xf32, #tpu.memory_space<vmem>>, vector<1x1x2x128xf32>
    %111 = vector.shape_cast %110 : vector<1x1x2x128xf32> to vector<2x128xf32>
    %112 = arith.subf %111, %108 : vector<2x128xf32>
    %113 = math.exp %112 : vector<2x128xf32>
    %114 = arith.addf %109, %113 : vector<2x128xf32>
    %c0_100 = arith.constant 0 : index
    %c1_101 = arith.constant 1 : index
    %c0_102 = arith.constant 0 : index
    %c0_103 = arith.constant 0 : index
    %115 = vector.load %arg4[%c0_100, %c1_101, %c0_102, %c0_103] : memref<1x4x2x128xf32, #tpu.memory_space<vmem>>, vector<1x1x2x128xf32>
    %116 = vector.shape_cast %115 : vector<1x1x2x128xf32> to vector<2x128xf32>
    %117 = arith.subf %116, %108 : vector<2x128xf32>
    %118 = math.exp %117 : vector<2x128xf32>
    %119 = arith.addf %114, %118 : vector<2x128xf32>
    %c0_104 = arith.constant 0 : index
    %c2_105 = arith.constant 2 : index
    %c0_106 = arith.constant 0 : index
    %c0_107 = arith.constant 0 : index
    %120 = vector.load %arg4[%c0_104, %c2_105, %c0_106, %c0_107] : memref<1x4x2x128xf32, #tpu.memory_space<vmem>>, vector<1x1x2x128xf32>
    %121 = vector.shape_cast %120 : vector<1x1x2x128xf32> to vector<2x128xf32>
    %122 = arith.subf %121, %108 : vector<2x128xf32>
    %123 = math.exp %122 : vector<2x128xf32>
    %124 = arith.addf %119, %123 : vector<2x128xf32>
    %c0_108 = arith.constant 0 : index
    %c3_109 = arith.constant 3 : index
    %c0_110 = arith.constant 0 : index
    %c0_111 = arith.constant 0 : index
    %125 = vector.load %arg4[%c0_108, %c3_109, %c0_110, %c0_111] : memref<1x4x2x128xf32, #tpu.memory_space<vmem>>, vector<1x1x2x128xf32>
    %126 = vector.shape_cast %125 : vector<1x1x2x128xf32> to vector<2x128xf32>
    %127 = arith.subf %126, %108 : vector<2x128xf32>
    %128 = math.exp %127 : vector<2x128xf32>
    %129 = arith.addf %124, %128 : vector<2x128xf32>
    %130 = math.log %129 : vector<2x128xf32>
    %131 = arith.addf %108, %130 : vector<2x128xf32>
    %cst_112 = arith.constant 0.000000e+00 : f32
    %132 = vector.broadcast %cst_112 : f32 to vector<2x128xf32>
    %c0_113 = arith.constant 0 : index
    %c0_114 = arith.constant 0 : index
    %c0_115 = arith.constant 0 : index
    %c0_116 = arith.constant 0 : index
    %133 = vector.load %arg4[%c0_113, %c0_114, %c0_115, %c0_116] : memref<1x4x2x128xf32, #tpu.memory_space<vmem>>, vector<1x1x2x128xf32>
    %134 = vector.shape_cast %133 : vector<1x1x2x128xf32> to vector<2x128xf32>
    %135 = arith.subf %134, %131 : vector<2x128xf32>
    %c0_117 = arith.constant 0 : index
    %c0_118 = arith.constant 0 : index
    %c0_119 = arith.constant 0 : index
    %c0_120 = arith.constant 0 : index
    %136 = vector.load %arg18[%c0_117, %c0_118, %c0_119, %c0_120] : memref<1x4x2x128xf32, #tpu.memory_space<vmem>>, vector<1x1x2x128xf32>
    %137 = vector.shape_cast %136 : vector<1x1x2x128xf32> to vector<2x128xf32>
    %138 = vector.shape_cast %135 : vector<2x128xf32> to vector<1x1x2x128xf32>
    tpu.vector_store %arg18[%c0_117, %c0_118, %c0_119, %c0_120], %138 {strides = array<i32>} : memref<1x4x2x128xf32, #tpu.memory_space<vmem>>, vector<1x1x2x128xf32>,
    %c0_i32_121 = arith.constant 0 : i32
    %139 = vector.broadcast %c0_i32_121 : i32 to vector<2x128xi32>
    %140 = arith.cmpi eq, %1, %139 : vector<2x128xi32>
    %cst_122 = arith.constant 0.000000e+00 : f32
    %141 = vector.broadcast %cst_122 : f32 to vector<2x128xf32>
    %142 = arith.select %140, %135, %141 : vector<2x128xi1>, vector<2x128xf32>
    %143 = arith.addf %132, %142 : vector<2x128xf32>
    %c0_123 = arith.constant 0 : index
    %c1_124 = arith.constant 1 : index
    %c0_125 = arith.constant 0 : index
    %c0_126 = arith.constant 0 : index
    %144 = vector.load %arg4[%c0_123, %c1_124, %c0_125, %c0_126] : memref<1x4x2x128xf32, #tpu.memory_space<vmem>>, vector<1x1x2x128xf32>
    %145 = vector.shape_cast %144 : vector<1x1x2x128xf32> to vector<2x128xf32>
    %146 = arith.subf %145, %131 : vector<2x128xf32>
    %c0_127 = arith.constant 0 : index
    %c1_128 = arith.constant 1 : index
    %c0_129 = arith.constant 0 : index
    %c0_130 = arith.constant 0 : index
    %147 = vector.load %arg18[%c0_127, %c1_128, %c0_129, %c0_130] : memref<1x4x2x128xf32, #tpu.memory_space<vmem>>, vector<1x1x2x128xf32>
    %148 = vector.shape_cast %147 : vector<1x1x2x128xf32> to vector<2x128xf32>
    %149 = vector.shape_cast %146 : vector<2x128xf32> to vector<1x1x2x128xf32>
    tpu.vector_store %arg18[%c0_127, %c1_128, %c0_129, %c0_130], %149 {strides = array<i32>} : memref<1x4x2x128xf32, #tpu.memory_space<vmem>>, vector<1x1x2x128xf32>,
    %c1_i32_131 = arith.constant 1 : i32
    %150 = vector.broadcast %c1_i32_131 : i32 to vector<2x128xi32>
    %151 = arith.cmpi eq, %1, %150 : vector<2x128xi32>
    %cst_132 = arith.constant 0.000000e+00 : f32
    %152 = vector.broadcast %cst_132 : f32 to vector<2x128xf32>
    %153 = arith.select %151, %146, %152 : vector<2x128xi1>, vector<2x128xf32>
    %154 = arith.addf %143, %153 : vector<2x128xf32>
    %c0_133 = arith.constant 0 : index
    %c2_134 = arith.constant 2 : index
    %c0_135 = arith.constant 0 : index
    %c0_136 = arith.constant 0 : index
    %155 = vector.load %arg4[%c0_133, %c2_134, %c0_135, %c0_136] : memref<1x4x2x128xf32, #tpu.memory_space<vmem>>, vector<1x1x2x128xf32>
    %156 = vector.shape_cast %155 : vector<1x1x2x128xf32> to vector<2x128xf32>
    %157 = arith.subf %156, %131 : vector<2x128xf32>
    %c0_137 = arith.constant 0 : index
    %c2_138 = arith.constant 2 : index
    %c0_139 = arith.constant 0 : index
    %c0_140 = arith.constant 0 : index
    %158 = vector.load %arg18[%c0_137, %c2_138, %c0_139, %c0_140] : memref<1x4x2x128xf32, #tpu.memory_space<vmem>>, vector<1x1x2x128xf32>
    %159 = vector.shape_cast %158 : vector<1x1x2x128xf32> to vector<2x128xf32>
    %160 = vector.shape_cast %157 : vector<2x128xf32> to vector<1x1x2x128xf32>
    tpu.vector_store %arg18[%c0_137, %c2_138, %c0_139, %c0_140], %160 {strides = array<i32>} : memref<1x4x2x128xf32, #tpu.memory_space<vmem>>, vector<1x1x2x128xf32>,
    %c2_i32_141 = arith.constant 2 : i32
    %161 = vector.broadcast %c2_i32_141 : i32 to vector<2x128xi32>
    %162 = arith.cmpi eq, %1, %161 : vector<2x128xi32>
    %cst_142 = arith.constant 0.000000e+00 : f32
    %163 = vector.broadcast %cst_142 : f32 to vector<2x128xf32>
    %164 = arith.select %162, %157, %163 : vector<2x128xi1>, vector<2x128xf32>
    %165 = arith.addf %154, %164 : vector<2x128xf32>
    %c0_143 = arith.constant 0 : index
    %c3_144 = arith.constant 3 : index
    %c0_145 = arith.constant 0 : index
    %c0_146 = arith.constant 0 : index
    %166 = vector.load %arg4[%c0_143, %c3_144, %c0_145, %c0_146] : memref<1x4x2x128xf32, #tpu.memory_space<vmem>>, vector<1x1x2x128xf32>
    %167 = vector.shape_cast %166 : vector<1x1x2x128xf32> to vector<2x128xf32>
    %168 = arith.subf %167, %131 : vector<2x128xf32>
    %c0_147 = arith.constant 0 : index
    %c3_148 = arith.constant 3 : index
    %c0_149 = arith.constant 0 : index
    %c0_150 = arith.constant 0 : index
    %169 = vector.load %arg18[%c0_147, %c3_148, %c0_149, %c0_150] : memref<1x4x2x128xf32, #tpu.memory_space<vmem>>, vector<1x1x2x128xf32>
    %170 = vector.shape_cast %169 : vector<1x1x2x128xf32> to vector<2x128xf32>
    %171 = vector.shape_cast %168 : vector<2x128xf32> to vector<1x1x2x128xf32>
    tpu.vector_store %arg18[%c0_147, %c3_148, %c0_149, %c0_150], %171 {strides = array<i32>} : memref<1x4x2x128xf32, #tpu.memory_space<vmem>>, vector<1x1x2x128xf32>,
    %c3_i32_151 = arith.constant 3 : i32
    %172 = vector.broadcast %c3_i32_151 : i32 to vector<2x128xi32>
    %173 = arith.cmpi eq, %1, %172 : vector<2x128xi32>
    %cst_152 = arith.constant 0.000000e+00 : f32
    %174 = vector.broadcast %cst_152 : f32 to vector<2x128xf32>
    %175 = arith.select %173, %168, %174 : vector<2x128xi1>, vector<2x128xf32>
    %176 = arith.addf %165, %175 : vector<2x128xf32>
    %177 = vector.shape_cast %176 : vector<2x128xf32> to vector<1x2x128xf32>
    %cst_153 = arith.constant dense<0.000000e+00> : vector<1xf32>
    %178 = vector.multi_reduction <add>, %177, %cst_153 [1, 2] : vector<1x2x128xf32> to vector<1xf32>
    %179 = vector.shape_cast %178 : vector<1xf32> to vector<1x1x1xf32>
    %180 = vector.extract %179[0, 0, 0] : f32 from vector<1x1x1xf32>
    %cst_154 = arith.constant 0.000000e+00 : f32
    %181 = arith.subf %cst_154, %180 : f32
    %182 = vector.broadcast %181 : f32 to vector<1x1x1x1xf32>
    %c0_155 = arith.constant 0 : index
    %c0_156 = arith.constant 0 : index
    %c0_157 = arith.constant 0 : index
    %c1_158 = arith.constant 1 : index
    %183 = vector.load %arg23[%c0_155, %c0_156, %c0_157, %c1_158] : memref<1x1x1x18xf32, #tpu.memory_space<vmem>>, vector<1x1x1x1xf32>
    tpu.vector_store %arg23[%c0_155, %c0_156, %c0_157, %c1_158], %182 {strides = array<i32>} : memref<1x1x1x18xf32, #tpu.memory_space<vmem>>, vector<1x1x1x1xf32>,
    %c0_159 = arith.constant 0 : index
    %c0_160 = arith.constant 0 : index
    %c0_161 = arith.constant 0 : index
    %184 = vector.load %arg5[%c0_159, %c0_160, %c0_161] : memref<1x2x128xi32, #tpu.memory_space<vmem>>, vector<1x2x128xi32>
    %185 = vector.shape_cast %184 : vector<1x2x128xi32> to vector<2x128xi32>
    %c-1_i32_162 = arith.constant -1 : i32
    %186 = vector.broadcast %c-1_i32_162 : i32 to vector<2x128xi32>
    %187 = arith.cmpi ne, %185, %186 : vector<2x128xi32>
    %188 = arith.extui %187 : vector<2x128xi1> to vector<2x128xi32>
    %189 = arith.sitofp %188 : vector<2x128xi32> to vector<2x128xf32>
    %190 = vector.shape_cast %189 : vector<2x128xf32> to vector<1x2x128xf32>
    %cst_163 = arith.constant dense<0.000000e+00> : vector<1xf32>
    %191 = vector.multi_reduction <add>, %190, %cst_163 [1, 2] : vector<1x2x128xf32> to vector<1xf32>
    %192 = vector.shape_cast %191 : vector<1xf32> to vector<1x1x1xf32>
    %193 = vector.extract %192[0, 0, 0] : f32 from vector<1x1x1xf32>
    %194 = vector.broadcast %193 : f32 to vector<1x1x1x1xf32>
    %c0_164 = arith.constant 0 : index
    %c0_165 = arith.constant 0 : index
    %c0_166 = arith.constant 0 : index
    %c5 = arith.constant 5 : index
    %195 = vector.load %arg23[%c0_164, %c0_165, %c0_166, %c5] : memref<1x1x1x18xf32, #tpu.memory_space<vmem>>, vector<1x1x1x1xf32>
    tpu.vector_store %arg23[%c0_164, %c0_165, %c0_166, %c5], %194 {strides = array<i32>} : memref<1x1x1x18xf32, #tpu.memory_space<vmem>>, vector<1x1x1x1xf32>,
    %c0_167 = arith.constant 0 : index
    %c0_168 = arith.constant 0 : index
    %c0_169 = arith.constant 0 : index
    %c0_170 = arith.constant 0 : index
    %196 = vector.load %arg6[%c0_167, %c0_168, %c0_169, %c0_170] : memref<1x5x2x128xf32, #tpu.memory_space<vmem>>, vector<1x1x2x128xf32>
    %197 = vector.shape_cast %196 : vector<1x1x2x128xf32> to vector<2x128xf32>
    %c0_171 = arith.constant 0 : index
    %c1_172 = arith.constant 1 : index
    %c0_173 = arith.constant 0 : index
    %c0_174 = arith.constant 0 : index
    %198 = vector.load %arg6[%c0_171, %c1_172, %c0_173, %c0_174] : memref<1x5x2x128xf32, #tpu.memory_space<vmem>>, vector<1x1x2x128xf32>
    %199 = vector.shape_cast %198 : vector<1x1x2x128xf32> to vector<2x128xf32>
    %200 = arith.maximumf %197, %199 : vector<2x128xf32>
    %c0_175 = arith.constant 0 : index
    %c2_176 = arith.constant 2 : index
    %c0_177 = arith.constant 0 : index
    %c0_178 = arith.constant 0 : index
    %201 = vector.load %arg6[%c0_175, %c2_176, %c0_177, %c0_178] : memref<1x5x2x128xf32, #tpu.memory_space<vmem>>, vector<1x1x2x128xf32>
    %202 = vector.shape_cast %201 : vector<1x1x2x128xf32> to vector<2x128xf32>
    %203 = arith.maximumf %200, %202 : vector<2x128xf32>
    %c0_179 = arith.constant 0 : index
    %c3_180 = arith.constant 3 : index
    %c0_181 = arith.constant 0 : index
    %c0_182 = arith.constant 0 : index
    %204 = vector.load %arg6[%c0_179, %c3_180, %c0_181, %c0_182] : memref<1x5x2x128xf32, #tpu.memory_space<vmem>>, vector<1x1x2x128xf32>
    %205 = vector.shape_cast %204 : vector<1x1x2x128xf32> to vector<2x128xf32>
    %206 = arith.maximumf %203, %205 : vector<2x128xf32>
    %c0_183 = arith.constant 0 : index
    %c4 = arith.constant 4 : index
    %c0_184 = arith.constant 0 : index
    %c0_185 = arith.constant 0 : index
    %207 = vector.load %arg6[%c0_183, %c4, %c0_184, %c0_185] : memref<1x5x2x128xf32, #tpu.memory_space<vmem>>, vector<1x1x2x128xf32>
    %208 = vector.shape_cast %207 : vector<1x1x2x128xf32> to vector<2x128xf32>
    %209 = arith.maximumf %206, %208 : vector<2x128xf32>
    %cst_186 = arith.constant 0.000000e+00 : f32
    %210 = vector.broadcast %cst_186 : f32 to vector<2x128xf32>
    %c0_187 = arith.constant 0 : index
    %c0_188 = arith.constant 0 : index
    %c0_189 = arith.constant 0 : index
    %c0_190 = arith.constant 0 : index
    %211 = vector.load %arg6[%c0_187, %c0_188, %c0_189, %c0_190] : memref<1x5x2x128xf32, #tpu.memory_space<vmem>>, vector<1x1x2x128xf32>
    %212 = vector.shape_cast %211 : vector<1x1x2x128xf32> to vector<2x128xf32>
    %213 = arith.subf %212, %209 : vector<2x128xf32>
    %214 = math.exp %213 : vector<2x128xf32>
    %215 = arith.addf %210, %214 : vector<2x128xf32>
    %c0_191 = arith.constant 0 : index
    %c1_192 = arith.constant 1 : index
    %c0_193 = arith.constant 0 : index
    %c0_194 = arith.constant 0 : index
    %216 = vector.load %arg6[%c0_191, %c1_192, %c0_193, %c0_194] : memref<1x5x2x128xf32, #tpu.memory_space<vmem>>, vector<1x1x2x128xf32>
    %217 = vector.shape_cast %216 : vector<1x1x2x128xf32> to vector<2x128xf32>
    %218 = arith.subf %217, %209 : vector<2x128xf32>
    %219 = math.exp %218 : vector<2x128xf32>
    %220 = arith.addf %215, %219 : vector<2x128xf32>
    %c0_195 = arith.constant 0 : index
    %c2_196 = arith.constant 2 : index
    %c0_197 = arith.constant 0 : index
    %c0_198 = arith.constant 0 : index
    %221 = vector.load %arg6[%c0_195, %c2_196, %c0_197, %c0_198] : memref<1x5x2x128xf32, #tpu.memory_space<vmem>>, vector<1x1x2x128xf32>
    %222 = vector.shape_cast %221 : vector<1x1x2x128xf32> to vector<2x128xf32>
    %223 = arith.subf %222, %209 : vector<2x128xf32>
    %224 = math.exp %223 : vector<2x128xf32>
    %225 = arith.addf %220, %224 : vector<2x128xf32>
    %c0_199 = arith.constant 0 : index
    %c3_200 = arith.constant 3 : index
    %c0_201 = arith.constant 0 : index
    %c0_202 = arith.constant 0 : index
    %226 = vector.load %arg6[%c0_199, %c3_200, %c0_201, %c0_202] : memref<1x5x2x128xf32, #tpu.memory_space<vmem>>, vector<1x1x2x128xf32>
    %227 = vector.shape_cast %226 : vector<1x1x2x128xf32> to vector<2x128xf32>
    %228 = arith.subf %227, %209 : vector<2x128xf32>
    %229 = math.exp %228 : vector<2x128xf32>
    %230 = arith.addf %225, %229 : vector<2x128xf32>
    %c0_203 = arith.constant 0 : index
    %c4_204 = arith.constant 4 : index
    %c0_205 = arith.constant 0 : index
    %c0_206 = arith.constant 0 : index
    %231 = vector.load %arg6[%c0_203, %c4_204, %c0_205, %c0_206] : memref<1x5x2x128xf32, #tpu.memory_space<vmem>>, vector<1x1x2x128xf32>
    %232 = vector.shape_cast %231 : vector<1x1x2x128xf32> to vector<2x128xf32>
    %233 = arith.subf %232, %209 : vector<2x128xf32>
    %234 = math.exp %233 : vector<2x128xf32>
    %235 = arith.addf %230, %234 : vector<2x128xf32>
    %236 = math.log %235 : vector<2x128xf32>
    %237 = arith.addf %209, %236 : vector<2x128xf32>
    %cst_207 = arith.constant 0.000000e+00 : f32
    %238 = vector.broadcast %cst_207 : f32 to vector<2x128xf32>
    %c0_208 = arith.constant 0 : index
    %c0_209 = arith.constant 0 : index
    %c0_210 = arith.constant 0 : index
    %c0_211 = arith.constant 0 : index
    %239 = vector.load %arg6[%c0_208, %c0_209, %c0_210, %c0_211] : memref<1x5x2x128xf32, #tpu.memory_space<vmem>>, vector<1x1x2x128xf32>
    %240 = vector.shape_cast %239 : vector<1x1x2x128xf32> to vector<2x128xf32>
    %241 = arith.subf %240, %237 : vector<2x128xf32>
    %c0_212 = arith.constant 0 : index
    %c0_213 = arith.constant 0 : index
    %c0_214 = arith.constant 0 : index
    %c0_215 = arith.constant 0 : index
    %242 = vector.load %arg19[%c0_212, %c0_213, %c0_214, %c0_215] : memref<1x5x2x128xf32, #tpu.memory_space<vmem>>, vector<1x1x2x128xf32>
    %243 = vector.shape_cast %242 : vector<1x1x2x128xf32> to vector<2x128xf32>
    %244 = vector.shape_cast %241 : vector<2x128xf32> to vector<1x1x2x128xf32>
    tpu.vector_store %arg19[%c0_212, %c0_213, %c0_214, %c0_215], %244 {strides = array<i32>} : memref<1x5x2x128xf32, #tpu.memory_space<vmem>>, vector<1x1x2x128xf32>,
    %c0_i32_216 = arith.constant 0 : i32
    %245 = vector.broadcast %c0_i32_216 : i32 to vector<2x128xi32>
    %246 = arith.cmpi eq, %185, %245 : vector<2x128xi32>
    %cst_217 = arith.constant 0.000000e+00 : f32
    %247 = vector.broadcast %cst_217 : f32 to vector<2x128xf32>
    %248 = arith.select %246, %241, %247 : vector<2x128xi1>, vector<2x128xf32>
    %249 = arith.addf %238, %248 : vector<2x128xf32>
    %c0_218 = arith.constant 0 : index
    %c1_219 = arith.constant 1 : index
    %c0_220 = arith.constant 0 : index
    %c0_221 = arith.constant 0 : index
    %250 = vector.load %arg6[%c0_218, %c1_219, %c0_220, %c0_221] : memref<1x5x2x128xf32, #tpu.memory_space<vmem>>, vector<1x1x2x128xf32>
    %251 = vector.shape_cast %250 : vector<1x1x2x128xf32> to vector<2x128xf32>
    %252 = arith.subf %251, %237 : vector<2x128xf32>
    %c0_222 = arith.constant 0 : index
    %c1_223 = arith.constant 1 : index
    %c0_224 = arith.constant 0 : index
    %c0_225 = arith.constant 0 : index
    %253 = vector.load %arg19[%c0_222, %c1_223, %c0_224, %c0_225] : memref<1x5x2x128xf32, #tpu.memory_space<vmem>>, vector<1x1x2x128xf32>
    %254 = vector.shape_cast %253 : vector<1x1x2x128xf32> to vector<2x128xf32>
    %255 = vector.shape_cast %252 : vector<2x128xf32> to vector<1x1x2x128xf32>
    tpu.vector_store %arg19[%c0_222, %c1_223, %c0_224, %c0_225], %255 {strides = array<i32>} : memref<1x5x2x128xf32, #tpu.memory_space<vmem>>, vector<1x1x2x128xf32>,
    %c1_i32_226 = arith.constant 1 : i32
    %256 = vector.broadcast %c1_i32_226 : i32 to vector<2x128xi32>
    %257 = arith.cmpi eq, %185, %256 : vector<2x128xi32>
    %cst_227 = arith.constant 0.000000e+00 : f32
    %258 = vector.broadcast %cst_227 : f32 to vector<2x128xf32>
    %259 = arith.select %257, %252, %258 : vector<2x128xi1>, vector<2x128xf32>
    %260 = arith.addf %249, %259 : vector<2x128xf32>
    %c0_228 = arith.constant 0 : index
    %c2_229 = arith.constant 2 : index
    %c0_230 = arith.constant 0 : index
    %c0_231 = arith.constant 0 : index
    %261 = vector.load %arg6[%c0_228, %c2_229, %c0_230, %c0_231] : memref<1x5x2x128xf32, #tpu.memory_space<vmem>>, vector<1x1x2x128xf32>
    %262 = vector.shape_cast %261 : vector<1x1x2x128xf32> to vector<2x128xf32>
    %263 = arith.subf %262, %237 : vector<2x128xf32>
    %c0_232 = arith.constant 0 : index
    %c2_233 = arith.constant 2 : index
    %c0_234 = arith.constant 0 : index
    %c0_235 = arith.constant 0 : index
    %264 = vector.load %arg19[%c0_232, %c2_233, %c0_234, %c0_235] : memref<1x5x2x128xf32, #tpu.memory_space<vmem>>, vector<1x1x2x128xf32>
    %265 = vector.shape_cast %264 : vector<1x1x2x128xf32> to vector<2x128xf32>
    %266 = vector.shape_cast %263 : vector<2x128xf32> to vector<1x1x2x128xf32>
    tpu.vector_store %arg19[%c0_232, %c2_233, %c0_234, %c0_235], %266 {strides = array<i32>} : memref<1x5x2x128xf32, #tpu.memory_space<vmem>>, vector<1x1x2x128xf32>,
    %c2_i32_236 = arith.constant 2 : i32
    %267 = vector.broadcast %c2_i32_236 : i32 to vector<2x128xi32>
    %268 = arith.cmpi eq, %185, %267 : vector<2x128xi32>
    %cst_237 = arith.constant 0.000000e+00 : f32
    %269 = vector.broadcast %cst_237 : f32 to vector<2x128xf32>
    %270 = arith.select %268, %263, %269 : vector<2x128xi1>, vector<2x128xf32>
    %271 = arith.addf %260, %270 : vector<2x128xf32>
    %c0_238 = arith.constant 0 : index
    %c3_239 = arith.constant 3 : index
    %c0_240 = arith.constant 0 : index
    %c0_241 = arith.constant 0 : index
    %272 = vector.load %arg6[%c0_238, %c3_239, %c0_240, %c0_241] : memref<1x5x2x128xf32, #tpu.memory_space<vmem>>, vector<1x1x2x128xf32>
    %273 = vector.shape_cast %272 : vector<1x1x2x128xf32> to vector<2x128xf32>
    %274 = arith.subf %273, %237 : vector<2x128xf32>
    %c0_242 = arith.constant 0 : index
    %c3_243 = arith.constant 3 : index
    %c0_244 = arith.constant 0 : index
    %c0_245 = arith.constant 0 : index
    %275 = vector.load %arg19[%c0_242, %c3_243, %c0_244, %c0_245] : memref<1x5x2x128xf32, #tpu.memory_space<vmem>>, vector<1x1x2x128xf32>
    %276 = vector.shape_cast %275 : vector<1x1x2x128xf32> to vector<2x128xf32>
    %277 = vector.shape_cast %274 : vector<2x128xf32> to vector<1x1x2x128xf32>
    tpu.vector_store %arg19[%c0_242, %c3_243, %c0_244, %c0_245], %277 {strides = array<i32>} : memref<1x5x2x128xf32, #tpu.memory_space<vmem>>, vector<1x1x2x128xf32>,
    %c3_i32_246 = arith.constant 3 : i32
    %278 = vector.broadcast %c3_i32_246 : i32 to vector<2x128xi32>
    %279 = arith.cmpi eq, %185, %278 : vector<2x128xi32>
    %cst_247 = arith.constant 0.000000e+00 : f32
    %280 = vector.broadcast %cst_247 : f32 to vector<2x128xf32>
    %281 = arith.select %279, %274, %280 : vector<2x128xi1>, vector<2x128xf32>
    %282 = arith.addf %271, %281 : vector<2x128xf32>
    %c0_248 = arith.constant 0 : index
    %c4_249 = arith.constant 4 : index
    %c0_250 = arith.constant 0 : index
    %c0_251 = arith.constant 0 : index
    %283 = vector.load %arg6[%c0_248, %c4_249, %c0_250, %c0_251] : memref<1x5x2x128xf32, #tpu.memory_space<vmem>>, vector<1x1x2x128xf32>
    %284 = vector.shape_cast %283 : vector<1x1x2x128xf32> to vector<2x128xf32>
    %285 = arith.subf %284, %237 : vector<2x128xf32>
    %c0_252 = arith.constant 0 : index
    %c4_253 = arith.constant 4 : index
    %c0_254 = arith.constant 0 : index
    %c0_255 = arith.constant 0 : index
    %286 = vector.load %arg19[%c0_252, %c4_253, %c0_254, %c0_255] : memref<1x5x2x128xf32, #tpu.memory_space<vmem>>, vector<1x1x2x128xf32>
    %287 = vector.shape_cast %286 : vector<1x1x2x128xf32> to vector<2x128xf32>
    %288 = vector.shape_cast %285 : vector<2x128xf32> to vector<1x1x2x128xf32>
    tpu.vector_store %arg19[%c0_252, %c4_253, %c0_254, %c0_255], %288 {strides = array<i32>} : memref<1x5x2x128xf32, #tpu.memory_space<vmem>>, vector<1x1x2x128xf32>,
    %c4_i32 = arith.constant 4 : i32
    %289 = vector.broadcast %c4_i32 : i32 to vector<2x128xi32>
    %290 = arith.cmpi eq, %185, %289 : vector<2x128xi32>
    %cst_256 = arith.constant 0.000000e+00 : f32
    %291 = vector.broadcast %cst_256 : f32 to vector<2x128xf32>
    %292 = arith.select %290, %285, %291 : vector<2x128xi1>, vector<2x128xf32>
    %293 = arith.addf %282, %292 : vector<2x128xf32>
    %294 = vector.shape_cast %293 : vector<2x128xf32> to vector<1x2x128xf32>
    %cst_257 = arith.constant dense<0.000000e+00> : vector<1xf32>
    %295 = vector.multi_reduction <add>, %294, %cst_257 [1, 2] : vector<1x2x128xf32> to vector<1xf32>
    %296 = vector.shape_cast %295 : vector<1xf32> to vector<1x1x1xf32>
    %297 = vector.extract %296[0, 0, 0] : f32 from vector<1x1x1xf32>
    %cst_258 = arith.constant 0.000000e+00 : f32
    %298 = arith.subf %cst_258, %297 : f32
    %299 = vector.broadcast %298 : f32 to vector<1x1x1x1xf32>
    %c0_259 = arith.constant 0 : index
    %c0_260 = arith.constant 0 : index
    %c0_261 = arith.constant 0 : index
    %c3_262 = arith.constant 3 : index
    %300 = vector.load %arg23[%c0_259, %c0_260, %c0_261, %c3_262] : memref<1x1x1x18xf32, #tpu.memory_space<vmem>>, vector<1x1x1x1xf32>
    tpu.vector_store %arg23[%c0_259, %c0_260, %c0_261, %c3_262], %299 {strides = array<i32>} : memref<1x1x1x18xf32, #tpu.memory_space<vmem>>, vector<1x1x1x1xf32>,
    %c0_263 = arith.constant 0 : index
    %c0_264 = arith.constant 0 : index
    %c0_265 = arith.constant 0 : index
    %c0_266 = arith.constant 0 : index
    %301 = vector.load %arg7[%c0_263, %c0_264, %c0_265, %c0_266] : memref<1x5x2x128xf32, #tpu.memory_space<vmem>>, vector<1x1x2x128xf32>
    %302 = vector.shape_cast %301 : vector<1x1x2x128xf32> to vector<2x128xf32>
    %c0_267 = arith.constant 0 : index
    %c1_268 = arith.constant 1 : index
    %c0_269 = arith.constant 0 : index
    %c0_270 = arith.constant 0 : index
    %303 = vector.load %arg7[%c0_267, %c1_268, %c0_269, %c0_270] : memref<1x5x2x128xf32, #tpu.memory_space<vmem>>, vector<1x1x2x128xf32>
    %304 = vector.shape_cast %303 : vector<1x1x2x128xf32> to vector<2x128xf32>
    %305 = arith.maximumf %302, %304 : vector<2x128xf32>
    %c0_271 = arith.constant 0 : index
    %c2_272 = arith.constant 2 : index
    %c0_273 = arith.constant 0 : index
    %c0_274 = arith.constant 0 : index
    %306 = vector.load %arg7[%c0_271, %c2_272, %c0_273, %c0_274] : memref<1x5x2x128xf32, #tpu.memory_space<vmem>>, vector<1x1x2x128xf32>
    %307 = vector.shape_cast %306 : vector<1x1x2x128xf32> to vector<2x128xf32>
    %308 = arith.maximumf %305, %307 : vector<2x128xf32>
    %c0_275 = arith.constant 0 : index
    %c3_276 = arith.constant 3 : index
    %c0_277 = arith.constant 0 : index
    %c0_278 = arith.constant 0 : index
    %309 = vector.load %arg7[%c0_275, %c3_276, %c0_277, %c0_278] : memref<1x5x2x128xf32, #tpu.memory_space<vmem>>, vector<1x1x2x128xf32>
    %310 = vector.shape_cast %309 : vector<1x1x2x128xf32> to vector<2x128xf32>
    %311 = arith.maximumf %308, %310 : vector<2x128xf32>
    %c0_279 = arith.constant 0 : index
    %c4_280 = arith.constant 4 : index
    %c0_281 = arith.constant 0 : index
    %c0_282 = arith.constant 0 : index
    %312 = vector.load %arg7[%c0_279, %c4_280, %c0_281, %c0_282] : memref<1x5x2x128xf32, #tpu.memory_space<vmem>>, vector<1x1x2x128xf32>
    %313 = vector.shape_cast %312 : vector<1x1x2x128xf32> to vector<2x128xf32>
    %314 = arith.maximumf %311, %313 : vector<2x128xf32>
    %cst_283 = arith.constant 0.000000e+00 : f32
    %315 = vector.broadcast %cst_283 : f32 to vector<2x128xf32>
    %c0_284 = arith.constant 0 : index
    %c0_285 = arith.constant 0 : index
    %c0_286 = arith.constant 0 : index
    %c0_287 = arith.constant 0 : index
    %316 = vector.load %arg7[%c0_284, %c0_285, %c0_286, %c0_287] : memref<1x5x2x128xf32, #tpu.memory_space<vmem>>, vector<1x1x2x128xf32>
    %317 = vector.shape_cast %316 : vector<1x1x2x128xf32> to vector<2x128xf32>
    %318 = arith.subf %317, %314 : vector<2x128xf32>
    %319 = math.exp %318 : vector<2x128xf32>
    %320 = arith.addf %315, %319 : vector<2x128xf32>
    %c0_288 = arith.constant 0 : index
    %c1_289 = arith.constant 1 : index
    %c0_290 = arith.constant 0 : index
    %c0_291 = arith.constant 0 : index
    %321 = vector.load %arg7[%c0_288, %c1_289, %c0_290, %c0_291] : memref<1x5x2x128xf32, #tpu.memory_space<vmem>>, vector<1x1x2x128xf32>
    %322 = vector.shape_cast %321 : vector<1x1x2x128xf32> to vector<2x128xf32>
    %323 = arith.subf %322, %314 : vector<2x128xf32>
    %324 = math.exp %323 : vector<2x128xf32>
    %325 = arith.addf %320, %324 : vector<2x128xf32>
    %c0_292 = arith.constant 0 : index
    %c2_293 = arith.constant 2 : index
    %c0_294 = arith.constant 0 : index
    %c0_295 = arith.constant 0 : index
    %326 = vector.load %arg7[%c0_292, %c2_293, %c0_294, %c0_295] : memref<1x5x2x128xf32, #tpu.memory_space<vmem>>, vector<1x1x2x128xf32>
    %327 = vector.shape_cast %326 : vector<1x1x2x128xf32> to vector<2x128xf32>
    %328 = arith.subf %327, %314 : vector<2x128xf32>
    %329 = math.exp %328 : vector<2x128xf32>
    %330 = arith.addf %325, %329 : vector<2x128xf32>
    %c0_296 = arith.constant 0 : index
    %c3_297 = arith.constant 3 : index
    %c0_298 = arith.constant 0 : index
    %c0_299 = arith.constant 0 : index
    %331 = vector.load %arg7[%c0_296, %c3_297, %c0_298, %c0_299] : memref<1x5x2x128xf32, #tpu.memory_space<vmem>>, vector<1x1x2x128xf32>
    %332 = vector.shape_cast %331 : vector<1x1x2x128xf32> to vector<2x128xf32>
    %333 = arith.subf %332, %314 : vector<2x128xf32>
    %334 = math.exp %333 : vector<2x128xf32>
    %335 = arith.addf %330, %334 : vector<2x128xf32>
    %c0_300 = arith.constant 0 : index
    %c4_301 = arith.constant 4 : index
    %c0_302 = arith.constant 0 : index
    %c0_303 = arith.constant 0 : index
    %336 = vector.load %arg7[%c0_300, %c4_301, %c0_302, %c0_303] : memref<1x5x2x128xf32, #tpu.memory_space<vmem>>, vector<1x1x2x128xf32>
    %337 = vector.shape_cast %336 : vector<1x1x2x128xf32> to vector<2x128xf32>
    %338 = arith.subf %337, %314 : vector<2x128xf32>
    %339 = math.exp %338 : vector<2x128xf32>
    %340 = arith.addf %335, %339 : vector<2x128xf32>
    %341 = math.log %340 : vector<2x128xf32>
    %342 = arith.addf %314, %341 : vector<2x128xf32>
    %cst_304 = arith.constant 0.000000e+00 : f32
    %343 = vector.broadcast %cst_304 : f32 to vector<2x128xf32>
    %c0_305 = arith.constant 0 : index
    %c0_306 = arith.constant 0 : index
    %c0_307 = arith.constant 0 : index
    %c0_308 = arith.constant 0 : index
    %344 = vector.load %arg7[%c0_305, %c0_306, %c0_307, %c0_308] : memref<1x5x2x128xf32, #tpu.memory_space<vmem>>, vector<1x1x2x128xf32>
    %345 = vector.shape_cast %344 : vector<1x1x2x128xf32> to vector<2x128xf32>
    %346 = arith.subf %345, %342 : vector<2x128xf32>
    %c0_309 = arith.constant 0 : index
    %c0_310 = arith.constant 0 : index
    %c0_311 = arith.constant 0 : index
    %c0_312 = arith.constant 0 : index
    %347 = vector.load %arg20[%c0_309, %c0_310, %c0_311, %c0_312] : memref<1x5x2x128xf32, #tpu.memory_space<vmem>>, vector<1x1x2x128xf32>
    %348 = vector.shape_cast %347 : vector<1x1x2x128xf32> to vector<2x128xf32>
    %349 = vector.shape_cast %346 : vector<2x128xf32> to vector<1x1x2x128xf32>
    tpu.vector_store %arg20[%c0_309, %c0_310, %c0_311, %c0_312], %349 {strides = array<i32>} : memref<1x5x2x128xf32, #tpu.memory_space<vmem>>, vector<1x1x2x128xf32>,
    %c0_i32_313 = arith.constant 0 : i32
    %350 = vector.broadcast %c0_i32_313 : i32 to vector<2x128xi32>
    %351 = arith.cmpi eq, %185, %350 : vector<2x128xi32>
    %cst_314 = arith.constant 0.000000e+00 : f32
    %352 = vector.broadcast %cst_314 : f32 to vector<2x128xf32>
    %353 = arith.select %351, %346, %352 : vector<2x128xi1>, vector<2x128xf32>
    %354 = arith.addf %343, %353 : vector<2x128xf32>
    %c0_315 = arith.constant 0 : index
    %c1_316 = arith.constant 1 : index
    %c0_317 = arith.constant 0 : index
    %c0_318 = arith.constant 0 : index
    %355 = vector.load %arg7[%c0_315, %c1_316, %c0_317, %c0_318] : memref<1x5x2x128xf32, #tpu.memory_space<vmem>>, vector<1x1x2x128xf32>
    %356 = vector.shape_cast %355 : vector<1x1x2x128xf32> to vector<2x128xf32>
    %357 = arith.subf %356, %342 : vector<2x128xf32>
    %c0_319 = arith.constant 0 : index
    %c1_320 = arith.constant 1 : index
    %c0_321 = arith.constant 0 : index
    %c0_322 = arith.constant 0 : index
    %358 = vector.load %arg20[%c0_319, %c1_320, %c0_321, %c0_322] : memref<1x5x2x128xf32, #tpu.memory_space<vmem>>, vector<1x1x2x128xf32>
    %359 = vector.shape_cast %358 : vector<1x1x2x128xf32> to vector<2x128xf32>
    %360 = vector.shape_cast %357 : vector<2x128xf32> to vector<1x1x2x128xf32>
    tpu.vector_store %arg20[%c0_319, %c1_320, %c0_321, %c0_322], %360 {strides = array<i32>} : memref<1x5x2x128xf32, #tpu.memory_space<vmem>>, vector<1x1x2x128xf32>,
    %c1_i32_323 = arith.constant 1 : i32
    %361 = vector.broadcast %c1_i32_323 : i32 to vector<2x128xi32>
    %362 = arith.cmpi eq, %185, %361 : vector<2x128xi32>
    %cst_324 = arith.constant 0.000000e+00 : f32
    %363 = vector.broadcast %cst_324 : f32 to vector<2x128xf32>
    %364 = arith.select %362, %357, %363 : vector<2x128xi1>, vector<2x128xf32>
    %365 = arith.addf %354, %364 : vector<2x128xf32>
    %c0_325 = arith.constant 0 : index
    %c2_326 = arith.constant 2 : index
    %c0_327 = arith.constant 0 : index
    %c0_328 = arith.constant 0 : index
    %366 = vector.load %arg7[%c0_325, %c2_326, %c0_327, %c0_328] : memref<1x5x2x128xf32, #tpu.memory_space<vmem>>, vector<1x1x2x128xf32>
    %367 = vector.shape_cast %366 : vector<1x1x2x128xf32> to vector<2x128xf32>
    %368 = arith.subf %367, %342 : vector<2x128xf32>
    %c0_329 = arith.constant 0 : index
    %c2_330 = arith.constant 2 : index
    %c0_331 = arith.constant 0 : index
    %c0_332 = arith.constant 0 : index
    %369 = vector.load %arg20[%c0_329, %c2_330, %c0_331, %c0_332] : memref<1x5x2x128xf32, #tpu.memory_space<vmem>>, vector<1x1x2x128xf32>
    %370 = vector.shape_cast %369 : vector<1x1x2x128xf32> to vector<2x128xf32>
    %371 = vector.shape_cast %368 : vector<2x128xf32> to vector<1x1x2x128xf32>
    tpu.vector_store %arg20[%c0_329, %c2_330, %c0_331, %c0_332], %371 {strides = array<i32>} : memref<1x5x2x128xf32, #tpu.memory_space<vmem>>, vector<1x1x2x128xf32>,
    %c2_i32_333 = arith.constant 2 : i32
    %372 = vector.broadcast %c2_i32_333 : i32 to vector<2x128xi32>
    %373 = arith.cmpi eq, %185, %372 : vector<2x128xi32>
    %cst_334 = arith.constant 0.000000e+00 : f32
    %374 = vector.broadcast %cst_334 : f32 to vector<2x128xf32>
    %375 = arith.select %373, %368, %374 : vector<2x128xi1>, vector<2x128xf32>
    %376 = arith.addf %365, %375 : vector<2x128xf32>
    %c0_335 = arith.constant 0 : index
    %c3_336 = arith.constant 3 : index
    %c0_337 = arith.constant 0 : index
    %c0_338 = arith.constant 0 : index
    %377 = vector.load %arg7[%c0_335, %c3_336, %c0_337, %c0_338] : memref<1x5x2x128xf32, #tpu.memory_space<vmem>>, vector<1x1x2x128xf32>
    %378 = vector.shape_cast %377 : vector<1x1x2x128xf32> to vector<2x128xf32>
    %379 = arith.subf %378, %342 : vector<2x128xf32>
    %c0_339 = arith.constant 0 : index
    %c3_340 = arith.constant 3 : index
    %c0_341 = arith.constant 0 : index
    %c0_342 = arith.constant 0 : index
    %380 = vector.load %arg20[%c0_339, %c3_340, %c0_341, %c0_342] : memref<1x5x2x128xf32, #tpu.memory_space<vmem>>, vector<1x1x2x128xf32>
    %381 = vector.shape_cast %380 : vector<1x1x2x128xf32> to vector<2x128xf32>
    %382 = vector.shape_cast %379 : vector<2x128xf32> to vector<1x1x2x128xf32>
    tpu.vector_store %arg20[%c0_339, %c3_340, %c0_341, %c0_342], %382 {strides = array<i32>} : memref<1x5x2x128xf32, #tpu.memory_space<vmem>>, vector<1x1x2x128xf32>,
    %c3_i32_343 = arith.constant 3 : i32
    %383 = vector.broadcast %c3_i32_343 : i32 to vector<2x128xi32>
    %384 = arith.cmpi eq, %185, %383 : vector<2x128xi32>
    %cst_344 = arith.constant 0.000000e+00 : f32
    %385 = vector.broadcast %cst_344 : f32 to vector<2x128xf32>
    %386 = arith.select %384, %379, %385 : vector<2x128xi1>, vector<2x128xf32>
    %387 = arith.addf %376, %386 : vector<2x128xf32>
    %c0_345 = arith.constant 0 : index
    %c4_346 = arith.constant 4 : index
    %c0_347 = arith.constant 0 : index
    %c0_348 = arith.constant 0 : index
    %388 = vector.load %arg7[%c0_345, %c4_346, %c0_347, %c0_348] : memref<1x5x2x128xf32, #tpu.memory_space<vmem>>, vector<1x1x2x128xf32>
    %389 = vector.shape_cast %388 : vector<1x1x2x128xf32> to vector<2x128xf32>
    %390 = arith.subf %389, %342 : vector<2x128xf32>
    %c0_349 = arith.constant 0 : index
    %c4_350 = arith.constant 4 : index
    %c0_351 = arith.constant 0 : index
    %c0_352 = arith.constant 0 : index
    %391 = vector.load %arg20[%c0_349, %c4_350, %c0_351, %c0_352] : memref<1x5x2x128xf32, #tpu.memory_space<vmem>>, vector<1x1x2x128xf32>
    %392 = vector.shape_cast %391 : vector<1x1x2x128xf32> to vector<2x128xf32>
    %393 = vector.shape_cast %390 : vector<2x128xf32> to vector<1x1x2x128xf32>
    tpu.vector_store %arg20[%c0_349, %c4_350, %c0_351, %c0_352], %393 {strides = array<i32>} : memref<1x5x2x128xf32, #tpu.memory_space<vmem>>, vector<1x1x2x128xf32>,
    %c4_i32_353 = arith.constant 4 : i32
    %394 = vector.broadcast %c4_i32_353 : i32 to vector<2x128xi32>
    %395 = arith.cmpi eq, %185, %394 : vector<2x128xi32>
    %cst_354 = arith.constant 0.000000e+00 : f32
    %396 = vector.broadcast %cst_354 : f32 to vector<2x128xf32>
    %397 = arith.select %395, %390, %396 : vector<2x128xi1>, vector<2x128xf32>
    %398 = arith.addf %387, %397 : vector<2x128xf32>
    %399 = vector.shape_cast %398 : vector<2x128xf32> to vector<1x2x128xf32>
    %cst_355 = arith.constant dense<0.000000e+00> : vector<1xf32>
    %400 = vector.multi_reduction <add>, %399, %cst_355 [1, 2] : vector<1x2x128xf32> to vector<1xf32>
    %401 = vector.shape_cast %400 : vector<1xf32> to vector<1x1x1xf32>
    %402 = vector.extract %401[0, 0, 0] : f32 from vector<1x1x1xf32>
    %cst_356 = arith.constant 0.000000e+00 : f32
    %403 = arith.subf %cst_356, %402 : f32
    %404 = vector.broadcast %403 : f32 to vector<1x1x1x1xf32>
    %c0_357 = arith.constant 0 : index
    %c0_358 = arith.constant 0 : index
    %c0_359 = arith.constant 0 : index
    %c4_360 = arith.constant 4 : index
    %405 = vector.load %arg23[%c0_357, %c0_358, %c0_359, %c4_360] : memref<1x1x1x18xf32, #tpu.memory_space<vmem>>, vector<1x1x1x1xf32>
    tpu.vector_store %arg23[%c0_357, %c0_358, %c0_359, %c4_360], %404 {strides = array<i32>} : memref<1x1x1x18xf32, #tpu.memory_space<vmem>>, vector<1x1x1x1xf32>,
    %c0_361 = arith.constant 0 : index
    %c0_362 = arith.constant 0 : index
    %c0_363 = arith.constant 0 : index
    %c0_364 = arith.constant 0 : index
    %406 = vector.load %arg8[%c0_361, %c0_362, %c0_363, %c0_364] : memref<1x1x2x128xf32, #tpu.memory_space<vmem>>, vector<1x1x2x128xf32>
    %407 = vector.shape_cast %406 : vector<1x1x2x128xf32> to vector<1x2x128xf32>
    %cst_365 = arith.constant dense<0.000000e+00> : vector<2x128xf32>
    %408 = vector.multi_reduction <add>, %407, %cst_365 [0] : vector<1x2x128xf32> to vector<2x128xf32>
    %cst_366 = arith.constant 0.000000e+00 : f32
    %409 = vector.broadcast %cst_366 : f32 to vector<2x128xf32>
    %410 = arith.cmpf one, %408, %409 : vector<2x128xf32>
    %411 = arith.extui %410 : vector<2x128xi1> to vector<2x128xi32>
    %412 = arith.sitofp %411 : vector<2x128xi32> to vector<2x128xf32>
    %413 = vector.shape_cast %412 : vector<2x128xf32> to vector<1x2x128xf32>
    %cst_367 = arith.constant dense<0.000000e+00> : vector<1xf32>
    %414 = vector.multi_reduction <add>, %413, %cst_367 [1, 2] : vector<1x2x128xf32> to vector<1xf32>
    %415 = vector.shape_cast %414 : vector<1xf32> to vector<1x1x1xf32>
    %416 = vector.extract %415[0, 0, 0] : f32 from vector<1x1x1xf32>
    %417 = vector.broadcast %416 : f32 to vector<1x1x1x1xf32>
    %c0_368 = arith.constant 0 : index
    %c0_369 = arith.constant 0 : index
    %c0_370 = arith.constant 0 : index
    %c8 = arith.constant 8 : index
    %418 = vector.load %arg23[%c0_368, %c0_369, %c0_370, %c8] : memref<1x1x1x18xf32, #tpu.memory_space<vmem>>, vector<1x1x1x1xf32>
    tpu.vector_store %arg23[%c0_368, %c0_369, %c0_370, %c8], %417 {strides = array<i32>} : memref<1x1x1x18xf32, #tpu.memory_space<vmem>>, vector<1x1x1x1xf32>,
    %c0_371 = arith.constant 0 : index
    %c0_372 = arith.constant 0 : index
    %c0_373 = arith.constant 0 : index
    %c0_374 = arith.constant 0 : index
    %419 = vector.load %arg9[%c0_371, %c0_372, %c0_373, %c0_374] : memref<1x1x2x128xf32, #tpu.memory_space<vmem>>, vector<1x1x2x128xf32>
    %420 = vector.shape_cast %419 : vector<1x1x2x128xf32> to vector<1x2x128xf32>
    %421 = arith.subf %420, %407 : vector<1x2x128xf32>
    %422 = math.absf %421 : vector<1x2x128xf32>
    %cst_375 = arith.constant dense<0.000000e+00> : vector<2x128xf32>
    %423 = vector.multi_reduction <add>, %422, %cst_375 [0] : vector<1x2x128xf32> to vector<2x128xf32>
    %424 = arith.mulf %423, %412 : vector<2x128xf32>
    %425 = vector.shape_cast %424 : vector<2x128xf32> to vector<1x2x128xf32>
    %cst_376 = arith.constant dense<0.000000e+00> : vector<1xf32>
    %426 = vector.multi_reduction <add>, %425, %cst_376 [1, 2] : vector<1x2x128xf32> to vector<1xf32>
    %427 = vector.shape_cast %426 : vector<1xf32> to vector<1x1x1xf32>
    %428 = vector.extract %427[0, 0, 0] : f32 from vector<1x1x1xf32>
    %429 = vector.broadcast %428 : f32 to vector<1x1x1x1xf32>
    %c0_377 = arith.constant 0 : index
    %c0_378 = arith.constant 0 : index
    %c0_379 = arith.constant 0 : index
    %c6 = arith.constant 6 : index
    %430 = vector.load %arg23[%c0_377, %c0_378, %c0_379, %c6] : memref<1x1x1x18xf32, #tpu.memory_space<vmem>>, vector<1x1x1x1xf32>
    tpu.vector_store %arg23[%c0_377, %c0_378, %c0_379, %c6], %429 {strides = array<i32>} : memref<1x1x1x18xf32, #tpu.memory_space<vmem>>, vector<1x1x1x1xf32>,
    %c0_380 = arith.constant 0 : index
    %c0_381 = arith.constant 0 : index
    %c0_382 = arith.constant 0 : index
    %c0_383 = arith.constant 0 : index
    %431 = vector.load %arg10[%c0_380, %c0_381, %c0_382, %c0_383] : memref<1x1x2x128xf32, #tpu.memory_space<vmem>>, vector<1x1x2x128xf32>
    %432 = vector.shape_cast %431 : vector<1x1x2x128xf32> to vector<1x2x128xf32>
    %433 = arith.subf %432, %407 : vector<1x2x128xf32>
    %434 = math.absf %433 : vector<1x2x128xf32>
    %cst_384 = arith.constant dense<0.000000e+00> : vector<2x128xf32>
    %435 = vector.multi_reduction <add>, %434, %cst_384 [0] : vector<1x2x128xf32> to vector<2x128xf32>
    %436 = arith.mulf %435, %412 : vector<2x128xf32>
    %437 = vector.shape_cast %436 : vector<2x128xf32> to vector<1x2x128xf32>
    %cst_385 = arith.constant dense<0.000000e+00> : vector<1xf32>
    %438 = vector.multi_reduction <add>, %437, %cst_385 [1, 2] : vector<1x2x128xf32> to vector<1xf32>
    %439 = vector.shape_cast %438 : vector<1xf32> to vector<1x1x1xf32>
    %440 = vector.extract %439[0, 0, 0] : f32 from vector<1x1x1xf32>
    %441 = vector.broadcast %440 : f32 to vector<1x1x1x1xf32>
    %c0_386 = arith.constant 0 : index
    %c0_387 = arith.constant 0 : index
    %c0_388 = arith.constant 0 : index
    %c7 = arith.constant 7 : index
    %442 = vector.load %arg23[%c0_386, %c0_387, %c0_388, %c7] : memref<1x1x1x18xf32, #tpu.memory_space<vmem>>, vector<1x1x1x1xf32>
    tpu.vector_store %arg23[%c0_386, %c0_387, %c0_388, %c7], %441 {strides = array<i32>} : memref<1x1x1x18xf32, #tpu.memory_space<vmem>>, vector<1x1x1x1xf32>,
    %c0_389 = arith.constant 0 : index
    %c0_390 = arith.constant 0 : index
    %c0_391 = arith.constant 0 : index
    %c0_392 = arith.constant 0 : index
    %443 = vector.load %arg11[%c0_389, %c0_390, %c0_391, %c0_392] : memref<1x3x2x128xf32, #tpu.memory_space<vmem>>, vector<1x3x2x128xf32>
    %444 = vector.shape_cast %443 : vector<1x3x2x128xf32> to vector<3x2x128xf32>
    %cst_393 = arith.constant dense<0.000000e+00> : vector<2x128xf32>
    %445 = vector.multi_reduction <add>, %444, %cst_393 [0] : vector<3x2x128xf32> to vector<2x128xf32>
    %cst_394 = arith.constant 0.000000e+00 : f32
    %446 = vector.broadcast %cst_394 : f32 to vector<2x128xf32>
    %447 = arith.cmpf one, %445, %446 : vector<2x128xf32>
    %448 = arith.extui %447 : vector<2x128xi1> to vector<2x128xi32>
    %449 = arith.sitofp %448 : vector<2x128xi32> to vector<2x128xf32>
    %450 = vector.shape_cast %449 : vector<2x128xf32> to vector<1x2x128xf32>
    %cst_395 = arith.constant dense<0.000000e+00> : vector<1xf32>
    %451 = vector.multi_reduction <add>, %450, %cst_395 [1, 2] : vector<1x2x128xf32> to vector<1xf32>
    %452 = vector.shape_cast %451 : vector<1xf32> to vector<1x1x1xf32>
    %453 = vector.extract %452[0, 0, 0] : f32 from vector<1x1x1xf32>
    %454 = vector.broadcast %453 : f32 to vector<1x1x1x1xf32>
    %c0_396 = arith.constant 0 : index
    %c0_397 = arith.constant 0 : index
    %c0_398 = arith.constant 0 : index
    %c11 = arith.constant 11 : index
    %455 = vector.load %arg23[%c0_396, %c0_397, %c0_398, %c11] : memref<1x1x1x18xf32, #tpu.memory_space<vmem>>, vector<1x1x1x1xf32>
    tpu.vector_store %arg23[%c0_396, %c0_397, %c0_398, %c11], %454 {strides = array<i32>} : memref<1x1x1x18xf32, #tpu.memory_space<vmem>>, vector<1x1x1x1xf32>,
    %c0_399 = arith.constant 0 : index
    %c0_400 = arith.constant 0 : index
    %c0_401 = arith.constant 0 : index
    %c0_402 = arith.constant 0 : index
    %456 = vector.load %arg12[%c0_399, %c0_400, %c0_401, %c0_402] : memref<1x3x2x128xf32, #tpu.memory_space<vmem>>, vector<1x3x2x128xf32>
    %457 = vector.shape_cast %456 : vector<1x3x2x128xf32> to vector<3x2x128xf32>
    %458 = arith.mulf %457, %457 : vector<3x2x128xf32>
    %cst_403 = arith.constant dense<0.000000e+00> : vector<2x128xf32>
    %459 = vector.multi_reduction <add>, %458, %cst_403 [0] : vector<3x2x128xf32> to vector<2x128xf32>
    %460 = vector.shape_cast %459 : vector<2x128xf32> to vector<1x2x128xf32>
    %cst_404 = arith.constant 9.99999996E-13 : f32
    %461 = vector.broadcast %cst_404 : f32 to vector<1x2x128xf32>
    %462 = arith.addf %460, %461 : vector<1x2x128xf32>
    %463 = math.rsqrt %462 : vector<1x2x128xf32>
    %464 = vector.broadcast %463 : vector<1x2x128xf32> to vector<3x2x128xf32>
    %465 = arith.mulf %457, %464 : vector<3x2x128xf32>
    %c0_405 = arith.constant 0 : index
    %c0_406 = arith.constant 0 : index
    %c0_407 = arith.constant 0 : index
    %c0_408 = arith.constant 0 : index
    %466 = vector.load %arg21[%c0_405, %c0_406, %c0_407, %c0_408] : memref<1x3x2x128xf32, #tpu.memory_space<vmem>>, vector<1x3x2x128xf32>
    %467 = vector.shape_cast %466 : vector<1x3x2x128xf32> to vector<3x2x128xf32>
    %468 = vector.shape_cast %465 : vector<3x2x128xf32> to vector<1x3x2x128xf32>
    tpu.vector_store %arg21[%c0_405, %c0_406, %c0_407, %c0_408], %468 {strides = array<i32>} : memref<1x3x2x128xf32, #tpu.memory_space<vmem>>, vector<1x3x2x128xf32>,
    %469 = arith.mulf %465, %444 : vector<3x2x128xf32>
    %cst_409 = arith.constant dense<0.000000e+00> : vector<2x128xf32>
    %470 = vector.multi_reduction <add>, %469, %cst_409 [0] : vector<3x2x128xf32> to vector<2x128xf32>
    %471 = arith.mulf %470, %449 : vector<2x128xf32>
    %472 = vector.shape_cast %471 : vector<2x128xf32> to vector<1x2x128xf32>
    %cst_410 = arith.constant dense<0.000000e+00> : vector<1xf32>
    %473 = vector.multi_reduction <add>, %472, %cst_410 [1, 2] : vector<1x2x128xf32> to vector<1xf32>
    %474 = vector.shape_cast %473 : vector<1xf32> to vector<1x1x1xf32>
    %475 = vector.extract %474[0, 0, 0] : f32 from vector<1x1x1xf32>
    %476 = vector.broadcast %475 : f32 to vector<1x1x1x1xf32>
    %c0_411 = arith.constant 0 : index
    %c0_412 = arith.constant 0 : index
    %c0_413 = arith.constant 0 : index
    %c9 = arith.constant 9 : index
    %477 = vector.load %arg23[%c0_411, %c0_412, %c0_413, %c9] : memref<1x1x1x18xf32, #tpu.memory_space<vmem>>, vector<1x1x1x1xf32>
    tpu.vector_store %arg23[%c0_411, %c0_412, %c0_413, %c9], %476 {strides = array<i32>} : memref<1x1x1x18xf32, #tpu.memory_space<vmem>>, vector<1x1x1x1xf32>,
    %c0_414 = arith.constant 0 : index
    %c0_415 = arith.constant 0 : index
    %c0_416 = arith.constant 0 : index
    %c0_417 = arith.constant 0 : index
    %478 = vector.load %arg13[%c0_414, %c0_415, %c0_416, %c0_417] : memref<1x3x2x128xf32, #tpu.memory_space<vmem>>, vector<1x3x2x128xf32>
    %479 = vector.shape_cast %478 : vector<1x3x2x128xf32> to vector<3x2x128xf32>
    %480 = arith.mulf %479, %479 : vector<3x2x128xf32>
    %cst_418 = arith.constant dense<0.000000e+00> : vector<2x128xf32>
    %481 = vector.multi_reduction <add>, %480, %cst_418 [0] : vector<3x2x128xf32> to vector<2x128xf32>
    %482 = vector.shape_cast %481 : vector<2x128xf32> to vector<1x2x128xf32>
    %cst_419 = arith.constant 9.99999996E-13 : f32
    %483 = vector.broadcast %cst_419 : f32 to vector<1x2x128xf32>
    %484 = arith.addf %482, %483 : vector<1x2x128xf32>
    %485 = math.rsqrt %484 : vector<1x2x128xf32>
    %486 = vector.broadcast %485 : vector<1x2x128xf32> to vector<3x2x128xf32>
    %487 = arith.mulf %479, %486 : vector<3x2x128xf32>
    %c0_420 = arith.constant 0 : index
    %c0_421 = arith.constant 0 : index
    %c0_422 = arith.constant 0 : index
    %c0_423 = arith.constant 0 : index
    %488 = vector.load %arg22[%c0_420, %c0_421, %c0_422, %c0_423] : memref<1x3x2x128xf32, #tpu.memory_space<vmem>>, vector<1x3x2x128xf32>
    %489 = vector.shape_cast %488 : vector<1x3x2x128xf32> to vector<3x2x128xf32>
    %490 = vector.shape_cast %487 : vector<3x2x128xf32> to vector<1x3x2x128xf32>
    tpu.vector_store %arg22[%c0_420, %c0_421, %c0_422, %c0_423], %490 {strides = array<i32>} : memref<1x3x2x128xf32, #tpu.memory_space<vmem>>, vector<1x3x2x128xf32>,
    %491 = arith.mulf %487, %444 : vector<3x2x128xf32>
    %cst_424 = arith.constant dense<0.000000e+00> : vector<2x128xf32>
    %492 = vector.multi_reduction <add>, %491, %cst_424 [0] : vector<3x2x128xf32> to vector<2x128xf32>
    %493 = arith.mulf %492, %449 : vector<2x128xf32>
    %494 = vector.shape_cast %493 : vector<2x128xf32> to vector<1x2x128xf32>
    %cst_425 = arith.constant dense<0.000000e+00> : vector<1xf32>
    %495 = vector.multi_reduction <add>, %494, %cst_425 [1, 2] : vector<1x2x128xf32> to vector<1xf32>
    %496 = vector.shape_cast %495 : vector<1xf32> to vector<1x1x1xf32>
    %497 = vector.extract %496[0, 0, 0] : f32 from vector<1x1x1xf32>
    %498 = vector.broadcast %497 : f32 to vector<1x1x1x1xf32>
    %c0_426 = arith.constant 0 : index
    %c0_427 = arith.constant 0 : index
    %c0_428 = arith.constant 0 : index
    %c10 = arith.constant 10 : index
    %499 = vector.load %arg23[%c0_426, %c0_427, %c0_428, %c10] : memref<1x1x1x18xf32, #tpu.memory_space<vmem>>, vector<1x1x1x1xf32>
    tpu.vector_store %arg23[%c0_426, %c0_427, %c0_428, %c10], %498 {strides = array<i32>} : memref<1x1x1x18xf32, #tpu.memory_space<vmem>>, vector<1x1x1x1xf32>,
    %c0_429 = arith.constant 0 : index
    %c0_430 = arith.constant 0 : index
    %c0_431 = arith.constant 0 : index
    %500 = vector.load %arg14[%c0_429, %c0_430, %c0_431] : memref<1x2x128xi32, #tpu.memory_space<vmem>>, vector<1x2x128xi32>
    %501 = vector.shape_cast %500 : vector<1x2x128xi32> to vector<2x128xi32>
    %c0_i32_432 = arith.constant 0 : i32
    %502 = vector.broadcast %c0_i32_432 : i32 to vector<2x128xi32>
    %503 = arith.cmpi eq, %501, %502 : vector<2x128xi32>
    %c1_i32_433 = arith.constant 1 : i32
    %504 = vector.broadcast %c1_i32_433 : i32 to vector<2x128xi32>
    %505 = arith.cmpi eq, %501, %504 : vector<2x128xi32>
    %506 = arith.extui %503 : vector<2x128xi1> to vector<2x128xi32>
    %507 = arith.sitofp %506 : vector<2x128xi32> to vector<2x128xf32>
    %508 = vector.shape_cast %507 : vector<2x128xf32> to vector<1x2x128xf32>
    %cst_434 = arith.constant dense<0.000000e+00> : vector<1xf32>
    %509 = vector.multi_reduction <add>, %508, %cst_434 [1, 2] : vector<1x2x128xf32> to vector<1xf32>
    %510 = vector.shape_cast %509 : vector<1xf32> to vector<1x1x1xf32>
    %511 = vector.extract %510[0, 0, 0] : f32 from vector<1x1x1xf32>
    %512 = arith.extui %505 : vector<2x128xi1> to vector<2x128xi32>
    %513 = arith.sitofp %512 : vector<2x128xi32> to vector<2x128xf32>
    %514 = vector.shape_cast %513 : vector<2x128xf32> to vector<1x2x128xf32>
    %cst_435 = arith.constant dense<0.000000e+00> : vector<1xf32>
    %515 = vector.multi_reduction <add>, %514, %cst_435 [1, 2] : vector<1x2x128xf32> to vector<1xf32>
    %516 = vector.shape_cast %515 : vector<1xf32> to vector<1x1x1xf32>
    %517 = vector.extract %516[0, 0, 0] : f32 from vector<1x1x1xf32>
    %518 = vector.broadcast %511 : f32 to vector<1x1x1x1xf32>
    %c0_436 = arith.constant 0 : index
    %c0_437 = arith.constant 0 : index
    %c0_438 = arith.constant 0 : index
    %c16 = arith.constant 16 : index
    %519 = vector.load %arg23[%c0_436, %c0_437, %c0_438, %c16] : memref<1x1x1x18xf32, #tpu.memory_space<vmem>>, vector<1x1x1x1xf32>
    tpu.vector_store %arg23[%c0_436, %c0_437, %c0_438, %c16], %518 {strides = array<i32>} : memref<1x1x1x18xf32, #tpu.memory_space<vmem>>, vector<1x1x1x1xf32>,
    %520 = arith.addf %511, %517 : f32
    %521 = vector.broadcast %520 : f32 to vector<1x1x1x1xf32>
    %c0_439 = arith.constant 0 : index
    %c0_440 = arith.constant 0 : index
    %c0_441 = arith.constant 0 : index
    %c17 = arith.constant 17 : index
    %522 = vector.load %arg23[%c0_439, %c0_440, %c0_441, %c17] : memref<1x1x1x18xf32, #tpu.memory_space<vmem>>, vector<1x1x1x1xf32>
    tpu.vector_store %arg23[%c0_439, %c0_440, %c0_441, %c17], %521 {strides = array<i32>} : memref<1x1x1x18xf32, #tpu.memory_space<vmem>>, vector<1x1x1x1xf32>,
    %c0_442 = arith.constant 0 : index
    %c0_443 = arith.constant 0 : index
    %c0_444 = arith.constant 0 : index
    %c0_445 = arith.constant 0 : index
    %523 = vector.load %arg15[%c0_442, %c0_443, %c0_444, %c0_445] : memref<1x2x2x128xf32, #tpu.memory_space<vmem>>, vector<1x1x2x128xf32>
    %524 = vector.shape_cast %523 : vector<1x1x2x128xf32> to vector<2x128xf32>
    %c0_446 = arith.constant 0 : index
    %c1_447 = arith.constant 1 : index
    %c0_448 = arith.constant 0 : index
    %c0_449 = arith.constant 0 : index
    %525 = vector.load %arg15[%c0_446, %c1_447, %c0_448, %c0_449] : memref<1x2x2x128xf32, #tpu.memory_space<vmem>>, vector<1x1x2x128xf32>
    %526 = vector.shape_cast %525 : vector<1x1x2x128xf32> to vector<2x128xf32>
    %527 = arith.maximumf %524, %526 : vector<2x128xf32>
    %528 = arith.subf %524, %527 : vector<2x128xf32>
    %529 = arith.subf %526, %527 : vector<2x128xf32>
    %530 = math.exp %528 : vector<2x128xf32>
    %531 = math.exp %529 : vector<2x128xf32>
    %532 = arith.addf %530, %531 : vector<2x128xf32>
    %533 = math.log %532 : vector<2x128xf32>
    %534 = arith.subf %533, %528 : vector<2x128xf32>
    %cst_450 = arith.constant 0.000000e+00 : f32
    %535 = vector.broadcast %cst_450 : f32 to vector<2x128xf32>
    %536 = arith.select %503, %534, %535 : vector<2x128xi1>, vector<2x128xf32>
    %537 = vector.shape_cast %536 : vector<2x128xf32> to vector<1x2x128xf32>
    %cst_451 = arith.constant dense<0.000000e+00> : vector<1xf32>
    %538 = vector.multi_reduction <add>, %537, %cst_451 [1, 2] : vector<1x2x128xf32> to vector<1xf32>
    %539 = vector.shape_cast %538 : vector<1xf32> to vector<1x1x1xf32>
    %540 = vector.extract %539[0, 0, 0] : f32 from vector<1x1x1xf32>
    %541 = vector.broadcast %540 : f32 to vector<1x1x1x1xf32>
    %c0_452 = arith.constant 0 : index
    %c0_453 = arith.constant 0 : index
    %c0_454 = arith.constant 0 : index
    %c12 = arith.constant 12 : index
    %542 = vector.load %arg23[%c0_452, %c0_453, %c0_454, %c12] : memref<1x1x1x18xf32, #tpu.memory_space<vmem>>, vector<1x1x1x1xf32>
    tpu.vector_store %arg23[%c0_452, %c0_453, %c0_454, %c12], %541 {strides = array<i32>} : memref<1x1x1x18xf32, #tpu.memory_space<vmem>>, vector<1x1x1x1xf32>,
    %543 = arith.subf %533, %529 : vector<2x128xf32>
    %cst_455 = arith.constant 0.000000e+00 : f32
    %544 = vector.broadcast %cst_455 : f32 to vector<2x128xf32>
    %545 = arith.select %505, %543, %544 : vector<2x128xi1>, vector<2x128xf32>
    %546 = vector.shape_cast %545 : vector<2x128xf32> to vector<1x2x128xf32>
    %cst_456 = arith.constant dense<0.000000e+00> : vector<1xf32>
    %547 = vector.multi_reduction <add>, %546, %cst_456 [1, 2] : vector<1x2x128xf32> to vector<1xf32>
    %548 = vector.shape_cast %547 : vector<1xf32> to vector<1x1x1xf32>
    %549 = vector.extract %548[0, 0, 0] : f32 from vector<1x1x1xf32>
    %550 = vector.broadcast %549 : f32 to vector<1x1x1x1xf32>
    %c0_457 = arith.constant 0 : index
    %c0_458 = arith.constant 0 : index
    %c0_459 = arith.constant 0 : index
    %c14 = arith.constant 14 : index
    %551 = vector.load %arg23[%c0_457, %c0_458, %c0_459, %c14] : memref<1x1x1x18xf32, #tpu.memory_space<vmem>>, vector<1x1x1x1xf32>
    tpu.vector_store %arg23[%c0_457, %c0_458, %c0_459, %c14], %550 {strides = array<i32>} : memref<1x1x1x18xf32, #tpu.memory_space<vmem>>, vector<1x1x1x1xf32>,
    %c0_460 = arith.constant 0 : index
    %c0_461 = arith.constant 0 : index
    %c0_462 = arith.constant 0 : index
    %c0_463 = arith.constant 0 : index
    %552 = vector.load %arg16[%c0_460, %c0_461, %c0_462, %c0_463] : memref<1x2x2x128xf32, #tpu.memory_space<vmem>>, vector<1x1x2x128xf32>
    %553 = vector.shape_cast %552 : vector<1x1x2x128xf32> to vector<2x128xf32>
    %c0_464 = arith.constant 0 : index
    %c1_465 = arith.constant 1 : index
    %c0_466 = arith.constant 0 : index
    %c0_467 = arith.constant 0 : index
    %554 = vector.load %arg16[%c0_464, %c1_465, %c0_466, %c0_467] : memref<1x2x2x128xf32, #tpu.memory_space<vmem>>, vector<1x1x2x128xf32>
    %555 = vector.shape_cast %554 : vector<1x1x2x128xf32> to vector<2x128xf32>
    %556 = arith.maximumf %553, %555 : vector<2x128xf32>
    %557 = arith.subf %553, %556 : vector<2x128xf32>
    %558 = arith.subf %555, %556 : vector<2x128xf32>
    %559 = math.exp %557 : vector<2x128xf32>
    %560 = math.exp %558 : vector<2x128xf32>
    %561 = arith.addf %559, %560 : vector<2x128xf32>
    %562 = math.log %561 : vector<2x128xf32>
    %563 = arith.subf %562, %557 : vector<2x128xf32>
    %cst_468 = arith.constant 0.000000e+00 : f32
    %564 = vector.broadcast %cst_468 : f32 to vector<2x128xf32>
    %565 = arith.select %503, %563, %564 : vector<2x128xi1>, vector<2x128xf32>
    %566 = vector.shape_cast %565 : vector<2x128xf32> to vector<1x2x128xf32>
    %cst_469 = arith.constant dense<0.000000e+00> : vector<1xf32>
    %567 = vector.multi_reduction <add>, %566, %cst_469 [1, 2] : vector<1x2x128xf32> to vector<1xf32>
    %568 = vector.shape_cast %567 : vector<1xf32> to vector<1x1x1xf32>
    %569 = vector.extract %568[0, 0, 0] : f32 from vector<1x1x1xf32>
    %570 = vector.broadcast %569 : f32 to vector<1x1x1x1xf32>
    %c0_470 = arith.constant 0 : index
    %c0_471 = arith.constant 0 : index
    %c0_472 = arith.constant 0 : index
    %c13 = arith.constant 13 : index
    %571 = vector.load %arg23[%c0_470, %c0_471, %c0_472, %c13] : memref<1x1x1x18xf32, #tpu.memory_space<vmem>>, vector<1x1x1x1xf32>
    tpu.vector_store %arg23[%c0_470, %c0_471, %c0_472, %c13], %570 {strides = array<i32>} : memref<1x1x1x18xf32, #tpu.memory_space<vmem>>, vector<1x1x1x1xf32>,
    %572 = arith.subf %562, %558 : vector<2x128xf32>
    %cst_473 = arith.constant 0.000000e+00 : f32
    %573 = vector.broadcast %cst_473 : f32 to vector<2x128xf32>
    %574 = arith.select %505, %572, %573 : vector<2x128xi1>, vector<2x128xf32>
    %575 = vector.shape_cast %574 : vector<2x128xf32> to vector<1x2x128xf32>
    %cst_474 = arith.constant dense<0.000000e+00> : vector<1xf32>
    %576 = vector.multi_reduction <add>, %575, %cst_474 [1, 2] : vector<1x2x128xf32> to vector<1xf32>
    %577 = vector.shape_cast %576 : vector<1xf32> to vector<1x1x1xf32>
    %578 = vector.extract %577[0, 0, 0] : f32 from vector<1x1x1xf32>
    %579 = vector.broadcast %578 : f32 to vector<1x1x1x1xf32>
    %c0_475 = arith.constant 0 : index
    %c0_476 = arith.constant 0 : index
    %c0_477 = arith.constant 0 : index
    %c15 = arith.constant 15 : index
    %580 = vector.load %arg23[%c0_475, %c0_476, %c0_477, %c15] : memref<1x1x1x18xf32, #tpu.memory_space<vmem>>, vector<1x1x1x1xf32>
    tpu.vector_store %arg23[%c0_475, %c0_476, %c0_477, %c15], %579 {strides = array<i32>} : memref<1x1x1x18xf32, #tpu.memory_space<vmem>>, vector<1x1x1x1xf32>,
    return
  }
  func.func @transform_0(%arg0: i32, %arg1: i32) -> (i32, i32, i32) {
    %c0_i32 = arith.constant 0 : i32
    %c0_i32_0 = arith.constant 0 : i32
    return %arg0, %arg1, %c0_i32 : i32, i32, i32
  }
  func.func @transform_1(%arg0: i32, %arg1: i32) -> (i32, i32, i32, i32) {
    %c0_i32 = arith.constant 0 : i32
    %c0_i32_0 = arith.constant 0 : i32
    %c0_i32_1 = arith.constant 0 : i32
    return %arg0, %c0_i32, %arg1, %c0_i32_0 : i32, i32, i32, i32
  }
  func.func @transform_2(%arg0: i32, %arg1: i32) -> (i32, i32, i32, i32) {
    %c0_i32 = arith.constant 0 : i32
    %c0_i32_0 = arith.constant 0 : i32
    %c0_i32_1 = arith.constant 0 : i32
    return %arg0, %c0_i32, %arg1, %c0_i32_0 : i32, i32, i32, i32
  }
  func.func @transform_3(%arg0: i32, %arg1: i32) -> (i32, i32, i32) {
    %c0_i32 = arith.constant 0 : i32
    %c0_i32_0 = arith.constant 0 : i32
    return %arg0, %arg1, %c0_i32 : i32, i32, i32
  }
  func.func @transform_4(%arg0: i32, %arg1: i32) -> (i32, i32, i32, i32) {
    %c0_i32 = arith.constant 0 : i32
    %c0_i32_0 = arith.constant 0 : i32
    %c0_i32_1 = arith.constant 0 : i32
    return %arg0, %c0_i32, %arg1, %c0_i32_0 : i32, i32, i32, i32
  }
  func.func @transform_5(%arg0: i32, %arg1: i32) -> (i32, i32, i32, i32) {
    %c0_i32 = arith.constant 0 : i32
    %c0_i32_0 = arith.constant 0 : i32
    %c0_i32_1 = arith.constant 0 : i32
    return %arg0, %c0_i32, %arg1, %c0_i32_0 : i32, i32, i32, i32
  }
  func.func @transform_6(%arg0: i32, %arg1: i32) -> (i32, i32, i32, i32) {
    %c0_i32 = arith.constant 0 : i32
    %c0_i32_0 = arith.constant 0 : i32
    %c0_i32_1 = arith.constant 0 : i32
    return %arg0, %c0_i32, %arg1, %c0_i32_0 : i32, i32, i32, i32
  }
  func.func @transform_7(%arg0: i32, %arg1: i32) -> (i32, i32, i32, i32) {
    %c0_i32 = arith.constant 0 : i32
    %c0_i32_0 = arith.constant 0 : i32
    %c0_i32_1 = arith.constant 0 : i32
    return %arg0, %c0_i32, %arg1, %c0_i32_0 : i32, i32, i32, i32
  }
  func.func @transform_8(%arg0: i32, %arg1: i32) -> (i32, i32, i32, i32) {
    %c0_i32 = arith.constant 0 : i32
    %c0_i32_0 = arith.constant 0 : i32
    %c0_i32_1 = arith.constant 0 : i32
    return %arg0, %c0_i32, %arg1, %c0_i32_0 : i32, i32, i32, i32
  }
  func.func @transform_9(%arg0: i32, %arg1: i32) -> (i32, i32, i32, i32) {
    %c0_i32 = arith.constant 0 : i32
    %c0_i32_0 = arith.constant 0 : i32
    %c0_i32_1 = arith.constant 0 : i32
    return %arg0, %c0_i32, %arg1, %c0_i32_0 : i32, i32, i32, i32
  }
  func.func @transform_10(%arg0: i32, %arg1: i32) -> (i32, i32, i32, i32) {
    %c0_i32 = arith.constant 0 : i32
    %c0_i32_0 = arith.constant 0 : i32
    %c0_i32_1 = arith.constant 0 : i32
    return %arg0, %c0_i32, %arg1, %c0_i32_0 : i32, i32, i32, i32
  }
  func.func @transform_11(%arg0: i32, %arg1: i32) -> (i32, i32, i32, i32) {
    %c0_i32 = arith.constant 0 : i32
    %c0_i32_0 = arith.constant 0 : i32
    %c0_i32_1 = arith.constant 0 : i32
    return %arg0, %c0_i32, %arg1, %c0_i32_0 : i32, i32, i32, i32
  }
  func.func @transform_12(%arg0: i32, %arg1: i32) -> (i32, i32, i32) {
    %c0_i32 = arith.constant 0 : i32
    %c0_i32_0 = arith.constant 0 : i32
    return %arg0, %arg1, %c0_i32 : i32, i32, i32
  }
  func.func @transform_13(%arg0: i32, %arg1: i32) -> (i32, i32, i32, i32) {
    %c0_i32 = arith.constant 0 : i32
    %c0_i32_0 = arith.constant 0 : i32
    %c0_i32_1 = arith.constant 0 : i32
    return %arg0, %c0_i32, %arg1, %c0_i32_0 : i32, i32, i32, i32
  }
  func.func @transform_14(%arg0: i32, %arg1: i32) -> (i32, i32, i32, i32) {
    %c0_i32 = arith.constant 0 : i32
    %c0_i32_0 = arith.constant 0 : i32
    %c0_i32_1 = arith.constant 0 : i32
    return %arg0, %c0_i32, %arg1, %c0_i32_0 : i32, i32, i32, i32
  }
  func.func @transform_15(%arg0: i32, %arg1: i32) -> (i32, i32, i32, i32) {
    %c0_i32 = arith.constant 0 : i32
    %c0_i32_0 = arith.constant 0 : i32
    %c0_i32_1 = arith.constant 0 : i32
    return %arg0, %c0_i32, %arg1, %c0_i32_0 : i32, i32, i32, i32
  }
  func.func @transform_16(%arg0: i32, %arg1: i32) -> (i32, i32, i32, i32) {
    %c0_i32 = arith.constant 0 : i32
    %c0_i32_0 = arith.constant 0 : i32
    %c0_i32_1 = arith.constant 0 : i32
    return %arg0, %c0_i32, %arg1, %c0_i32_0 : i32, i32, i32, i32
  }
  func.func @transform_17(%arg0: i32, %arg1: i32) -> (i32, i32, i32, i32) {
    %c0_i32 = arith.constant 0 : i32
    %c0_i32_0 = arith.constant 0 : i32
    %c0_i32_1 = arith.constant 0 : i32
    return %arg0, %c0_i32, %arg1, %c0_i32_0 : i32, i32, i32, i32
  }
  func.func @transform_18(%arg0: i32, %arg1: i32) -> (i32, i32, i32, i32) {
    %c0_i32 = arith.constant 0 : i32
    %c0_i32_0 = arith.constant 0 : i32
    %c0_i32_1 = arith.constant 0 : i32
    return %arg0, %c0_i32, %arg1, %c0_i32_0 : i32, i32, i32, i32
  }
  func.func @transform_19(%arg0: i32, %arg1: i32) -> (i32, i32, i32, i32) {
    %c0_i32 = arith.constant 0 : i32
    %c0_i32_0 = arith.constant 0 : i32
    %c0_i32_1 = arith.constant 0 : i32
    return %arg0, %c0_i32, %arg1, %c0_i32_0 : i32, i32, i32, i32
  }
  func.func @transform_20(%arg0: i32, %arg1: i32) -> (i32, i32, i32, i32) {
    %c0_i32 = arith.constant 0 : i32
    %c0_i32_0 = arith.constant 0 : i32
    %c0_i32_1 = arith.constant 0 : i32
    return %arg0, %c0_i32, %arg1, %c0_i32_0 : i32, i32, i32, i32
  }
  func.func @transform_21(%arg0: i32, %arg1: i32) -> (i32, i32, i32, i32) {
    %c0_i32 = arith.constant 0 : i32
    %c0_i32_0 = arith.constant 0 : i32
    %c0_i32_1 = arith.constant 0 : i32
    return %arg0, %arg1, %c0_i32, %c0_i32_0 : i32, i32, i32, i32
  }
}

</mosaic_0001>

<bundles_post_ra>
// kernel: tpu_custom_call.1
= control target key start
LH: loop header
LB: loop body
LE: loop exit
PB: predicated region body
PF: predicated region fallthrough
CT: control target
= control target key end

     0   :  { %s4690_s0 = inlined_call_operand.hbm [shape: s32[2,2,128], index: 0, kind: input, shape index: {}]   ;;  %s4691_s1 = inlined_call_operand.hbm [shape: f32[2,4,2,128], index: 1, kind: input, shape index: {}]   ;;  %s4692_s2 = inlined_call_operand.hbm [shape: f32[2,4,2,128], index: 2, kind: input, shape index: {}]   ;;  %s4693_s3 = inlined_call_operand.hbm [shape: s32[2,2,128], index: 3, kind: input, shape index: {}]   ;;  %s4694_s4 = inlined_call_operand.hbm [shape: f32[2,5,2,128], index: 4, kind: input, shape index: {}]   ;;  %s4695_s5 = inlined_call_operand.hbm [shape: f32[2,5,2,128], index: 5, kind: input, shape index: {}]   ;;  %s4696_s6 = inlined_call_operand.hbm [shape: f32[2,1,2,128], index: 6, kind: input, shape index: {}]   ;;  %s4697_s7 = inlined_call_operand.hbm [shape: f32[2,1,2,128], index: 7, kind: input, shape index: {}]   ;;  %s4698_s8 = inlined_call_operand.hbm [shape: f32[2,1,2,128], index: 8, kind: input, shape index: {}]   ;;  %s4699_s9 = inlined_call_operand.vmem [shape: f32[2,3,2,128], index: 9, kind: input, shape index: {}]   ;;  %s4700_s10 = inlined_call_operand.hbm [shape: f32[2,3,2,128], index: 10, kind: input, shape index: {}]   ;;  %s4701_s11 = inlined_call_operand.hbm [shape: f32[2,3,2,128], index: 11, kind: input, shape index: {}]   ;;  %s4702_s12 = inlined_call_operand.hbm [shape: s32[2,2,128], index: 12, kind: input, shape index: {}]   ;;  %s4703_s13 = inlined_call_operand.vmem [shape: f32[2,2,2,128], index: 13, kind: input, shape index: {}]   ;;  %s4704_s14 = inlined_call_operand.hbm [shape: f32[2,2,2,128], index: 14, kind: input, shape index: {}]   ;;  %s4705_s15 = inlined_call_operand.hbm [shape: f32[2,4,2,128], index: 15, kind: output, shape index: {0}]   ;;  %s4706_s16 = inlined_call_operand.hbm [shape: f32[2,4,2,128], index: 16, kind: output, shape index: {1}]   ;;  %s4707_s17 = inlined_call_operand.hbm [shape: f32[2,5,2,128], index: 17, kind: output, shape index: {2}]   ;;  %s4708_s18 = inlined_call_operand.hbm [shape: f32[2,5,2,128], index: 18, kind: output, shape index: {3}]   ;;  %s4709_s19 = inlined_call_operand.hbm [shape: f32[2,3,2,128], index: 19, kind: output, shape index: {4}]   ;;  %s4710_s20 = inlined_call_operand.hbm [shape: f32[2,3,2,128], index: 20, kind: output, shape index: {5}]   ;;  %s4711_s21 = inlined_call_operand.hbm [shape: f32[2,1,1,18], index: 21, kind: output, shape index: {6}]  }
   0x1   :  { %4747 = sst [smem:[#allocation55_spill]] %s4690_s0 }
   0x2   :  { %4748 = sst [smem:[#allocation56_spill]] %s4691_s1 }
   0x3   :  { %4749 = sst [smem:[#allocation57_spill]] %s4692_s2 }
   0x4   :  { %4750 = sst [smem:[#allocation58_spill]] %s4693_s3 }
   0x5   :  { %4751 = sst [smem:[#allocation59_spill]] %s4694_s4 }
   0x6   :  { %4752 = sst [smem:[#allocation60_spill]] %s4695_s5 }
   0x7   :  { %4753 = sst [smem:[#allocation61_spill]] %s4696_s6 }
   0x8   :  { %4754 = sst [smem:[#allocation62_spill]] %s4697_s7 }
   0x9   :  { %4755 = sst [smem:[#allocation63_spill]] %s4698_s8 }
   0xa   :  { %4756 = sst [smem:[#allocation64_spill]] %s4699_s9 }
   0xb   :  { %4757 = sst [smem:[#allocation65_spill]] %s4700_s10 }
   0xc   :  { %4758 = sst [smem:[#allocation66_spill]] %s4701_s11 }
   0xd   :  { %4759 = sst [smem:[#allocation67_spill]] %s4702_s12 }
   0xe   :  { %4760 = sst [smem:[#allocation68_spill]] %s4703_s13 }
   0xf   :  { %4761 = sst [smem:[#allocation69_spill]] %s4704_s14 }
  0x10   :  { %4762 = sst [smem:[#allocation70_spill]] %s4705_s15 }
  0x11   :  { %4763 = sst [smem:[#allocation71_spill]] %s4706_s16 }
  0x12   :  { %4764 = sst [smem:[#allocation72_spill]] %s4707_s17 }
  0x13   :  { %4765 = sst [smem:[#allocation73_spill]] %s4708_s18 }
  0x14   :  { %4766 = sst [smem:[#allocation74_spill]] %s4709_s19 }
  0x15   :  { %4767 = sst [smem:[#allocation75_spill]] %s4710_s20 }
  0x16   :  { %4768 = sst [smem:[#allocation76_spill]] %s4711_s21 }
  0x17   :  { %27 = vsyncpa [#allocation3], 0 }
  0x18   :  { %29 = vsyncpa [#allocation3 + $0x1], 0 }
  0x19   :  { %30 = vsyncpa [#allocation6], 0 }
  0x1a   :  { %32 = vsyncpa [#allocation6 + $0x1], 0 }
  0x1b   :  { %33 = vsyncpa [#allocation9], 0 }
  0x1c   :  { %35 = vsyncpa [#allocation9 + $0x1], 0 }
  0x1d   :  { %36 = vsyncpa [#allocation12], 0 }
  0x1e   :  { %38 = vsyncpa [#allocation12 + $0x1], 0 }
  0x1f   :  { %39 = vsyncpa [#allocation15], 0 }
  0x20   :  { %41 = vsyncpa [#allocation15 + $0x1], 0 }
  0x21   :  { %42 = vsyncpa [#allocation18], 0 }
  0x22   :  { %44 = vsyncpa [#allocation18 + $0x1], 0 }
  0x23   :  { %45 = vsyncpa [#allocation21], 0 }
  0x24   :  { %47 = vsyncpa [#allocation21 + $0x1], 0 }
  0x25   :  { %48 = vsyncpa [#allocation4], 0 }
  0x26   :  { %50 = vsyncpa [#allocation4 + $0x1], 0 }
  0x27   :  { %51 = vsyncpa [#allocation25], 0 }
  0x28   :  { %53 = vsyncpa [#allocation25 + $0x1], 0 }
  0x29   :  { %54 = vsyncpa [#allocation28], 0 }
  0x2a   :  { %56 = vsyncpa [#allocation28 + $0x1], 0 }
  0x2b   :  { %57 = vsyncpa [#allocation31], 0 }
  0x2c   :  { %59 = vsyncpa [#allocation31 + $0x1], 0  ;;  %s3724_s2 = smov 0   ;;  %s3726_s25 = smov 0  }
  0x2d   :  { %s3728_s26 = smov 0   ;;  %s3730_s27 = smov 0  }
  0x2e   :  { %s3732_s3 = smov 0   ;;  %s3734_s28 = smov 0  }
  0x2f LB: > { %4769 = sst [smem:[#allocation44_spill]] %s3567_s2  ;;  %s3755_s29 = sadd.s32 4294967295, %s3587_s28   ;;  %s3587_s28 = sphi %s3734_s28, %s65_s28   ;;  %s3583_s3 = sphi %s3732_s3, %s4837_s3   ;;  %s3579_s27 = sphi %s3730_s27, %s4836_s27   ;;  %s3575_s26 = sphi %s3728_s26, %s4834_s26   ;;  %s3571_s25 = sphi %s3726_s25, %s4833_s25   ;;  %s3567_s2 = sphi %s3724_s2, %s4832_s2  }
  0x30   : > { %4770 = sst [smem:[#allocation45_spill]] %s3571_s25  ;;  %s4714_s0 = sadd.s32 4294967294, %s3587_s28  }
  0x31   : > { %4771 = sst [smem:[#allocation46_spill]] %s3575_s26  ;;  %s77_s4 = sadd.s32 1, %s3583_s3 }
  0x32   : > { %4772 = sst [smem:[#allocation47_spill]] %s3579_s27  ;;  %s86_s30 = sadd.s32 1, %s3575_s26 }
  0x33   : > { %4773 = sst [smem:[#allocation48_spill]] %s3587_s28  ;;  %p79_p0 = scmp.ge.s32.totalorder %s77_s4, 2 }
  0x34   : > { %4774 = sst [smem:[#allocation49_spill]] %s3755_s29  ;;  %p93_p1 = scmp.ne.s32.totalorder %s3575_s26, %s3571_s25 }
  0x35   : > { %p94_p2 = scmp.eq.s32.totalorder %s3587_s28, 0  ;;  %p99_p3 = scmp.ne.s32.totalorder %s3571_s25, %s3567_s2 }
  0x36   : > { %s4839_s4 = smov (%p79_p0, %s77_s4), 0  ;;  %p100_p5 = scmp.eq.s32.totalorder %s3755_s29, 0 }
  0x37   : > { %4775 = sst [smem:[#allocation50_spill]] %s4839_s4  ;;  %p3767_p4 = por %p94_p2, %p93_p1 }
  0x38   : > { %s81_s22 = ssub.s32 %s3583_s3, %s4839_s4  ;;  %p517_p6 = scmp.eq.s32.totalorder %s3755_s29, 1 }
  0x39   : > { %p84_p7 = scmp.eq.s32.totalorder %s81_s22, 0  ;;  %p3775_p8 = por %p100_p5, %p99_p3 }
  0x3a   : > { %p3779_p9 = por %p517_p6, %p93_p1  ;;  %p523_p10 = scmp.eq.s32.totalorder %s4714_s0, 1 }
  0x3b   : > { %s4777_s23 = scalar_select %p3775_p8, 1, 0 }
  0x3c   : > { %s4779_s1 = scalar_select %p3779_p9, 1, 0 }
  0x3d   : > { %4778 = sst [smem:[#allocation51_spill]] %s4777_s23  ;;  %p3788_p11 = por %p523_p10, %p99_p3 }
  0x3e   : > { %4780 = sst [smem:[#allocation52_spill]] %s4779_s1  ;;  %p2640_p12 = scmp.ge.s32.totalorder %s3587_s28, 2 }
  0x3f   : > { %s3786_s24 = scalar_select %p84_p7, %s3575_s26, %s86_s30  }
  0x40   : > { %s4782_s2 = scalar_select %p3788_p11, 1, 0 }
  0x41   : > { %4781 = sst [smem:[#allocation53_spill]] %s3786_s24  ;;  %707 = sbr.rel (%p2640_p12) target bundleno = 255 (0xff), region = 16 }
  0x42   : > { %4783 = sst [smem:[#allocation54_spill]] %s4782_s2  ;;  %s3796_s22 = sand.u32 (!%p2640_p12), 1, %s3575_s26  }
  0x43   : > { %s3799_s4 = sand.u32 (!%p2640_p12), 1, %s3587_s28   ;;  %s2643_s30 = sshll.u32 (!%p2640_p12), %s3796_s22, 3 }
  0x44   : > { %s2744_s0 = sshll.u32 (!%p2640_p12), %s3583_s3, 7  ;;  %s4784_s2 = sld [smem:[#allocation56_spill]] (!%p2640_p12) }
  0x45   : > { %s734_s19 = scalar_lea.vmem (!%p2640_p12), [#allocation5], %s2643_s30  ;;  %s4731_s17 = scalar_lea.sflag (!%p2640_p12), [#allocation6], %s3799_s4 }
  0x46   : > { %s742_s20 = sshll.u32 %s734_s19, 4  ;;  %s3589_s26 = smov [#allocation5]   ;;  %s743_s20 = int_to_ptr.vmem [resolvable:$true] %s742_s20 }
  0x47   : > { %s2989_s18 = scalar_lea.vmem %s743_s20, 128  ;;  %s2993_s16 = sshll.u32 %s3589_s26, 4  ;;  %s2994_s16 = int_to_ptr.vmem [resolvable:$false] %s2993_s16 }
  0x48   : > { %p2990_p13 = scmp.ne.s32.totalorder %s743_s20, %s2989_s18  ;;  %s2995_s1 = scalar_lea.vmem %s2994_s16, 256 }
  0x49   : > { %p2996_p2 = scmp.lt.s32.totalorder %s743_s20, %s2994_s16  ;;  %p2997_p3 = scmp.lt.s32.totalorder %s2995_s1, %s2989_s18 }
  0x4a   : > { %s741_s15 = scalar_lea.hbm %s4784_s2, %s2744_s0  ;;  %p2991_p0 = pnand %p2990_p13, %p3767_p4 }
  0x4b   : > { %p2998_p5 = por %p2997_p3, %p2996_p2 }
  0x4c   : > { %p2992_p1 = pneg %p2991_p0 }
  0x4e   : > { %p2999_p6 = pnand %p2998_p5, %p2992_p1 }
  0x50   : > { %3002 = shalt.err (!%p2999_p6)
}
  0x51   : > { %s4732_s21 = smov 32   ;;  %s4734_s19 = smov 2  }
  0x52   : > { %2802 = dma.hbm_to_vmem [thread:$0]  (%p3767_p4), %s741_s15, 128, %s743_s20, %s4731_s17, %s4732_s21, %s4732_s21, %s4734_s19  }
  0x53   : > { %s4785_s2 = sld [smem:[#allocation57_spill]]  ;;  %s3821_s1 = scalar_lea.vmem [#allocation7], %s2643_s30 }
  0x54   : > { %s3825_s13 = sshll.u32 %s3796_s22, 1  ;;  %s3828_s9 = sshll.u32 %s3583_s3, 5 }
  0x55   : > { %s4786_s23 = sld [smem:[#allocation58_spill]]  ;;  %s778_s15 = scalar_lea.vmem [#allocation8], %s3825_s13 }
  0x56   : > { %s786_s20 = sshll.u32 %s778_s15, 4  ;;  %s4737_s16 = smul.u32 10, %s3796_s22  ;;  %s787_s20 = int_to_ptr.vmem [resolvable:$true] %s786_s20 }
  0x57   : > { %s3015_s18 = scalar_lea.vmem %s787_s20, 32  ;;  %s3592_s30 = smov [#allocation8]  }
  0x58   : > { %p3016_p7 = scmp.ne.s32.totalorder %s787_s20, %s3015_s18 }
  0x59   : > { %s3819_s26 = scalar_lea.hbm %s4785_s2, %s2744_s0  ;;  %s4736_s0 = scalar_lea.sflag [#allocation9], %s3799_s4 }
  0x5a   : > { %p3017_p10 = pnand %p3016_p7, %p3767_p4  ;;  %s3019_s2 = sshll.u32 %s3592_s30, 4  ;;  %s3020_s2 = int_to_ptr.vmem [resolvable:$false] %s3019_s2 }
  0x5b   : > { %s784_s25 = scalar_lea.hbm %s4786_s23, %s3828_s9  ;;  %s3021_s17 = scalar_lea.vmem %s3020_s2, 64 }
  0x5c   : > { %p3018_p13 = pneg %p3017_p10  ;;  %p3022_p0 = scmp.lt.s32.totalorder %s787_s20, %s3020_s2 }
  0x5d   : > { %p3023_p1 = scmp.lt.s32.totalorder %s3021_s17, %s3015_s18 }
  0x5f   : > { %p3024_p2 = por %p3023_p1, %p3022_p0 }
  0x61   : > { %p3025_p3 = pnand %p3024_p2, %p3018_p13 }
  0x63   : > { %3028 = shalt.err (!%p3025_p3)
}
  0x64   : > { %2804 = dma.hbm_to_vmem [thread:$0]  (%p3767_p4), %s784_s25, 32, %s787_s20, %s4736_s0  }
  0x65   : > { %s4738_s27 = smul.u32 160, %s3583_s3  ;;  %s4787_s15 = sld [smem:[#allocation60_spill]] }
  0x66   : > { %s819_s17 = scalar_lea.vmem [#allocation11], %s4737_s16  ;;  %s4739_s2 = scalar_lea.sflag [#allocation12], %s3799_s4 }
  0x67   : > { %s827_s18 = sshll.u32 %s819_s17, 4  ;;  %s3593_s21 = smov [#allocation11]   ;;  %s828_s18 = int_to_ptr.vmem [resolvable:$true] %s827_s18 }
  0x68   : > { %s3041_s24 = scalar_lea.vmem %s828_s18, 160  ;;  %s3045_s19 = sshll.u32 %s3593_s21, 4  ;;  %s3046_s19 = int_to_ptr.vmem [resolvable:$false] %s3045_s19 }
  0x69   : > { %p3042_p5 = scmp.ne.s32.totalorder %s828_s18, %s3041_s24  ;;  %s3047_s25 = scalar_lea.vmem %s3046_s19, 320 }
  0x6a   : > { %p3048_p10 = scmp.lt.s32.totalorder %s828_s18, %s3046_s19  ;;  %p3049_p13 = scmp.lt.s32.totalorder %s3047_s25, %s3041_s24 }
  0x6b   : > { %s826_s30 = scalar_lea.hbm %s4787_s15, %s4738_s27  ;;  %p3043_p6 = pnand %p3042_p5, %p3767_p4 }
  0x6c   : > { %p3050_p0 = por %p3049_p13, %p3048_p10 }
  0x6d   : > { %p3044_p7 = pneg %p3043_p6 }
  0x6f   : > { %p3051_p1 = pnand %p3050_p0, %p3044_p7 }
  0x71   : > { %3054 = shalt.err (!%p3051_p1)
}
  0x72   : > { %s4788_s20 = smov 2   ;;  %s4789_s29 = smov 32  }
  0x73   : > { %2806 = dma.hbm_to_vmem [thread:$0]  (%p3767_p4), %s826_s30, 160, %s828_s18, %s4739_s2, %s4789_s29, %s4789_s29, %s4788_s20  }
  0x74   : > { %s4790_s7 = sld [smem:[#allocation62_spill]]  ;;  %s860_s24 = scalar_lea.vmem [#allocation14], %s3825_s13 }
  0x75   : > { %s868_s15 = sshll.u32 %s860_s24, 4  ;;  %s857_s17 = scalar_lea.sflag [#allocation15], %s3799_s4  ;;  %s869_s15 = int_to_ptr.vmem [resolvable:$true] %s868_s15 }
  0x76   : > { %s3067_s25 = scalar_lea.vmem %s869_s15, 32  ;;  %s3594_s0 = smov [#allocation14]  }
  0x77   : > { %p3068_p2 = scmp.ne.s32.totalorder %s869_s15, %s3067_s25  ;;  %s3071_s16 = sshll.u32 %s3594_s0, 4  ;;  %s3072_s16 = int_to_ptr.vmem [resolvable:$false] %s3071_s16 }
  0x78   : > { %s3073_s27 = scalar_lea.vmem %s3072_s16, 64  ;;  %p3074_p6 = scmp.lt.s32.totalorder %s869_s15, %s3072_s16 }
  0x79   : > { %p3069_p3 = pnand %p3068_p2, %p3767_p4  ;;  %p3075_p7 = scmp.lt.s32.totalorder %s3073_s27, %s3067_s25 }
  0x7a   : > { %s866_s19 = scalar_lea.hbm %s4790_s7, %s3828_s9 }
  0x7b   : > { %p3070_p5 = pneg %p3069_p3  ;;  %p3076_p10 = por %p3075_p7, %p3074_p6 }
  0x7d   : > { %p3077_p13 = pnand %p3076_p10, %p3070_p5 }
  0x7f   : > { %3080 = shalt.err (!%p3077_p13)
}
  0x80   : > { %2808 = dma.hbm_to_vmem [thread:$0]  (%p3767_p4), %s866_s19, 32, %s869_s15, %s857_s17  }
  0x81   : > { %s2754_s0 = smul.u32 6, %s3796_s22  ;;  %s4791_s12 = sld [smem:[#allocation67_spill]] }
  0x82   : > { %s2755_s30 = smul.u32 96, %s3583_s3  ;;  %s4792_s10 = sld [smem:[#allocation65_spill]] }
  0x83   : > { %s909_s25 = scalar_lea.vmem [#allocation17], %s2754_s0  ;;  %s953_s7 = scalar_lea.vmem [#allocation20], %s3825_s13 }
  0x84   : > { %s917_s2 = sshll.u32 %s909_s25, 4  ;;  %s961_s28 = sshll.u32 %s953_s7, 4  ;;  %s918_s2 = int_to_ptr.vmem [resolvable:$true] %s917_s2  ;;  %s962_s28 = int_to_ptr.vmem [resolvable:$true] %s961_s28 }
  0x85   : > { %s4743_s14 = scalar_lea.sflag [#allocation18], %s3799_s4  ;;  %s3093_s11 = scalar_lea.vmem %s918_s2, 96 }
  0x86   : > { %p3094_p0 = scmp.ne.s32.totalorder %s918_s2, %s3093_s11  ;;  %s3595_s19 = smov [#allocation17]  }
  0x87   : > { %s959_s18 = scalar_lea.hbm %s4791_s12, %s3828_s9  ;;  %s3097_s15 = sshll.u32 %s3595_s19, 4  ;;  %s3098_s15 = int_to_ptr.vmem [resolvable:$false] %s3097_s15 }
  0x88   : > { %s916_s24 = scalar_lea.hbm %s4792_s10, %s2755_s30  ;;  %p3095_p1 = pnand %p3094_p0, %p3767_p4 }
  0x89   : > { %s3099_s16 = scalar_lea.vmem %s3098_s15, 192  ;;  %p3100_p3 = scmp.lt.s32.totalorder %s918_s2, %s3098_s15 }
  0x8a   : > { %p3096_p2 = pneg %p3095_p1  ;;  %p3101_p5 = scmp.lt.s32.totalorder %s3099_s16, %s3093_s11 }
  0x8c   : > { %p3102_p6 = por %p3101_p5, %p3100_p3 }
  0x8e   : > { %p3103_p7 = pnand %p3102_p6, %p3096_p2 }
  0x90   : > { %3106 = shalt.err (!%p3103_p7)
}
  0x91   : > { %2810 = dma.hbm_to_vmem [thread:$0]  (%p3767_p4), %s916_s24, 96, %s918_s2, %s4743_s14, %s4789_s29, %s4789_s29, %s4788_s20  }
  0x92   : > { %s950_s7 = scalar_lea.sflag [#allocation21], %s3799_s4  ;;  %s3119_s27 = scalar_lea.vmem %s962_s28, 32 }
  0x93   : > { %p3120_p10 = scmp.ne.s32.totalorder %s962_s28, %s3119_s27  ;;  %s3596_s11 = smov [#allocation20]  }
  0x94   : > { %s3123_s21 = sshll.u32 %s3596_s11, 4  ;;  %s3124_s21 = int_to_ptr.vmem [resolvable:$false] %s3123_s21 }
  0x95   : > { %p3121_p13 = pnand %p3120_p10, %p3767_p4  ;;  %s3125_s23 = scalar_lea.vmem %s3124_s21, 64 }
  0x96   : > { %p3126_p1 = scmp.lt.s32.totalorder %s962_s28, %s3124_s21  ;;  %p3127_p2 = scmp.lt.s32.totalorder %s3125_s23, %s3119_s27 }
  0x97   : > { %p3122_p0 = pneg %p3121_p13 }
  0x98   : > { %p3128_p3 = por %p3127_p2, %p3126_p1 }
  0x9a   : > { %p3129_p5 = pnand %p3128_p3, %p3122_p0 }
  0x9c   : > { %3132 = shalt.err (!%p3129_p5)
}
  0x9d   : > { %2812 = dma.hbm_to_vmem [thread:$0]  (%p3767_p4), %s959_s18, 32, %s962_s28, %s950_s7  }
  0x9e   : > { %s4793_s15 = sld [smem:[#allocation55_spill]]  ;;  %s715_s27 = scalar_lea.vmem [#allocation2], %s3825_s13 }
  0x9f   : > { %s723_s11 = sshll.u32 %s715_s27, 4  ;;  %s4794_s21 = sshll.u32 %s3821_s1, 4  ;;  %s3916_s21 = int_to_ptr.vmem [resolvable:$true] %s4794_s21  ;;  %s724_s11 = int_to_ptr.vmem [resolvable:$true] %s723_s11 }
  0xa0   : > { %s712_s23 = scalar_lea.sflag [#allocation3], %s3796_s22  ;;  %s3145_s2 = scalar_lea.vmem %s724_s11, 32 }
  0xa1   : > { %p3146_p6 = scmp.ne.s32.totalorder %s724_s11, %s3145_s2  ;;  %s3597_s24 = smov [#allocation2]  }
  0xa2   : > { %s3149_s14 = sshll.u32 %s3597_s24, 4  ;;  %s3150_s14 = int_to_ptr.vmem [resolvable:$false] %s3149_s14 }
  0xa3   : > { %p3147_p7 = pnand %p3146_p6, %p3767_p4  ;;  %s3151_s28 = scalar_lea.vmem %s3150_s14, 64 }
  0xa4   : > { %s721_s16 = scalar_lea.hbm %s4793_s15, %s3828_s9  ;;  %p3152_p13 = scmp.lt.s32.totalorder %s724_s11, %s3150_s14 }
  0xa5   : > { %p3148_p10 = pneg %p3147_p7  ;;  %p3153_p0 = scmp.lt.s32.totalorder %s3151_s28, %s3145_s2 }
  0xa7   : > { %p3154_p1 = por %p3153_p0, %p3152_p13 }
  0xa9   : > { %p3155_p2 = pnand %p3154_p1, %p3148_p10 }
  0xab   : > { %3158 = shalt.err (!%p3155_p2)
}
  0xac   : > { %2801 = dma.hbm_to_vmem [thread:$0]  (%p3767_p4), %s721_s16, 32, %s724_s11, %s712_s23  }
  0xad   : > { %s3171_s1 = scalar_lea.vmem %s3916_s21, 128  ;;  %s3598_s18 = smov [#allocation7]  }
  0xae   : > { %p3172_p3 = scmp.ne.s32.totalorder %s3916_s21, %s3171_s1  ;;  %s3175_s25 = sshll.u32 %s3598_s18, 4  ;;  %s3176_s25 = int_to_ptr.vmem [resolvable:$false] %s3175_s25 }
  0xaf   : > { %s3177_s14 = scalar_lea.vmem %s3176_s25, 256  ;;  %p3178_p7 = scmp.lt.s32.totalorder %s3916_s21, %s3176_s25 }
  0xb0   : > { %p3173_p5 = pnand %p3172_p3, %p3767_p4  ;;  %p3179_p13 = scmp.lt.s32.totalorder %s3177_s14, %s3171_s1 }
  0xb2   : > { %p3174_p6 = pneg %p3173_p5  ;;  %p3180_p10 = por %p3179_p13, %p3178_p7 }
  0xb4   : > { %p3181_p0 = pnand %p3180_p10, %p3174_p6 }
  0xb6   : > { %3184 = shalt.err (!%p3181_p0)
}
  0xb7   : > { %s4795_s19 = scalar_lea.sflag [#allocation6], %s3799_s4  ;;  %s4796_s15 = smul.u32 160, %s3583_s3 }
  0xb8   : > { %2803 = dma.hbm_to_vmem [thread:$0]  (%p3767_p4), %s3819_s26, 128, %s3916_s21, %s4795_s19, %s4789_s29, %s4789_s29, %s4788_s20  }
  0xb9   : > { %s4797_s11 = sld [smem:[#allocation59_spill]]  ;;  %s4798_s2 = smul.u32 10, %s3796_s22 }
  0xba   : > { %s3599_s18 = smov [#allocation10]  }
  0xbb   : > { %s797_s24 = scalar_lea.vmem [#allocation10], %s4798_s2  ;;  %s3201_s25 = sshll.u32 %s3599_s18, 4  ;;  %s3202_s25 = int_to_ptr.vmem [resolvable:$false] %s3201_s25 }
  0xbc   : > { %s805_s28 = sshll.u32 %s797_s24, 4  ;;  %s3203_s14 = scalar_lea.vmem %s3202_s25, 320  ;;  %s806_s28 = int_to_ptr.vmem [resolvable:$true] %s805_s28 }
  0xbd   : > { %s3197_s1 = scalar_lea.vmem %s806_s28, 160  ;;  %p3204_p5 = scmp.lt.s32.totalorder %s806_s28, %s3202_s25 }
  0xbe   : > { %p3198_p1 = scmp.ne.s32.totalorder %s806_s28, %s3197_s1  ;;  %p3205_p6 = scmp.lt.s32.totalorder %s3203_s14, %s3197_s1 }
  0xbf   : > { %s804_s23 = scalar_lea.hbm %s4797_s11, %s4796_s15 }
  0xc0   : > { %p3199_p2 = pnand %p3198_p1, %p3767_p4  ;;  %p3206_p7 = por %p3205_p6, %p3204_p5 }
  0xc2   : > { %p3200_p3 = pneg %p3199_p2 }
  0xc4   : > { %p3207_p13 = pnand %p3206_p7, %p3200_p3 }
  0xc6   : > { %3210 = shalt.err (!%p3207_p13)
}
  0xc7   : > { %s4799_s26 = scalar_lea.sflag [#allocation9], %s3799_s4  ;;  %s4800_s6 = sld [smem:[#allocation61_spill]] }
  0xc8   : > { %2805 = dma.hbm_to_vmem [thread:$0]  (%p3767_p4), %s804_s23, 160, %s806_s28, %s4799_s26, %s4789_s29, %s4789_s29, %s4788_s20  }
  0xc9   : > { %s841_s16 = scalar_lea.vmem [#allocation13], %s3825_s13  ;;  %s3600_s2 = smov [#allocation13]  }
  0xca   : > { %s849_s27 = sshll.u32 %s841_s16, 4  ;;  %s3227_s24 = sshll.u32 %s3600_s2, 4  ;;  %s850_s27 = int_to_ptr.vmem [resolvable:$true] %s849_s27  ;;  %s3228_s24 = int_to_ptr.vmem [resolvable:$false] %s3227_s24 }
  0xcb   : > { %s3223_s11 = scalar_lea.vmem %s850_s27, 32  ;;  %s3229_s1 = scalar_lea.vmem %s3228_s24, 64 }
  0xcc   : > { %p3224_p10 = scmp.ne.s32.totalorder %s850_s27, %s3223_s11  ;;  %p3230_p2 = scmp.lt.s32.totalorder %s850_s27, %s3228_s24 }
  0xcd   : > { %s847_s15 = scalar_lea.hbm %s4800_s6, %s3828_s9  ;;  %p3231_p3 = scmp.lt.s32.totalorder %s3229_s1, %s3223_s11 }
  0xce   : > { %p3225_p0 = pnand %p3224_p10, %p3767_p4 }
  0xcf   : > { %p3232_p5 = por %p3231_p3, %p3230_p2 }
  0xd0   : > { %p3226_p1 = pneg %p3225_p0 }
  0xd2   : > { %p3233_p6 = pnand %p3232_p5, %p3226_p1 }
  0xd4   : > { %3236 = shalt.err (!%p3233_p6)
}
  0xd5   : > { %s4801_s23 = scalar_lea.sflag [#allocation12], %s3799_s4  ;;  %s4802_s8 = sld [smem:[#allocation63_spill]] }
  0xd6   : > { %2807 = dma.hbm_to_vmem [thread:$0]  (%p3767_p4), %s847_s15, 32, %s850_s27, %s4801_s23  }
  0xd7   : > { %s879_s14 = scalar_lea.vmem [#allocation16], %s3825_s13  ;;  %s3601_s19 = smov [#allocation16]  }
  0xd8   : > { %s887_s26 = sshll.u32 %s879_s14, 4  ;;  %s3253_s16 = sshll.u32 %s3601_s19, 4  ;;  %s888_s26 = int_to_ptr.vmem [resolvable:$true] %s887_s26  ;;  %s3254_s16 = int_to_ptr.vmem [resolvable:$false] %s3253_s16 }
  0xd9   : > { %s3249_s21 = scalar_lea.vmem %s888_s26, 32  ;;  %s3255_s11 = scalar_lea.vmem %s3254_s16, 64 }
  0xda   : > { %p3250_p7 = scmp.ne.s32.totalorder %s888_s26, %s3249_s21  ;;  %p3256_p0 = scmp.lt.s32.totalorder %s888_s26, %s3254_s16 }
  0xdb   : > { %s885_s25 = scalar_lea.hbm %s4802_s8, %s3828_s9  ;;  %p3257_p1 = scmp.lt.s32.totalorder %s3255_s11, %s3249_s21 }
  0xdc   : > { %p3251_p13 = pnand %p3250_p7, %p3767_p4 }
  0xdd   : > { %p3258_p2 = por %p3257_p1, %p3256_p0 }
  0xde   : > { %p3252_p10 = pneg %p3251_p13 }
  0xe0   : > { %p3259_p3 = pnand %p3258_p2, %p3252_p10 }
  0xe2   : > { %3262 = shalt.err (!%p3259_p3)
}
  0xe3   : > { %2809 = dma.hbm_to_vmem [thread:$0]  (%p3767_p4), %s885_s25, 32, %s888_s26, %s857_s17  }
  0xe4   : > { %s4803_s15 = sld [smem:[#allocation66_spill]]  ;;  %s931_s2 = scalar_lea.vmem [#allocation19], %s2754_s0 }
  0xe5   : > { %s939_s24 = sshll.u32 %s931_s2, 4  ;;  %s2663_s1 = sshll.u32 %s3796_s22, 2  ;;  %s940_s24 = int_to_ptr.vmem [resolvable:$true] %s939_s24 }
  0xe6   : > { %s3275_s23 = scalar_lea.vmem %s940_s24, 96  ;;  %s3602_s28 = smov [#allocation19]  }
  0xe7   : > { %p3276_p5 = scmp.ne.s32.totalorder %s940_s24, %s3275_s23  ;;  %s3279_s18 = sshll.u32 %s3602_s28, 4  ;;  %s3280_s18 = int_to_ptr.vmem [resolvable:$false] %s3279_s18 }
  0xe8   : > { %s3281_s14 = scalar_lea.vmem %s3280_s18, 192  ;;  %p3282_p13 = scmp.lt.s32.totalorder %s940_s24, %s3280_s18 }
  0xe9   : > { %p3277_p6 = pnand %p3276_p5, %p3767_p4  ;;  %p3283_p10 = scmp.lt.s32.totalorder %s3281_s14, %s3275_s23 }
  0xea   : > { %s938_s27 = scalar_lea.hbm %s4803_s15, %s2755_s30 }
  0xeb   : > { %p3278_p7 = pneg %p3277_p6  ;;  %p3284_p0 = por %p3283_p10, %p3282_p13 }
  0xed   : > { %p3285_p1 = pnand %p3284_p0, %p3278_p7 }
  0xef   : > { %3288 = shalt.err (!%p3285_p1)
}
  0xf0   : > { %s4804_s22 = scalar_lea.sflag [#allocation18], %s3799_s4  ;;  %s2746_s17 = sshll.u32 %s3583_s3, 6 }
  0xf1   : > { %2811 = dma.hbm_to_vmem [thread:$0]  (%p3767_p4), %s938_s27, 96, %s940_s24, %s4804_s22, %s4789_s29, %s4789_s29, %s4788_s20  }
  0xf2   : > { %s4805_s25 = sld [smem:[#allocation69_spill]]  ;;  %s983_s21 = scalar_lea.vmem [#allocation22], %s2663_s1 }
  0xf3   : > { %s991_s19 = sshll.u32 %s983_s21, 4  ;;  %s3603_s11 = smov [#allocation22]   ;;  %s992_s19 = int_to_ptr.vmem [resolvable:$true] %s991_s19 }
  0xf4   : > { %s3301_s16 = scalar_lea.vmem %s992_s19, 64  ;;  %s3305_s9 = sshll.u32 %s3603_s11, 4  ;;  %s3306_s9 = int_to_ptr.vmem [resolvable:$false] %s3305_s9 }
  0xf5   : > { %p3302_p2 = scmp.ne.s32.totalorder %s992_s19, %s3301_s16  ;;  %s3307_s13 = scalar_lea.vmem %s3306_s9, 128 }
  0xf6   : > { %p3308_p6 = scmp.lt.s32.totalorder %s992_s19, %s3306_s9  ;;  %p3309_p7 = scmp.lt.s32.totalorder %s3307_s13, %s3301_s16 }
  0xf7   : > { %p3303_p3 = pnand %p3302_p2, %p3767_p4 }
  0xf8   : > { %s990_s26 = scalar_lea.hbm %s4805_s25, %s2746_s17  ;;  %p3310_p13 = por %p3309_p7, %p3308_p6 }
  0xf9   : > { %p3304_p5 = pneg %p3303_p3 }
  0xfb   : > { %p3311_p10 = pnand %p3310_p13, %p3304_p5 }
  0xfd   : > { %3314 = shalt.err (!%p3311_p10)
}
  0xfe   : > { %2813 = dma.hbm_to_vmem [thread:$0]  (%p3767_p4), %s990_s26, 64, %s992_s19, %s950_s7, %s4789_s29, %s4789_s29, %s4788_s20  }
  0xff PF: > { %s4806_s15 = sld [smem:[#allocation48_spill]] }
 0x105   : > { %p2666_p0 = scmp.ge.s32.totalorder %s4806_s15, 1  ;;  %p999_p1 = scmp.lt.s32.totalorder %s4806_s15, 3 }
 0x107   : > { %p1000_p2 = pnand %p2666_p0, %p999_p1 }
 0x108   : > { %s4807_s27 = sld [smem:[#allocation45_spill]] (!%p1000_p2) }
 0x109   : > { %1003 = sbr.rel (%p1000_p2) target bundleno = 694 (0x2b6), region = 80 }
 0x10e   : > { %s4008_s24 = sand.u32 1, %s4807_s27  }
 0x10f   : > { %s4011_s5 = sshll.u32 %s4008_s24, 1  ;;  %s1006_s1 = scalar_lea.sflag [#allocation3], %s4008_s24 }
 0x110   : > { %s1009_s23 = scalar_lea.vmem [#allocation2], %s4011_s5 }
 0x111   : > { %3522 = dma.done.wait (%p3775_p8), %s1006_s1, 32  }
 0x112   : > { %3524 = vsyncadd (%p3775_p8), %s1006_s1, 4294967264  ;;  %s4809_s4 = sld [smem:[#allocation49_spill]]  ;;  %s4023_s29 = sshll.u32 %s4008_s24, 3 }
 0x113   : > { %s4027_s28 = scalar_lea.vmem [#allocation5], %s4023_s29 }
 0x118   : > { %s4020_s20 = sand.u32 1, %s4809_s4  }
 0x119   : > { %s1015_s7 = scalar_lea.sflag [#allocation6], %s4020_s20 }
 0x11a   : > { %3526 = dma.done.wait (%p3775_p8), %s1015_s7, 256  }
 0x11b   : > { %3528 = vsyncadd (%p3775_p8), %s1015_s7, 4294967040  ;;  %s4034_s18 = scalar_lea.vmem [#allocation7], %s4023_s29  ;;  %s1033_s14 = scalar_lea.sflag [#allocation9], %s4020_s20 }
 0x11c   : > { %s1036_s22 = scalar_lea.vmem [#allocation8], %s4011_s5 }
 0x11d   : > { %3530 = dma.done.wait (%p3775_p8), %s1033_s14, 192  }
 0x11e   : > { %3532 = vsyncadd (%p3775_p8), %s1033_s14, 4294967104  ;;  %s4043_s17 = smul.u32 10, %s4008_s24  ;;  %s1051_s30 = scalar_lea.sflag [#allocation12], %s4020_s20 }
 0x120   : > { %s4046_s0 = scalar_lea.vmem [#allocation10], %s4043_s17  ;;  %s4050_s25 = scalar_lea.vmem [#allocation11], %s4043_s17 }
 0x121   : > { %3534 = dma.done.wait (%p3775_p8), %s1051_s30, 192  }
 0x122   : > { %3536 = vsyncadd (%p3775_p8), %s1051_s30, 4294967104  ;;  %s1063_s26 = scalar_lea.vmem [#allocation13], %s4011_s5  ;;  %s1069_s21 = scalar_lea.sflag [#allocation15], %s4020_s20 }
 0x123   : > { %s1072_s19 = scalar_lea.vmem [#allocation14], %s4011_s5 }
 0x124   : > { %3538 = dma.done.wait (%p3775_p8), %s1069_s21, 64  }
 0x125   : > { %3540 = vsyncadd (%p3775_p8), %s1069_s21, 4294967232  ;;  %s4064_s16 = smul.u32 6, %s4008_s24  ;;  %s1081_s11 = scalar_lea.vmem [#allocation16], %s4011_s5 }
 0x126   : > { %s1087_s9 = scalar_lea.sflag [#allocation18], %s4020_s20 }
 0x127   : > { %s4069_s13 = scalar_lea.vmem [#allocation17], %s4064_s16 }
 0x128   : > { %3542 = dma.done.wait (%p3775_p8), %s1087_s9, 192  }
 0x129   : > { %3544 = vsyncadd (%p3775_p8), %s1087_s9, 4294967104  ;;  %s4076_s15 = scalar_lea.vmem [#allocation19], %s4064_s16  ;;  %s1105_s27 = scalar_lea.sflag [#allocation21], %s4020_s20 }
 0x12a   : > { %3546 = dma.done.wait (%p3775_p8), %s1105_s27, 96  }
 0x12b   : > { %3548 = vsyncadd (%p3775_p8), %s1105_s27, 4294967200  ;;  %s4810_s4 = sld [smem:[#allocation47_spill]]  ;;  %v4091_v0 = vld [vmem:[%s1009_s23] sm:$0x3]  ;;  %v4093_v1 = vld [vmem:[%s1036_s22] sm:$0x3] }
 0x12c   : > { %v1627_v2 = vld [vmem:[%s1063_s26] sm:$0x3]  ;;  %s4811_s9 = sld [smem:[#allocation64_spill]]  ;;  %vm1298_vm0 = vcmp.ne.s32.totalorder %v4091_v0, 4294967295  ;;  %vm1301_vm1 = vcmask 1041408   ;;  %vm1450_vm2 = vcmp.ne.s32.totalorder %v4093_v1, 4294967295 }
 0x12d   : > { %vm1629_vm3 = vcmp.ne.f32.partialorder %v1627_v2, 0.0  ;;  %v1645_v3 = vld [vmem:[%s1072_s19] sm:$0x3]  ;;  %v3604_v4 = vmov 0.0   ;;  %v1663_v9 = vld [vmem:[%s1081_s11] sm:$0x3] }
 0x12e   : > { %v2681_v5 = vsel %vm1298_vm0, 1.0, %v3604_v4  ;;  %v2700_v6 = vsel %vm1450_vm2, 1.0, %v3604_v4  ;;  %v2725_v7 = vsel %vm1629_vm3, 1.0, %v3604_v4  ;;  %v1646_v8 = vsub.f32 %v1645_v3, %v1627_v2  ;;  %v4119_v24 = vld [vmem:[%s4034_s18] sm:$0x3]  ;;  %s2675_s23 = sshll.u32 %s4008_s24, 2 }
 0x12f   : > { %v1302_v10 = vsel %vm1301_vm1, %v2681_v5, 0.0  ;;  %v1453_v11 = vsel %vm1301_vm1, %v2700_v6, 0.0  ;;  %v1632_v12 = vsel %vm1301_vm1, %v2725_v7, 0.0  ;;  %v1664_v13 = vsub.f32 %v1663_v9, %v1627_v2  ;;  %v2691_v25 = vld [vmem:[%s4034_s18 + $0x2] sm:$0x3]  ;;  %s4812_s19 = sld [smem:[#allocation68_spill]] }
 0x130   : > { %1303 = vadd.xlane.f32.xlu0 %v1302_v10  ;;  %1454 = vadd.xlane.f32.xlu1 %v1453_v11  ;;  %v1647_v15 = vand.u32 2147483647, %v1646_v8  ;;  %v1387_v27 = vmax.f32 %v4119_v24, %v2691_v25  ;;  %v2692_v28 = vld [vmem:[%s4034_s18 + $0x4] sm:$0x3]  ;;  %v2693_v31 = vld [vmem:[%s4034_s18 + $0x6] sm:$0x3] }
 0x131   : > { %p1281_p4 = scmp.lt.s32.totalorder %s4810_s4, 1  ;;  %v1665_v18 = vand.u32 2147483647, %v1664_v13  ;;  %v4128_v34 = vld [vmem:[%s4027_s28] sm:$0x3]  ;;  %vm1346_vm5 = vcmp.eq.s32.totalorder %v4091_v0, 0 }
 0x132   : > { %v1649_v22 = vmul.f32 %v2725_v7, %v1647_v15  ;;  %v1390_v33 = vmax.f32 %v1387_v27, %v2692_v28  ;;  %v2682_v35 = vld [vmem:[%s4027_s28 + $0x2] sm:$0x3]  ;;  %v2683_v39 = vld [vmem:[%s4027_s28 + $0x4] sm:$0x3]  ;;  %v2684_v41 = vld [vmem:[%s4027_s28 + $0x6] sm:$0x3] }
 0x133   : > { %s4086_s7 = scalar_select %p1281_p4, %s4810_s4, 1  ;;  %v1667_v26 = vmul.f32 %v2725_v7, %v1665_v18  ;;  %v1318_v38 = vmax.f32 %v4128_v34, %v2682_v35  ;;  %v4147_v46 = vld [vmem:[%s4050_s25] sm:$0x3]  ;;  %v2713_v47 = vld [vmem:[%s4050_s25 + $0x2] sm:$0x3]  ;;  %vm1353_vm6 = vcmp.eq.s32.totalorder %v4091_v0, 1 }
 0x134   : > { %1633 = vadd.xlane.f32.xlu0 %v1632_v12  ;;  %v1650_v29 = vsel %vm1301_vm1, %v1649_v22, 0.0  ;;  %v4134_v37 = vmax.f32 %v1390_v33, %v2693_v31  ;;  %v2714_v48 = vld [vmem:[%s4050_s25 + $0x4] sm:$0x3]  ;;  %v1552_v50 = vmax.f32 %v4147_v46, %v2713_v47  ;;  %v2715_v57 = vld [vmem:[%s4050_s25 + $0x6] sm:$0x3]  ;;  %vm1360_vm7 = vcmp.eq.s32.totalorder %v4091_v0, 2 }
 0x135   : > { %s2760_s14 = smul.u32 6, %s4086_s7  ;;  %1651 = vadd.xlane.f32.xlu1 %v1650_v29  ;;  %v1668_v32 = vsel %vm1301_vm1, %v1667_v26, 0.0  ;;  %v1321_v49 = vmax.f32 %v1318_v38, %v2683_v39  ;;  %v4156_v58 = vld [vmem:[%s4046_s0] sm:$0x3]  ;;  %v2701_v59 = vld [vmem:[%s4046_s0 + $0x2] sm:$0x3] }
 0x136   : > { %v1394_v42 = vsub.f32 %v4119_v24, %v4134_v37  ;;  %v1398_v43 = vsub.f32 %v2691_v25, %v4134_v37  ;;  %v1402_v44 = vsub.f32 %v2692_v28, %v4134_v37  ;;  %v1406_v45 = vsub.f32 %v2693_v31, %v4134_v37  ;;  %v2716_v63 = vld [vmem:[%s4050_s25 + $0x8] sm:$0x3]  ;;  %v2702_v2 = vld [vmem:[%s4046_s0 + $0x4] sm:$0x3]  ;;  %v2703_v13 = vld [vmem:[%s4046_s0 + $0x6] sm:$0x3] }
 0x137   : > { %s1288_s1 = scalar_lea.vmem %s4811_s9, %s2760_s14  ;;  %v4152_v55 = vmax.f32 %v1321_v49, %v2684_v41  ;;  %v1555_v56 = vmax.f32 %v1552_v50, %v2714_v48  ;;  %v1469_v6 = vmax.f32 %v4156_v58, %v2701_v59  ;;  %v4171_v15 = vld [vmem:[%s4076_s15] sm:$0x3]  ;;  %v2704_v22 = vld [vmem:[%s4046_s0 + $0x8] sm:$0x3]  ;;  %v4186_v28 = vld [vmem:[%s4076_s15 + $0x4] sm:$0x3] }
 0x138   : > { %v4106_v14 = vld [vmem:[%s1288_s1] sm:$0x3]  ;;  %v4108_v16 = vld [vmem:[%s1288_s1 + $0x2] sm:$0x3]  ;;  %v4110_v17 = vld [vmem:[%s1288_s1 + $0x4] sm:$0x3]  ;;  %1669 = vadd.xlane.f32.xlu0 %v1668_v32  ;;  %v1749_v18 = vmul.f32 %v4171_v15, %v4171_v15 }
 0x139   : > { %v1684_v19 = vsel %vm1301_vm1, %v4106_v14, 0.0  ;;  %v1685_v20 = vsel %vm1301_vm1, %v4108_v16, 0.0  ;;  %v1687_v21 = vsel %vm1301_vm1, %v4110_v17, 0.0  ;;  %v1395_v51 = vmul.f32 1.442695, %v1394_v42  ;;  %s2747_s2 = sshll.u32 %s4086_s7, 2 }
 0x13a   : > { %v1686_v23 = vadd.f32 %v1685_v20, %v1684_v19  ;;  %v1399_v52 = vmul.f32 1.442695, %v1398_v43  ;;  %v1403_v53 = vmul.f32 1.442695, %v1402_v44  ;;  %v1407_v54 = vmul.f32 1.442695, %v1406_v45  ;;  %s1296_s11 = scalar_lea.vmem %s4812_s19, %s2747_s2 }
 0x13b   : > { %2917 = vpow2.f32 %v1395_v51  ;;  %v1325_v60 = vsub.f32 %v4128_v34, %v4152_v55  ;;  %v1329_v61 = vsub.f32 %v2682_v35, %v4152_v55  ;;  %v1333_v62 = vsub.f32 %v2683_v39, %v4152_v55  ;;  %v4189_v29 = vld [vmem:[%s4069_s13] sm:$0x3]  ;;  %v4210_v50 = vld [vmem:[%s4069_s13 + $0x2] sm:$0x3]  ;;  %v4213_v51 = vld [vmem:[%s4069_s13 + $0x4] sm:$0x3] }
 0x13c   : > { %v1688_v30 = vadd.f32 %v1687_v21, %v1686_v23  ;;  %2919 = vpow2.f32 %v1399_v52  ;;  %v1337_v3 = vsub.f32 %v2684_v41, %v4152_v55  ;;  %v1558_v5 = vmax.f32 %v1555_v56, %v2715_v57  ;;  %v4181_v23 = vld [vmem:[%s4076_s15 + $0x2] sm:$0x3]  ;;  %s1117_s13 = scalar_lea.vmem [#allocation22], %s2675_s23  ;;  %s4248_s15 = scalar_lea.vmem [#allocation30], %s4064_s16 }
 0x13d   : > { %2921 = vpow2.f32 %v1403_v53  ;;  %v1326_v7 = vmul.f32 1.442695, %v1325_v60  ;;  %v1330_v8 = vmul.f32 1.442695, %v1329_v61  ;;  %v1334_v9 = vmul.f32 1.442695, %v1333_v62 }
 0x13e   : > { %vm1689_vm4 = vcmp.ne.f32.partialorder %v1688_v30, 0.0  ;;  %2923 = vpow2.f32 %v1407_v54  ;;  %v1338_v10 = vmul.f32 1.442695, %v1337_v3  ;;  %v4167_v11 = vmax.f32 %v1558_v5, %v2716_v63  ;;  %s4285_s27 = scalar_lea.vmem [#allocation29], %s4064_s16  ;;  %s4744_s30 = sshll.u32 %s4810_s4, 7 }
 0x13f   : > { %v4132_v36 = vsel %vm1689_vm4, 1.0, %v3604_v4  ;;  %v1472_v12 = vmax.f32 %v1469_v6, %v2702_v2  ;;  %2925 = vpow2.f32 %v1326_v7  ;;  %v1750_v39 = vmul.f32 %v4181_v23, %v4181_v23  ;;  %s2019_s14 = sshll.u32 %s4285_s27, 4  ;;  %s4815_s2 = sld [smem:[#allocation71_spill]]  ;;  %s4412_s14 = int_to_ptr.vmem [resolvable:$true] %s2019_s14 }
 0x140   : > { %v1692_v40 = vsel %vm1301_vm1, %v4132_v36, 0.0  ;;  %2927 = vpow2.f32 %v1330_v8  ;;  %v1562_v19 = vsub.f32 %v4147_v46, %v4167_v11  ;;  %v1566_v20 = vsub.f32 %v2713_v47, %v4167_v11  ;;  %s4746_s26 = scalar_lea.sflag [#allocation25], %s4020_s20 }
 0x141   : > { %1693 = vadd.xlane.f32.xlu1 %v1692_v40  ;;  %v1570_v21 = vsub.f32 %v2714_v48, %v4167_v11  ;;  %2929 = vpow2.f32 %v1334_v9  ;;  %v1574_v25 = vsub.f32 %v2715_v57, %v4167_v11  ;;  %v1578_v26 = vsub.f32 %v2716_v63, %v4167_v11  ;;  %v1821_v9 = vld [vmem:[%s1296_s11] sm:$0x3] }
 0x142   : > { %v1475_v27 = vmax.f32 %v1472_v12, %v2703_v13  ;;  %2931 = vpow2.f32 %v1338_v10  ;;  %v1563_v30 = vmul.f32 1.442695, %v1562_v19  ;;  %v1567_v31 = vmul.f32 1.442695, %v1566_v20 }
 0x143   : > { %v1571_v32 = vmul.f32 1.442695, %v1570_v21  ;;  %v1575_v33 = vmul.f32 1.442695, %v1574_v25  ;;  %v1579_v35 = vmul.f32 1.442695, %v1578_v26  ;;  %v1751_v40 = vmul.f32 %v4186_v28, %v4186_v28 }
 0x144   : > { %v4191_v38 = vmax.f32 %v1475_v27, %v2704_v22  ;;  %2933 = vpow2.f32 %v1563_v30  ;;  %v1752_v41 = vsel %vm1301_vm1, %v1749_v18, 0.0  ;;  %v1708_v42 = vmul.f32 %v4189_v29, %v4189_v29  ;;  %v1864_v18 = vld [vmem:[%s1117_s13] sm:$0x3]  ;;  %v2730_v25 = vld [vmem:[%s1117_s13 + $0x2] sm:$0x3] }
 0x145   : > { %2935 = vpow2.f32 %v1567_v31  ;;  %v1753_v49 = vsel %vm1301_vm1, %v1750_v39, 0.0  ;;  %v1709_v3 = vmul.f32 %v4210_v50, %v4210_v50  ;;  %v1710_v7 = vmul.f32 %v4213_v51, %v4213_v51  ;;  %s4816_s23 = smov %s4815_s2  ;;  %s4419_s22 = scalar_lea.hbm %s4815_s2, %s4744_s30 }
 0x146   : > { %v1479_v43 = vsub.f32 %v4156_v58, %v4191_v38  ;;  %v1483_v44 = vsub.f32 %v2701_v59, %v4191_v38  ;;  %v1487_v45 = vsub.f32 %v2702_v2, %v4191_v38  ;;  %2937 = vpow2.f32 %v1571_v32 }
 0x147   : > { %v1491_v47 = vsub.f32 %v2703_v13, %v4191_v38  ;;  %v1495_v48 = vsub.f32 %v2704_v22, %v4191_v38  ;;  %2939 = vpow2.f32 %v1575_v33  ;;  %v1754_v61 = vadd.f32 %v1753_v49, %v1752_v41  ;;  %v2729_v13 = vld [vmem:[%s1296_s11 + $0x2] sm:$0x3]  ;;  %s3605_s11 = smov [#allocation24]  }
 0x148   : > { %v2918_v52 = vpop.eup %2917  ;;  %v1480_v53 = vmul.f32 1.442695, %v1479_v43  ;;  %v1484_v54 = vmul.f32 1.442695, %v1483_v44  ;;  %v1488_v56 = vmul.f32 1.442695, %v1487_v45  ;;  %2941 = vpow2.f32 %v1579_v35 }
 0x149   : > { %v2920_v57 = vpop.eup %2919  ;;  %v1492_v59 = vmul.f32 1.442695, %v1491_v47  ;;  %v1496_v60 = vmul.f32 1.442695, %v1495_v48  ;;  %v1755_v2 = vsel %vm1301_vm1, %v1751_v40, 0.0  ;;  %v1711_v8 = vsel %vm1301_vm1, %v1708_v42, 0.0 }
 0x14a   : > { %v2922_v62 = vpop.eup %2921  ;;  %v1401_v63 = vadd.f32 %v2920_v57, %v2918_v52  ;;  %2943 = vpow2.f32 %v1480_v53  ;;  %v1756_v6 = vadd.f32 %v1755_v2, %v1754_v61  ;;  %v1712_v12 = vsel %vm1301_vm1, %v1709_v3, 0.0  ;;  %s3319_s13 = sshll.u32 %s3605_s11, 4  ;;  %s3320_s13 = int_to_ptr.vmem [resolvable:$false] %s3319_s13 }
 0x14b   : > { %v2924_v5 = vpop.eup %2923  ;;  %2945 = vpow2.f32 %v1484_v54  ;;  %v1713_v21 = vadd.f32 %v1712_v12, %v1711_v8  ;;  %v1714_v22 = vsel %vm1301_vm1, %v1710_v7, 0.0  ;;  %v1824_v35 = vmax.f32 %v1821_v9, %v2729_v13 }
 0x14c   : > { %v1405_v10 = vadd.f32 %v2922_v62, %v1401_v63  ;;  %2947 = vpow2.f32 %v1488_v56  ;;  %v2926_v19 = vpop.eup %2925  ;;  %v1757_v20 = vadd.f32 1e-12, %v1756_v6  ;;  %v1867_v39 = vmax.f32 %v1864_v18, %v2730_v25 }
 0x14d   : > { %2949 = vpow2.f32 %v1492_v59  ;;  %v2928_v26 = vpop.eup %2927  ;;  %v1715_v32 = vadd.f32 %v1714_v22, %v1713_v21  ;;  %v4228_v43 = vsub.f32 %v1821_v9, %v1824_v35  ;;  %v4230_v44 = vsub.f32 %v2729_v13, %v1824_v35 }
 0x14e   : > { %v1409_v27 = vadd.f32 %v2924_v5, %v1405_v10  ;;  %2951 = vpow2.f32 %v1496_v60  ;;  %v2930_v30 = vpop.eup %2929  ;;  %v1332_v31 = vadd.f32 %v2928_v26, %v2926_v19  ;;  %v4232_v45 = vsub.f32 %v1864_v18, %v1867_v39  ;;  %v2696_v26 = vld [vmem:[%s4034_s18 + $0x4] sm:$0x3] }
 0x14f   : > { %2953 = vrsqrt.f32 %v1757_v20  ;;  %v2932_v33 = vpop.eup %2931  ;;  %v1716_v41 = vadd.f32 1e-12, %v1715_v32  ;;  %v4234_v49 = vsub.f32 %v2730_v25, %v1867_v39  ;;  %v1827_v54 = vmul.f32 1.442695, %v4228_v43  ;;  %v2694_v25 = vld [vmem:[%s4034_s18 + $0x2] sm:$0x3] }
 0x150   : > { %2955 = vlog2.f32 %v1409_v27  ;;  %v1336_v40 = vadd.f32 %v2930_v30, %v1332_v31  ;;  %v1829_v56 = vmul.f32 1.442695, %v4230_v44  ;;  %v1870_v61 = vmul.f32 1.442695, %v4232_v45  ;;  %v2698_v27 = vld [vmem:[%s4034_s18 + $0x6] sm:$0x3] }
 0x151   : > { %v2934_v42 = vpop.eup %2933  ;;  %2957 = vrsqrt.f32 %v1716_v41  ;;  %v1872_v63 = vmul.f32 1.442695, %v4234_v49  ;;  %vm1367_vm8 = vcmp.eq.s32.totalorder %v4091_v0, 3  ;;  %s4268_s18 = scalar_lea.vmem [#allocation24], %s4023_s29  ;;  %vm1504_vm9 = vcmp.eq.s32.totalorder %v4093_v1, 0 }
 0x152   : > { %v2936_v47 = vpop.eup %2935  ;;  %v1340_v48 = vadd.f32 %v2932_v33, %v1336_v40  ;;  %vm1511_vm10 = vcmp.eq.s32.totalorder %v4093_v1, 1  ;;  %vm1518_vm11 = vcmp.eq.s32.totalorder %v4093_v1, 2  ;;  %vm1525_vm12 = vcmp.eq.s32.totalorder %v4093_v1, 3 }
 0x153   : > { %v2938_v52 = vpop.eup %2937  ;;  %v1569_v53 = vadd.f32 %v2936_v47, %v2934_v42  ;;  %vm1532_vm13 = vcmp.eq.s32.totalorder %v4093_v1, 4 }
 0x154   : > { %v2940_v57 = vpop.eup %2939  ;;  %2959 = vlog2.f32 %v1340_v48 }
 0x155   : > { %v2942_v59 = vpop.eup %2941  ;;  %v1573_v60 = vadd.f32 %v2938_v52, %v1569_v53  ;;  %2961 = vpow2.f32 %v1827_v54  ;;  %v2685_v54 = vld [vmem:[%s4027_s28 + $0x2] sm:$0x3] }
 0x156   : > { %2963 = vpow2.f32 %v1829_v56 }
 0x157   : > { %v2944_v62 = vpop.eup %2943  ;;  %v1577_v3 = vadd.f32 %v2940_v57, %v1573_v60  ;;  %2965 = vpow2.f32 %v1870_v61 }
 0x158   : > { %v2946_v2 = vpop.eup %2945  ;;  %2967 = vpow2.f32 %v1872_v63  ;;  %v2689_v63 = vld [vmem:[%s4027_s28 + $0x6] sm:$0x3] }
 0x159   : > { %v2948_v5 = vpop.eup %2947  ;;  %v1486_v6 = vadd.f32 %v2946_v2, %v2944_v62  ;;  %v1581_v8 = vadd.f32 %v2942_v59, %v1577_v3 }
 0x15a   : > { %v2950_v7 = vpop.eup %2949 }
 0x15b   : > { %v2952_v9 = vpop.eup %2951  ;;  %v1490_v10 = vadd.f32 %v2948_v5, %v1486_v6  ;;  %2969 = vlog2.f32 %v1581_v8 }
 0x15c   : > { %v2954_v12 = vpop.eup %2953 }
 0x15d   : > { %v2956_v13 = vpop.eup %2955  ;;  %v1494_v18 = vadd.f32 %v2950_v7, %v1490_v10  ;;  %v1759_v19 = vmul.f32 %v2954_v12, %v4171_v15  ;;  %v1760_v20 = vmul.f32 %v2954_v12, %v4181_v23  ;;  %v1761_v21 = vmul.f32 %v2954_v12, %v4186_v28 }
 0x15e   : > { %v1411_v22 = vmul.f32 0.6931472, %v2956_v13  ;;  %v2958_v31 = vpop.eup %2957 }
 0x15f   : > { %v1498_v30 = vadd.f32 %v2952_v9, %v1494_v18  ;;  %1762 = vst [vmem:[%s4248_s15] sm:$0x3] %v1759_v19  ;;  %1763 = vst [vmem:[%s4248_s15 + $0x2] sm:$0x3] %v1760_v20  ;;  %v1765_v15 = vmul.f32 %v1759_v19, %v4106_v14  ;;  %v1766_v23 = vmul.f32 %v1760_v20, %v4108_v16 }
 0x160   : > { %1764 = vst [vmem:[%s4248_s15 + $0x4] sm:$0x3] %v1761_v21  ;;  %v1767_v28 = vmul.f32 %v1761_v21, %v4110_v17  ;;  %v1412_v32 = vadd.f32 %v1411_v22, %v4134_v37  ;;  %v1718_v56 = vmul.f32 %v2958_v31, %v4189_v29  ;;  %v1719_v57 = vmul.f32 %v2958_v31, %v4210_v50  ;;  %v2687_v50 = vld [vmem:[%s4027_s28 + $0x4] sm:$0x3]  ;;  %s4301_s28 = scalar_lea.vmem [#allocation23], %s4023_s29  ;;  %s4331_s29 = scalar_lea.vmem [#allocation27], %s4043_s17 }
 0x161   : > { %2971 = vlog2.f32 %v1498_v30  ;;  %v1768_v33 = vsel %vm1301_vm1, %v1765_v15, 0.0  ;;  %v1769_v35 = vsel %vm1301_vm1, %v1766_v23, 0.0  ;;  %v2960_v40 = vpop.eup %2959  ;;  %v1720_v3 = vmul.f32 %v2958_v31, %v4213_v51  ;;  %v2719_v23 = vld [vmem:[%s4050_s25 + $0x4] sm:$0x3]  ;;  %s1951_s16 = sshll.u32 %s4301_s28, 4  ;;  %s2002_s1 = sshll.u32 %s4331_s29, 4  ;;  %s4404_s16 = int_to_ptr.vmem [resolvable:$true] %s1951_s16  ;;  %s4406_s1 = int_to_ptr.vmem [resolvable:$true] %s2002_s1 }
 0x162   : > { %v1771_v39 = vsel %vm1301_vm1, %v1767_v28, 0.0  ;;  %v1413_v41 = vsub.f32 %v4119_v24, %v1412_v32  ;;  %v1418_v42 = vsub.f32 %v2694_v25, %v1412_v32  ;;  %v1424_v47 = vsub.f32 %v2696_v26, %v1412_v32  ;;  %v2962_v52 = vpop.eup %2961  ;;  %1721 = vst [vmem:[%s4285_s27] sm:$0x3] %v1718_v56  ;;  %1722 = vst [vmem:[%s4285_s27 + $0x2] sm:$0x3] %v1719_v57 }
 0x163   : > { %v1430_v48 = vsub.f32 %v2698_v27, %v1412_v32  ;;  %v1342_v53 = vmul.f32 0.6931472, %v2960_v40  ;;  %v1770_v37 = vadd.f32 %v1769_v35, %v1768_v33  ;;  %v2964_v59 = vpop.eup %2963  ;;  %v1724_v6 = vmul.f32 %v1718_v56, %v4106_v14  ;;  %1723 = vst [vmem:[%s4285_s27 + $0x4] sm:$0x3] %v1720_v3  ;;  %v2717_v27 = vld [vmem:[%s4050_s25 + $0x2] sm:$0x3] }
 0x164   : > { %1414 = vst [vmem:[%s4268_s18] sm:$0x3] %v1413_v41  ;;  %v1415_v24 = vsel %vm1346_vm5, %v1413_v41, 0.0  ;;  %2695 = vst [vmem:[%s4268_s18 + $0x2] sm:$0x3] %v1418_v42  ;;  %v1421_v60 = vsel %vm1353_vm6, %v1418_v42, 0.0  ;;  %v1427_v29 = vsel %vm1360_vm7, %v1424_v47, 0.0  ;;  %v1725_v7 = vmul.f32 %v1719_v57, %v4108_v16  ;;  %v2966_v8 = vpop.eup %2965 }
 0x165   : > { %2697 = vst [vmem:[%s4268_s18 + $0x4] sm:$0x3] %v1424_v47  ;;  %2699 = vst [vmem:[%s4268_s18 + $0x6] sm:$0x3] %v1430_v48  ;;  %v1422_v61 = vadd.f32 %v1421_v60, %v1415_v24  ;;  %v1343_v62 = vadd.f32 %v1342_v53, %v4152_v55  ;;  %v1772_v2 = vadd.f32 %v1771_v39, %v1770_v37  ;;  %v1433_v5 = vsel %vm1367_vm8, %v1430_v48, 0.0  ;;  %v2968_v13 = vpop.eup %2967 }
 0x166   : > { %v1831_v55 = vadd.f32 %v2964_v59, %v2962_v52  ;;  %v1726_v20 = vmul.f32 %v1720_v3, %v4110_v17  ;;  %v1727_v14 = vsel %vm1301_vm1, %v1724_v6, 0.0  ;;  %v1728_v28 = vsel %vm1301_vm1, %v1725_v7, 0.0  ;;  %v2721_v33 = vld [vmem:[%s4050_s25 + $0x6] sm:$0x3]  ;;  %v2723_v35 = vld [vmem:[%s4050_s25 + $0x8] sm:$0x3] }
 0x167   : > { %v1428_v9 = vadd.f32 %v1427_v29, %v1422_v61  ;;  %v1344_v51 = vsub.f32 %v4128_v34, %v1343_v62  ;;  %v1350_v10 = vsub.f32 %v2685_v54, %v1343_v62  ;;  %v1357_v12 = vsub.f32 %v2687_v50, %v1343_v62  ;;  %v2705_v37 = vld [vmem:[%s4046_s0 + $0x2] sm:$0x3]  ;;  %v2707_v60 = vld [vmem:[%s4046_s0 + $0x4] sm:$0x3]  ;;  %v2709_v61 = vld [vmem:[%s4046_s0 + $0x6] sm:$0x3] }
 0x168   : > { %v1364_v18 = vsub.f32 %v2689_v63, %v1343_v62  ;;  %v4296_v19 = vmul.f32 %v4132_v36, %v1772_v2  ;;  %v2970_v21 = vpop.eup %2969  ;;  %2973 = vlog2.f32 %v1831_v55  ;;  %v1729_v39 = vadd.f32 %v1728_v28, %v1727_v14  ;;  %v2711_v62 = vld [vmem:[%s4046_s0 + $0x8] sm:$0x3]  ;;  %s4356_s25 = scalar_lea.vmem [#allocation26], %s4043_s17  ;;  %s4813_s17 = scalar_lea.vmem [#allocation20], %s4011_s5 }
 0x169   : > { %v1434_v16 = vadd.f32 %v1433_v5, %v1428_v9  ;;  %1345 = vst [vmem:[%s4301_s28] sm:$0x3] %v1344_v51  ;;  %v1347_v34 = vsel %vm1346_vm5, %v1344_v51, 0.0  ;;  %2686 = vst [vmem:[%s4301_s28 + $0x2] sm:$0x3] %v1350_v10  ;;  %v1354_v22 = vsel %vm1353_vm6, %v1350_v10, 0.0  ;;  %v1361_v17 = vsel %vm1360_vm7, %v1357_v12, 0.0 }
 0x16a   : > { %2688 = vst [vmem:[%s4301_s28 + $0x4] sm:$0x3] %v1357_v12  ;;  %v1355_v25 = vadd.f32 %v1354_v22, %v1347_v34  ;;  %2690 = vst [vmem:[%s4301_s28 + $0x6] sm:$0x3] %v1364_v18  ;;  %v1583_v26 = vmul.f32 0.6931472, %v2970_v21  ;;  %v1874_v0 = vadd.f32 %v2968_v13, %v2966_v8 }
 0x16b   : > { %v1435_v30 = vsel %vm1301_vm1, %v1434_v16, 0.0  ;;  %v1368_v15 = vsel %vm1367_vm8, %v1364_v18, 0.0  ;;  %v1730_v40 = vsel %vm1301_vm1, %v1726_v20, 0.0  ;;  %v1787_v12 = vld [vmem:[%s4813_s17] sm:$0x3]  ;;  %s1968_s0 = sshll.u32 %s4268_s18, 4  ;;  %s4402_s0 = int_to_ptr.vmem [resolvable:$true] %s1968_s0 }
 0x16c   : > { %1436 = vadd.xlane.f32.xlu1 %v1435_v30  ;;  %v1362_v31 = vadd.f32 %v1361_v17, %v1355_v25  ;;  %v1584_v32 = vadd.f32 %v1583_v26, %v4167_v11  ;;  %v1731_v56 = vadd.f32 %v1730_v40, %v1729_v39  ;;  %2975 = vlog2.f32 %v1874_v0  ;;  %s1985_s7 = sshll.u32 %s4356_s25, 4  ;;  %s3315_s19 = scalar_lea.vmem %s4402_s0, 128  ;;  %s4408_s7 = int_to_ptr.vmem [resolvable:$true] %s1985_s7 }
 0x16d   : > { %vm1789_vm14 = vcmp.eq.s32.totalorder %v1787_v12, 1  ;;  %v1774_v17 = vsel %vm1301_vm1, %v4296_v19, 0.0  ;;  %vm1788_vm15 = vcmp.eq.s32.totalorder %v1787_v12, 0  ;;  %p3316_p8 = scmp.ne.s32.totalorder %s4402_s0, %s3315_s19  ;;  %s3321_s18 = scalar_lea.vmem %s3320_s13, 256 }
 0x16e   : > { %v2972_v41 = vpop.eup %2971  ;;  %v1369_v42 = vadd.f32 %v1368_v15, %v1362_v31  ;;  %v1585_v47 = vsub.f32 %v4147_v46, %v1584_v32  ;;  %v1590_v11 = vsub.f32 %v2717_v27, %v1584_v32  ;;  %v1596_v48 = vsub.f32 %v2719_v23, %v1584_v32  ;;  %p3322_p6 = scmp.lt.s32.totalorder %s4402_s0, %s3320_s13  ;;  %p3323_p7 = scmp.lt.s32.totalorder %s3321_s18, %s3315_s19 }
 0x16f   : > { %v1602_v52 = vsub.f32 %v2721_v33, %v1584_v32  ;;  %v1608_v53 = vsub.f32 %v2723_v35, %v1584_v32  ;;  %v1500_v54 = vmul.f32 0.6931472, %v2972_v41  ;;  %v1732_v2 = vmul.f32 %v4132_v36, %v1731_v56  ;;  %p3317_p3 = pnand %p3316_p8, %p3779_p9 }
 0x170   : > { %v1370_v57 = vsel %vm1301_vm1, %v1369_v42, 0.0  ;;  %1586 = vst [vmem:[%s4331_s29] sm:$0x3] %v1585_v47  ;;  %v1587_v46 = vsel %vm1504_vm9, %v1585_v47, 0.0  ;;  %2718 = vst [vmem:[%s4331_s29 + $0x2] sm:$0x3] %v1590_v11  ;;  %v1593_v59 = vsel %vm1511_vm10, %v1590_v11, 0.0  ;;  %p3324_p13 = por %p3323_p7, %p3322_p6 }
 0x171   : > { %2720 = vst [vmem:[%s4331_s29 + $0x4] sm:$0x3] %v1596_v48  ;;  %v1599_v24 = vsel %vm1518_vm11, %v1596_v48, 0.0  ;;  %1371 = vadd.xlane.f32.xlu0 %v1370_v57  ;;  %v1594_v29 = vadd.f32 %v1593_v59, %v1587_v46  ;;  %2722 = vst [vmem:[%s4331_s29 + $0x6] sm:$0x3] %v1602_v52  ;;  %v1501_v50 = vadd.f32 %v1500_v54, %v4191_v38  ;;  %v1605_v63 = vsel %vm1525_vm12, %v1602_v52, 0.0  ;;  %p3318_p5 = pneg %p3317_p3 }
 0x172   : > { %2724 = vst [vmem:[%s4331_s29 + $0x8] sm:$0x3] %v1608_v53  ;;  %v1611_v55 = vsel %vm1532_vm13, %v1608_v53, 0.0  ;;  %v2728_v26 = vsel %vm1789_vm14, 1.0, %v3604_v4  ;;  %v1733_v23 = vsel %vm1301_vm1, %v1732_v2, 0.0  ;;  %v2727_v19 = vsel %vm1788_vm15, 1.0, %v3604_v4 }
 0x173   : > { %v1600_v3 = vadd.f32 %v1599_v24, %v1594_v29  ;;  %v1502_v5 = vsub.f32 %v4156_v58, %v1501_v50  ;;  %v1508_v6 = vsub.f32 %v2705_v37, %v1501_v50  ;;  %v1515_v7 = vsub.f32 %v2707_v60, %v1501_v50  ;;  %p3325_p10 = pnand %p3324_p13, %p3318_p5 }
 0x174   : > { %v1522_v8 = vsub.f32 %v2709_v61, %v1501_v50  ;;  %v1529_v9 = vsub.f32 %v2711_v62, %v1501_v50  ;;  %v1804_v1 = vsel %vm1301_vm1, %v2728_v26, 0.0  ;;  %v1792_v35 = vsel %vm1301_vm1, %v2727_v19, 0.0 }
 0x175   : > { %v1606_v38 = vadd.f32 %v1605_v63, %v1600_v3  ;;  %1503 = vst [vmem:[%s4356_s25] sm:$0x3] %v1502_v5  ;;  %v1505_v36 = vsel %vm1504_vm9, %v1502_v5, 0.0  ;;  %2706 = vst [vmem:[%s4356_s25 + $0x2] sm:$0x3] %v1508_v6  ;;  %v1512_v58 = vsel %vm1511_vm10, %v1508_v6, 0.0  ;;  %v1519_v51 = vsel %vm1518_vm11, %v1515_v7, 0.0  ;;  %v2974_v20 = vpop.eup %2973 }
 0x176   : > { %2708 = vst [vmem:[%s4356_s25 + $0x4] sm:$0x3] %v1515_v7  ;;  %v1513_v10 = vadd.f32 %v1512_v58, %v1505_v36  ;;  %2710 = vst [vmem:[%s4356_s25 + $0x6] sm:$0x3] %v1522_v8  ;;  %v1526_v18 = vsel %vm1525_vm12, %v1522_v8, 0.0  ;;  %v1533_v16 = vsel %vm1532_vm13, %v1529_v9, 0.0 }
 0x177   : > { %2712 = vst [vmem:[%s4356_s25 + $0x8] sm:$0x3] %v1529_v9  ;;  %v1612_v13 = vadd.f32 %v1611_v55, %v1606_v38  ;;  %v1833_v34 = vmul.f32 0.6931472, %v2974_v20 }
 0x178   : > { %v1520_v14 = vadd.f32 %v1519_v51, %v1513_v10 }
 0x179   : > { %v1613_v21 = vsel %vm1301_vm1, %v1612_v13, 0.0  ;;  %v1849_v27 = vsub.f32 %v1833_v34, %v4230_v44  ;;  %v2976_v15 = vpop.eup %2975  ;;  %v1834_v32 = vsub.f32 %v1833_v34, %v4228_v43 }
 0x17a   : > { %1614 = vadd.xlane.f32.xlu1 %v1613_v21  ;;  %v1527_v22 = vadd.f32 %v1526_v18, %v1520_v14  ;;  %v1876_v31 = vmul.f32 0.6931472, %v2976_v15 }
 0x17b   : > { %v1850_v28 = vsel %vm1789_vm14, %v1849_v27, 0.0  ;;  %v1835_v40 = vsel %vm1788_vm15, %v1834_v32, 0.0 }
 0x17c   : > { %v1534_v25 = vadd.f32 %v1533_v16, %v1527_v22  ;;  %v1892_v44 = vsub.f32 %v1876_v31, %v4234_v49  ;;  %v1851_v33 = vsel %vm1301_vm1, %v1850_v28, 0.0  ;;  %v1877_v0 = vsub.f32 %v1876_v31, %v4232_v45 }
 0x17d   : > { %v1836_v43 = vsel %vm1301_vm1, %v1835_v40, 0.0 }
 0x17e   : > { %v1535_v30 = vsel %vm1301_vm1, %v1534_v25, 0.0  ;;  %1775 = vadd.xlane.f32.xlu1 %v1774_v17  ;;  %v1893_v39 = vsel %vm1789_vm14, %v1892_v44, 0.0  ;;  %v1878_v49 = vsel %vm1788_vm15, %v1877_v0, 0.0 }
 0x17f   : > { %1536 = vadd.xlane.f32.xlu0 %v1535_v30  ;;  %v1894_v4 = vsel %vm1301_vm1, %v1893_v39, 0.0  ;;  %v1879_v41 = vsel %vm1301_vm1, %v1878_v49, 0.0 }
 0x182   : > { %1805 = vadd.xlane.f32.xlu1 %v1804_v1 }
 0x183   : > { %1734 = vadd.xlane.f32.xlu0 %v1733_v23 }
 0x186   : > { %1852 = vadd.xlane.f32.xlu1 %v1851_v33 }
 0x187   : > { %1793 = vadd.xlane.f32.xlu0 %v1792_v35 }
 0x18a   : > { %1895 = vadd.xlane.f32.xlu1 %v1894_v4 }
 0x18b   : > { %1837 = vadd.xlane.f32.xlu0 %v1836_v43 }
 0x18f   : > { %1880 = vadd.xlane.f32.xlu0 %v1879_v41 }
 0x1b9   : > { %v1304_v42 = vpop.xlane.xlu0 %1303 }
 0x1ba   : > { %v1305_v45 = vrot.slane %v1304_v42, 4 }
 0x1bc   : > { %v1306_v47 = vadd.f32 %v1305_v45, %v1304_v42 }
 0x1be   : > { %v1307_v11 = vrot.slane %v1306_v47, 2 }
 0x1c0   : > { %v1308_v48 = vadd.f32 %v1307_v11, %v1306_v47 }
 0x1c2   : > { %v1309_v52 = vrot.slane %v1308_v48, 1 }
 0x1c4   : > { %v1310_v53 = vadd.f32 %v1309_v52, %v1308_v48 }
 0x1c6   : > { %2761 = vpush %v1310_v53 }
 0x1c7   : > { %3328 = shalt.err (!%p3325_p10)
}
 0x1c8   : > { %s3329_s27 = scalar_lea.hbm %s4419_s22, 128  ;;  %s3333_s25 = scalar_lea.hbm %s4816_s23, 256 }
 0x1c9   : > { %p3330_p0 = scmp.ne.s32.totalorder %s4419_s22, %s3329_s27  ;;  %p3334_p4 = scmp.lt.s32.totalorder %s4419_s22, %s4816_s23 }
 0x1ca   : > { %p3335_p8 = scmp.lt.s32.totalorder %s3333_s25, %s3329_s27 }
 0x1cb   : > { %p3331_p1 = pnand %p3330_p0, %p3779_p9 }
 0x1cc   : > { %p3336_p3 = por %p3335_p8, %p3334_p4 }
 0x1cd   : > { %p3332_p2 = pneg %p3331_p1 }
 0x1cf   : > { %p3337_p5 = pnand %p3336_p3, %p3332_p2 }
 0x1d1   : > { %3340 = shalt.err (!%p3337_p5)
}
 0x1d2   : > { %s3606_s9 = smov 32   ;;  %s3607_s2 = smov 2  }
 0x1d3   : > { %2828 = dma.vmem_to_hbm [thread:$0]  (%p3779_p9), %s4402_s0, 128, %s4419_s22, %s4746_s26, %s3606_s9, %s3606_s9, %s3607_s2  }
 0x1d4   : > { %s2797_s19 = smul.u32 160, %s4810_s4  ;;  %s4817_s27 = sld [smem:[#allocation73_spill]] }
 0x1d5   : > { %s2799_s11 = smul.u32 96, %s4810_s4  ;;  %s2036_s25 = sshll.u32 %s4248_s15, 4  ;;  %s4499_s25 = int_to_ptr.vmem [resolvable:$true] %s2036_s25 }
 0x1d6   : > { %s4745_s17 = scalar_lea.sflag [#allocation28], %s4020_s20  ;;  %s3341_s21 = scalar_lea.vmem %s4406_s1, 160 }
 0x1d7   : > { %p3342_p6 = scmp.ne.s32.totalorder %s4406_s1, %s3341_s21  ;;  %s3608_s30 = smov [#allocation27]  }
 0x1d8   : > { %s3345_s6 = sshll.u32 %s3608_s30, 4  ;;  %s3346_s6 = int_to_ptr.vmem [resolvable:$false] %s3345_s6 }
 0x1d9   : > { %p3343_p7 = pnand %p3342_p6, %p3779_p9  ;;  %s3347_s8 = scalar_lea.vmem %s3346_s6, 320 }
 0x1da   : > { %s4818_s29 = smov %s4817_s27  ;;  %s4454_s28 = scalar_lea.hbm %s4817_s27, %s2797_s19 }
 0x1db   : > { %p3344_p13 = pneg %p3343_p7  ;;  %p3348_p10 = scmp.lt.s32.totalorder %s4406_s1, %s3346_s6 }
 0x1dc   : > { %p3349_p0 = scmp.lt.s32.totalorder %s3347_s8, %s3341_s21 }
 0x1de   : > { %p3350_p1 = por %p3349_p0, %p3348_p10 }
 0x1e0   : > { %p3351_p2 = pnand %p3350_p1, %p3344_p13 }
 0x1e2   : > { %3354 = shalt.err (!%p3351_p2)
}
 0x1e3   : > { %s3355_s0 = scalar_lea.hbm %s4454_s28, 160  ;;  %s3359_s30 = scalar_lea.hbm %s4818_s29, 320 }
 0x1e4   : > { %p3356_p4 = scmp.ne.s32.totalorder %s4454_s28, %s3355_s0  ;;  %p3360_p5 = scmp.lt.s32.totalorder %s4454_s28, %s4818_s29 }
 0x1e5   : > { %p3361_p6 = scmp.lt.s32.totalorder %s3359_s30, %s3355_s0 }
 0x1e6   : > { %p3357_p8 = pnand %p3356_p4, %p3779_p9 }
 0x1e7   : > { %p3362_p7 = por %p3361_p6, %p3360_p5 }
 0x1e8   : > { %p3358_p3 = pneg %p3357_p8 }
 0x1ea   : > { %p3363_p13 = pnand %p3362_p7, %p3358_p3 }
 0x1ec   : > { %3366 = shalt.err (!%p3363_p13)
}
 0x1ed   : > { %2830 = dma.vmem_to_hbm [thread:$0]  (%p3779_p9), %s4406_s1, 160, %s4454_s28, %s4745_s17, %s3606_s9, %s3606_s9, %s3607_s2  }
 0x1ee   : > { %s4819_s21 = sld [smem:[#allocation72_spill]]  ;;  %s1933_s27 = scalar_lea.sflag [#allocation31], %s4020_s20 }
 0x1ef   : > { %s4820_s30 = sld [smem:[#allocation75_spill]]  ;;  %s3367_s1 = scalar_lea.vmem %s4499_s25, 96 }
 0x1f0   : > { %p3368_p10 = scmp.ne.s32.totalorder %s4499_s25, %s3367_s1 }
 0x1f2   : > { %p3369_p0 = pnand %p3368_p10, %p3779_p9 }
 0x1f4   : > { %s4488_s0 = scalar_lea.hbm %s4819_s21, %s2797_s19  ;;  %p3370_p1 = pneg %p3369_p0 }
 0x1f5   : > { %s4495_s18 = scalar_lea.hbm %s4820_s30, %s2799_s11  ;;  %s3609_s19 = smov [#allocation30]  }
 0x1f6   : > { %s3371_s28 = sshll.u32 %s3609_s19, 4  ;;  %s3372_s28 = int_to_ptr.vmem [resolvable:$false] %s3371_s28 }
 0x1f7   : > { %s3373_s6 = scalar_lea.vmem %s3372_s28, 192  ;;  %p3374_p2 = scmp.lt.s32.totalorder %s4499_s25, %s3372_s28 }
 0x1f8   : > { %p3375_p4 = scmp.lt.s32.totalorder %s3373_s6, %s3367_s1 }
 0x1fa   : > { %p3376_p8 = por %p3375_p4, %p3374_p2 }
 0x1fc   : > { %p3377_p3 = pnand %p3376_p8, %p3370_p1 }
 0x1fe   : > { %3380 = shalt.err (!%p3377_p3)
}
 0x1ff   : > { %s3381_s15 = scalar_lea.hbm %s4495_s18, 96  ;;  %s3385_s13 = scalar_lea.hbm %s4820_s30, 192 }
 0x200   : > { %p3382_p5 = scmp.ne.s32.totalorder %s4495_s18, %s3381_s15  ;;  %p3386_p13 = scmp.lt.s32.totalorder %s4495_s18, %s4820_s30 }
 0x201   : > { %p3387_p10 = scmp.lt.s32.totalorder %s3385_s13, %s3381_s15 }
 0x202   : > { %p3383_p6 = pnand %p3382_p5, %p3779_p9 }
 0x203   : > { %p3388_p0 = por %p3387_p10, %p3386_p13 }
 0x204   : > { %p3384_p7 = pneg %p3383_p6 }
 0x206   : > { %p3389_p1 = pnand %p3388_p0, %p3384_p7 }
 0x208   : > { %3392 = shalt.err (!%p3389_p1)
}
 0x209   : > { %2832 = dma.vmem_to_hbm [thread:$0]  (%p3779_p9), %s4499_s25, 96, %s4495_s18, %s1933_s27, %s3606_s9, %s3606_s9, %s3607_s2   ;;  %v4541_v54 = vpop.xlane.xlu1 %1454 }
 0x20a   : > { %s4821_s28 = sld [smem:[#allocation74_spill]]  ;;  %s4823_s8 = sshll.u32 %s4810_s4, 7 }
 0x20b   : > { %s4824_s19 = sld [smem:[#allocation70_spill]]  ;;  %s1908_s10 = scalar_lea.sflag [#allocation4], %s4008_s24 }
 0x20c   : > { %s3393_s12 = scalar_lea.vmem %s4404_s16, 128  ;;  %s3610_s25 = smov [#allocation23]  }
 0x20d   : > { %p3394_p2 = scmp.ne.s32.totalorder %s4404_s16, %s3393_s12  ;;  %s3397_s18 = sshll.u32 %s3610_s25, 4  ;;  %s3398_s18 = int_to_ptr.vmem [resolvable:$false] %s3397_s18 }
 0x20e   : > { %s3399_s17 = scalar_lea.vmem %s3398_s18, 256  ;;  %p3400_p3 = scmp.lt.s32.totalorder %s4404_s16, %s3398_s18 }
 0x20f   : > { %p3395_p4 = pnand %p3394_p2, %p3779_p9  ;;  %p3401_p5 = scmp.lt.s32.totalorder %s3399_s17, %s3393_s12 }
 0x210   : > { %s4822_s6 = smov %s4821_s28  ;;  %s4532_s15 = scalar_lea.hbm %s4821_s28, %s2799_s11 }
 0x211   : > { %s4539_s26 = scalar_lea.hbm %s4824_s19, %s4823_s8  ;;  %p3396_p8 = pneg %p3395_p4 }
 0x212   : > { %p3402_p6 = por %p3401_p5, %p3400_p3 }
 0x214   : > { %p3403_p7 = pnand %p3402_p6, %p3396_p8 }
 0x216   : > { %3406 = shalt.err (!%p3403_p7)
}
 0x217   : > { %s3407_s11 = scalar_lea.hbm %s4539_s26, 128  ;;  %s3411_s8 = scalar_lea.hbm %s4824_s19, 256 }
 0x218   : > { %p3408_p13 = scmp.ne.s32.totalorder %s4539_s26, %s3407_s11  ;;  %p3412_p1 = scmp.lt.s32.totalorder %s4539_s26, %s4824_s19 }
 0x219   : > { %p3413_p2 = scmp.lt.s32.totalorder %s3411_s8, %s3407_s11 }
 0x21a   : > { %p3409_p10 = pnand %p3408_p13, %p3779_p9 }
 0x21b   : > { %p3414_p4 = por %p3413_p2, %p3412_p1 }
 0x21c   : > { %p3410_p0 = pneg %p3409_p10 }
 0x21e   : > { %p3415_p8 = pnand %p3414_p4, %p3410_p0 }
 0x220   : > { %3418 = shalt.err (!%p3415_p8)
}
 0x221   : > { %2827 = dma.vmem_to_hbm [thread:$0]  (%p3779_p9), %s4404_s16, 128, %s4539_s26, %s1908_s10, %s3606_s9, %s3606_s9, %s3607_s2  }
 0x222   : > { %s3419_s12 = scalar_lea.vmem %s4408_s7, 160  ;;  %s3611_s25 = smov [#allocation26]  }
 0x223   : > { %p3420_p3 = scmp.ne.s32.totalorder %s4408_s7, %s3419_s12  ;;  %s3423_s18 = sshll.u32 %s3611_s25, 4  ;;  %s3424_s18 = int_to_ptr.vmem [resolvable:$false] %s3423_s18 }
 0x224   : > { %s3425_s17 = scalar_lea.vmem %s3424_s18, 320  ;;  %p3426_p7 = scmp.lt.s32.totalorder %s4408_s7, %s3424_s18 }
 0x225   : > { %p3421_p5 = pnand %p3420_p3, %p3779_p9  ;;  %p3427_p13 = scmp.lt.s32.totalorder %s3425_s17, %s3419_s12 }
 0x227   : > { %p3422_p6 = pneg %p3421_p5  ;;  %p3428_p10 = por %p3427_p13, %p3426_p7 }
 0x229   : > { %p3429_p0 = pnand %p3428_p10, %p3422_p6 }
 0x22b   : > { %3432 = shalt.err (!%p3429_p0)
}
 0x22c   : > { %s3433_s11 = scalar_lea.hbm %s4488_s0, 160  ;;  %s3437_s26 = scalar_lea.hbm %s4819_s21, 320 }
 0x22d   : > { %p3434_p1 = scmp.ne.s32.totalorder %s4488_s0, %s3433_s11  ;;  %p3438_p8 = scmp.lt.s32.totalorder %s4488_s0, %s4819_s21 }
 0x22e   : > { %p3439_p3 = scmp.lt.s32.totalorder %s3437_s26, %s3433_s11 }
 0x22f   : > { %p3435_p2 = pnand %p3434_p1, %p3779_p9 }
 0x230   : > { %p3440_p5 = por %p3439_p3, %p3438_p8 }
 0x231   : > { %p3436_p4 = pneg %p3435_p2 }
 0x233   : > { %p3441_p6 = pnand %p3440_p5, %p3436_p4 }
 0x235   : > { %3444 = shalt.err (!%p3441_p6)
}
 0x236   : > { %s4825_s8 = scalar_lea.sflag [#allocation25], %s4020_s20  ;;  %s3445_s22 = scalar_lea.vmem %s4412_s14, 96 }
 0x237   : > { %2829 = dma.vmem_to_hbm [thread:$0]  (%p3779_p9), %s4408_s7, 160, %s4488_s0, %s4825_s8, %s3606_s9, %s3606_s9, %s3607_s2  }
 0x238   : > { %p3446_p7 = scmp.ne.s32.totalorder %s4412_s14, %s3445_s22  ;;  %s3612_s13 = smov [#allocation29]  }
 0x239   : > { %s3449_s12 = sshll.u32 %s3612_s13, 4  ;;  %s3450_s12 = int_to_ptr.vmem [resolvable:$false] %s3449_s12 }
 0x23a   : > { %p3447_p13 = pnand %p3446_p7, %p3779_p9  ;;  %s3451_s25 = scalar_lea.vmem %s3450_s12, 192 }
 0x23b   : > { %p3452_p0 = scmp.lt.s32.totalorder %s4412_s14, %s3450_s12  ;;  %p3453_p1 = scmp.lt.s32.totalorder %s3451_s25, %s3445_s22 }
 0x23c   : > { %p3448_p10 = pneg %p3447_p13 }
 0x23d   : > { %p3454_p2 = por %p3453_p1, %p3452_p0 }
 0x23f   : > { %p3455_p4 = pnand %p3454_p2, %p3448_p10 }
 0x241   : > { %3458 = shalt.err (!%p3455_p4)
}
 0x242   : > { %s3459_s18 = scalar_lea.hbm %s4532_s15, 96  ;;  %s3463_s17 = scalar_lea.hbm %s4822_s6, 192 }
 0x243   : > { %p3460_p8 = scmp.ne.s32.totalorder %s4532_s15, %s3459_s18  ;;  %p3464_p6 = scmp.lt.s32.totalorder %s4532_s15, %s4822_s6 }
 0x244   : > { %p3465_p7 = scmp.lt.s32.totalorder %s3463_s17, %s3459_s18 }
 0x245   : > { %p3461_p3 = pnand %p3460_p8, %p3779_p9 }
 0x246   : > { %p3466_p13 = por %p3465_p7, %p3464_p6 }
 0x247   : > { %p3462_p5 = pneg %p3461_p3 }
 0x249   : > { %p3467_p10 = pnand %p3466_p13, %p3462_p5 }
 0x24b   : > { %3470 = shalt.err (!%p3467_p10)
}
 0x24c   : > { %s4826_s16 = scalar_lea.sflag [#allocation28], %s4020_s20  ;;  %v1652_v37 = vpop.xlane.xlu1 %1651  ;;  %v1634_v56 = vpop.xlane.xlu0 %1633  ;;  %v1456_v46 = vrot.slane %v4541_v54, 4  ;;  %vm1313_vm0 = vcmask 16400   ;;  %s2762_s26 = spop %2761  ;;  %vm1382_vm1 = vcmask 0   ;;  %vm1447_vm2 = vcmask 8200  }
 0x24d   : > { %2831 = dma.vmem_to_hbm [thread:$0]  (%p3779_p9), %s4412_s14, 96, %s4532_s15, %s4826_s16, %s3606_s9, %s3606_s9, %s3607_s2   ;;  %v1635_v9 = vrot.slane %v1634_v56, 4  ;;  %v1653_v36 = vrot.slane %v1652_v37, 4  ;;  %vm1464_vm3 = vcmask 41000   ;;  %vm1547_vm4 = vcmask 24600  }
 0x24e   : > { %v1312_v29 = vstv %s2762_s26  ;;  %v1457_v50 = vadd.f32 %v1456_v46, %v4541_v54  ;;  %s4620_s1 = scalar_lea.vmem [#allocation32], %s4008_s24  ;;  %vm1625_vm5 = vcmask 32800   ;;  %vm1643_vm6 = vcmask 65600  }
 0x24f   : > { %1314 = vst.msk [vmem:[%s4620_s1] sm:$0x1] %vm1313_vm0, %v1312_v29  ;;  %v1636_v14 = vadd.f32 %v1635_v9, %v1634_v56  ;;  %v1654_v16 = vadd.f32 %v1653_v36, %v1652_v37  ;;  %vm1661_vm7 = vcmask 49200   ;;  %vm1679_vm8 = vcmask 57400  }
 0x250   : > { %v1694_v57 = vpop.xlane.xlu1 %1693  ;;  %v1670_v24 = vpop.xlane.xlu0 %1669  ;;  %v1458_v2 = vrot.slane %v1457_v50, 2  ;;  %vm1703_vm9 = vcmask 90200   ;;  %vm1744_vm10 = vcmask 73800   ;;  %vm1785_vm11 = vcmask 82000  }
 0x251   : > { %v1671_v58 = vrot.slane %v1670_v24, 4  ;;  %v1695_v13 = vrot.slane %v1694_v57, 4  ;;  %v1637_v1 = vrot.slane %v1636_v14, 2  ;;  %v1655_v28 = vrot.slane %v1654_v16, 2 }
 0x252   : > { %v1459_v55 = vadd.f32 %v1458_v2, %v1457_v50  ;;  %vm1815_vm12 = vcmask 131200   ;;  %vm1819_vm13 = vcmask 139400   ;;  %vm1847_vm14 = vcmask 98400  }
 0x253   : > { %v1672_v22 = vadd.f32 %v1671_v58, %v1670_v24  ;;  %v1696_v26 = vadd.f32 %v1695_v13, %v1694_v57  ;;  %v1638_v49 = vadd.f32 %v1637_v1, %v1636_v14  ;;  %v1656_v45 = vadd.f32 %v1655_v28, %v1654_v16 }
 0x254   : > { %v1437_v59 = vpop.xlane.xlu1 %1436  ;;  %v1372_v63 = vpop.xlane.xlu0 %1371  ;;  %v1460_v12 = vrot.slane %v1459_v55, 1  ;;  %vm1862_vm15 = vcmask 114800   ;;  %vm1890_vm0 = vcmask 106600  }
 0x255   : > { %v1438_v60 = vrot.slane %v1437_v59, 4  ;;  %v1373_v3 = vrot.slane %v1372_v63, 4  ;;  %v1673_v32 = vrot.slane %v1672_v22, 2  ;;  %v1697_v35 = vrot.slane %v1696_v26, 2 }
 0x256   : > { %v1461_v25 = vadd.f32 %v1460_v12, %v1459_v55 }
 0x257   : > { %v1439_v61 = vadd.f32 %v1438_v60, %v1437_v59  ;;  %v1374_v6 = vadd.f32 %v1373_v3, %v1372_v63  ;;  %v1674_v52 = vadd.f32 %v1673_v32, %v1672_v22  ;;  %v1698_v56 = vadd.f32 %v1697_v35, %v1696_v26 }
 0x258   : > { %v1615_v51 = vpop.xlane.xlu1 %1614  ;;  %v1537_v30 = vpop.xlane.xlu0 %1536  ;;  %v1639_v60 = vrot.slane %v1638_v49, 1 }
 0x259   : > { %v1440_v62 = vrot.slane %v1439_v61, 2  ;;  %v1375_v7 = vrot.slane %v1374_v6, 2  ;;  %v1616_v18 = vrot.slane %v1615_v51, 4  ;;  %v1538_v23 = vrot.slane %v1537_v30, 4 }
 0x25a   : > { %v1675_v3 = vrot.slane %v1674_v52, 1 }
 0x25b   : > { %v1441_v5 = vadd.f32 %v1440_v62, %v1439_v61  ;;  %v1376_v38 = vadd.f32 %v1375_v7, %v1374_v6  ;;  %v1617_v34 = vadd.f32 %v1616_v18, %v1615_v51  ;;  %v1539_v44 = vadd.f32 %v1538_v23, %v1537_v30 }
 0x25c   : > { %v1776_v17 = vpop.xlane.xlu1 %1775  ;;  %v1735_v40 = vpop.xlane.xlu0 %1734  ;;  %v1657_v61 = vrot.slane %v1656_v45, 1  ;;  %v1640_v51 = vadd.f32 %v1639_v60, %v1638_v49 }
 0x25d   : > { %v1442_v8 = vrot.slane %v1441_v5, 1  ;;  %v1377_v10 = vrot.slane %v1376_v38, 1  ;;  %v1618_v27 = vrot.slane %v1617_v34, 2  ;;  %v1777_v15 = vrot.slane %v1776_v17, 4 }
 0x25e   : > { %v1540_v4 = vrot.slane %v1539_v44, 2  ;;  %v1736_v43 = vrot.slane %v1735_v40, 4  ;;  %v1658_v12 = vadd.f32 %v1657_v61, %v1656_v45 }
 0x25f   : > { %v1443_v20 = vadd.f32 %v1442_v8, %v1441_v5  ;;  %v1378_v21 = vadd.f32 %v1377_v10, %v1376_v38  ;;  %v1778_v31 = vadd.f32 %v1777_v15, %v1776_v17  ;;  %v1619_v19 = vadd.f32 %v1618_v27, %v1617_v34 }
 0x260   : > { %v1806_v33 = vpop.xlane.xlu1 %1805  ;;  %v1737_v47 = vadd.f32 %v1736_v43, %v1735_v40  ;;  %v1541_v48 = vadd.f32 %v1540_v4, %v1539_v44  ;;  %v1794_v54 = vpop.xlane.xlu0 %1793  ;;  %v1699_v8 = vrot.slane %v1698_v56, 1 }
 0x261   : > { %2763 = vpush %v1378_v21  ;;  %v1779_v39 = vrot.slane %v1778_v31, 2  ;;  %v1807_v0 = vrot.slane %v1806_v33, 4  ;;  %v1620_v42 = vrot.slane %v1619_v19, 1  ;;  %v1795_v59 = vrot.slane %v1794_v54, 4 }
 0x262   : > { %2765 = vpush %v1443_v20  ;;  %v1738_v46 = vrot.slane %v1737_v47, 2  ;;  %v1542_v24 = vrot.slane %v1541_v48, 1  ;;  %v1676_v21 = vadd.f32 %v1675_v3, %v1674_v52  ;;  %v1700_v22 = vadd.f32 %v1699_v8, %v1698_v56 }
 0x263   : > { %2767 = vpush %v1461_v25  ;;  %v1808_v41 = vadd.f32 %v1807_v0, %v1806_v33  ;;  %v1780_v57 = vadd.f32 %v1779_v39, %v1778_v31  ;;  %v1621_v50 = vadd.f32 %v1620_v42, %v1619_v19  ;;  %v1796_v63 = vadd.f32 %v1795_v59, %v1794_v54 }
 0x264   : > { %v1853_v11 = vpop.xlane.xlu1 %1852  ;;  %v1543_v2 = vadd.f32 %v1542_v24, %v1541_v48  ;;  %v1739_v6 = vadd.f32 %v1738_v46, %v1737_v47  ;;  %v1838_v55 = vpop.xlane.xlu0 %1837 }
 0x265   : > { %v1809_v53 = vrot.slane %v1808_v41, 2  ;;  %v1854_v37 = vrot.slane %v1853_v11, 4  ;;  %v1781_v38 = vrot.slane %v1780_v57, 1  ;;  %v1797_v36 = vrot.slane %v1796_v63, 2 }
 0x266   : > { %v1839_v58 = vrot.slane %v1838_v55, 4  ;;  %2769 = vpush %v1543_v2  ;;  %v1740_v10 = vrot.slane %v1739_v6, 1 }
 0x267   : > { %v1855_v29 = vadd.f32 %v1854_v37, %v1853_v11  ;;  %v1810_v62 = vadd.f32 %v1809_v53, %v1808_v41  ;;  %2771 = vpush %v1621_v50  ;;  %v1798_v34 = vadd.f32 %v1797_v36, %v1796_v63  ;;  %v1782_v26 = vadd.f32 %v1781_v38, %v1780_v57 }
 0x268   : > { %v1896_v5 = vpop.xlane.xlu1 %1895  ;;  %v1840_v14 = vadd.f32 %v1839_v58, %v1838_v55  ;;  %2773 = vpush %v1640_v51  ;;  %v1741_v16 = vadd.f32 %v1740_v10, %v1739_v6  ;;  %v1881_v25 = vpop.xlane.xlu0 %1880 }
 0x269   : > { %v1856_v7 = vrot.slane %v1855_v29, 2  ;;  %v1897_v9 = vrot.slane %v1896_v5, 4  ;;  %v1811_v18 = vrot.slane %v1810_v62, 1  ;;  %2775 = vpush %v1658_v12  ;;  %v1882_v30 = vrot.slane %v1881_v25, 4 }
 0x26a   : > { %v1841_v27 = vrot.slane %v1840_v14, 2  ;;  %2777 = vpush %v1676_v21  ;;  %v1799_v15 = vrot.slane %v1798_v34, 1 }
 0x26b   : > { %v1898_v13 = vadd.f32 %v1897_v9, %v1896_v5  ;;  %v1857_v20 = vadd.f32 %v1856_v7, %v1855_v29  ;;  %2779 = vpush %v1700_v22  ;;  %v1812_v23 = vadd.f32 %v1811_v18, %v1810_v62  ;;  %v1883_v31 = vadd.f32 %v1882_v30, %v1881_v25 }
 0x26c   : > { %2781 = vpush %v1741_v16  ;;  %v1800_v19 = vadd.f32 %v1799_v15, %v1798_v34  ;;  %v1842_v32 = vadd.f32 %v1841_v27, %v1840_v14 }
 0x26d   : > { %v1899_v17 = vrot.slane %v1898_v13, 2  ;;  %v1858_v28 = vrot.slane %v1857_v20, 1  ;;  %2783 = vpush %v1782_v26  ;;  %v1884_v44 = vrot.slane %v1883_v31, 2 }
 0x26e   : > { %2785 = vpush %v1800_v19  ;;  %v1843_v33 = vrot.slane %v1842_v32, 1 }
 0x26f   : > { %v1900_v1 = vadd.f32 %v1899_v17, %v1898_v13  ;;  %2787 = vpush %v1812_v23  ;;  %v1859_v35 = vadd.f32 %v1858_v28, %v1857_v20  ;;  %v1885_v40 = vadd.f32 %v1884_v44, %v1883_v31 }
 0x270   : > { %v1844_v0 = vadd.f32 %v1843_v33, %v1842_v32 }
 0x271   : > { %v1901_v39 = vrot.slane %v1900_v1, 1  ;;  %v1886_v4 = vrot.slane %v1885_v40, 1 }
 0x272   : > { %2789 = vpush %v1844_v0 }
 0x273   : > { %2791 = vpush %v1859_v35  ;;  %v1902_v43 = vadd.f32 %v1901_v39, %v1900_v1  ;;  %v1887_v49 = vadd.f32 %v1886_v4, %v1885_v40 }
 0x275   : > { %2793 = vpush %v1887_v49 }
 0x276   : > { %2795 = vpush %v1902_v43 }
 0x292   : > { %s2764_s24 = spop %2763 }
 0x293   : > { %s1380_s14 = ssub.f32 0.0, %s2764_s24  ;;  %s2766_s9 = spop %2765 }
 0x294   : > { %s1445_s2 = ssub.f32 0.0, %s2766_s9  ;;  %s2768_s15 = spop %2767 }
 0x295   : > { %v1381_v41 = vstv %s1380_s14  ;;  %v1463_v45 = vstv %s2768_s15  ;;  %s2741_s14 = sshll.u32 %s4810_s4, 4  ;;  %s2053_s9 = sshll.u32 %s4620_s1, 4  ;;  %s2054_s9 = int_to_ptr.vmem [resolvable:$true] %s2053_s9 }
 0x296   : > { %1383 = vst.msk [vmem:[%s4620_s1] sm:$0x1] %vm1382_vm1, %v1381_v41  ;;  %v1446_v42 = vstv %s1445_s2  ;;  %vm1905_vm1 = vcmask 123000   ;;  %s3471_s4 = scalar_lea.vmem %s2054_s9, 16 }
 0x297   : > { %1448 = vst.msk [vmem:[%s4620_s1] sm:$0x1] %vm1447_vm2, %v1446_v42  ;;  %s2770_s28 = spop %2769  ;;  %p3472_p0 = scmp.ne.s32.totalorder %s2054_s9, %s3471_s4 }
 0x298   : > { %1465 = vst.msk [vmem:[%s4620_s1] sm:$0x1] %vm1464_vm3, %v1463_v45  ;;  %s1545_s8 = ssub.f32 0.0, %s2770_s28  ;;  %s2772_s22 = spop %2771 }
 0x299   : > { %s1623_s13 = ssub.f32 0.0, %s2772_s22  ;;  %s2774_s12 = spop %2773 }
 0x29a   : > { %v1546_v47 = vstv %s1545_s8  ;;  %s2776_s25 = spop %2775  ;;  %v1642_v48 = vstv %s2774_s12  ;;  %s4827_s8 = sld [smem:[#allocation76_spill]] }
 0x29b   : > { %1548 = vst.msk [vmem:[%s4620_s1] sm:$0x1] %vm1547_vm4, %v1546_v47  ;;  %v1624_v11 = vstv %s1623_s13  ;;  %s2778_s18 = spop %2777  ;;  %v1660_v52 = vstv %s2776_s25  ;;  %p3473_p1 = pnand %p3472_p0, %p3779_p9 }
 0x29c   : > { %1626 = vst.msk [vmem:[%s4620_s1] sm:$0x1] %vm1625_vm5, %v1624_v11  ;;  %s2780_s7 = spop %2779  ;;  %v1678_v53 = vstv %s2778_s18  ;;  %s3613_s12 = smov [#allocation32]  }
 0x29d   : > { %1644 = vst.msk [vmem:[%s4620_s1] sm:$0x1] %vm1643_vm6, %v1642_v48  ;;  %s2782_s0 = spop %2781  ;;  %v1702_v54 = vstv %s2780_s7  ;;  %p3474_p2 = pneg %p3473_p1 }
 0x29e   : > { %1662 = vst.msk [vmem:[%s4620_s1] sm:$0x1] %vm1661_vm7, %v1660_v52  ;;  %s2784_s17 = spop %2783  ;;  %v1743_v37 = vstv %s2782_s0  ;;  %s3475_s25 = sshll.u32 %s3613_s12, 4  ;;  %s3476_s25 = int_to_ptr.vmem [resolvable:$false] %s3475_s25 }
 0x29f   : > { %1680 = vst.msk [vmem:[%s4620_s1] sm:$0x1] %vm1679_vm8, %v1678_v53  ;;  %s2786_s11 = spop %2785  ;;  %v1784_v56 = vstv %s2784_s17  ;;  %s3477_s18 = scalar_lea.vmem %s3476_s25, 32 }
 0x2a0   : > { %1704 = vst.msk [vmem:[%s4620_s1] sm:$0x1] %vm1703_vm9, %v1702_v54  ;;  %s2788_s10 = spop %2787  ;;  %v1814_v57 = vstv %s2786_s11  ;;  %s4643_s22 = scalar_lea.hbm %s4827_s8, %s2741_s14 }
 0x2a1   : > { %1745 = vst.msk [vmem:[%s4620_s1] sm:$0x1] %vm1744_vm10, %v1743_v37  ;;  %s1817_s16 = sadd.f32 %s2788_s10, %s2786_s11  ;;  %p3478_p4 = scmp.lt.s32.totalorder %s2054_s9, %s3476_s25 }
 0x2a2   : > { %1786 = vst.msk [vmem:[%s4620_s1] sm:$0x1] %vm1785_vm11, %v1784_v56  ;;  %p3479_p8 = scmp.lt.s32.totalorder %s3477_s18, %s3471_s4 }
 0x2a3   : > { %1816 = vst.msk [vmem:[%s4620_s1] sm:$0x1] %vm1815_vm12, %v1814_v57  ;;  %v1818_v46 = vstv %s1817_s16  ;;  %s2790_s26 = spop %2789 }
 0x2a4   : > { %1820 = vst.msk [vmem:[%s4620_s1] sm:$0x1] %vm1819_vm13, %v1818_v46  ;;  %v1846_v59 = vstv %s2790_s26  ;;  %s2792_s24 = spop %2791  ;;  %p3480_p3 = por %p3479_p8, %p3478_p4 }
 0x2a5   : > { %1848 = vst.msk [vmem:[%s4620_s1] sm:$0x1] %vm1847_vm14, %v1846_v59  ;;  %v1861_v24 = vstv %s2792_s24 }
 0x2a6   : > { %1863 = vst.msk [vmem:[%s4620_s1] sm:$0x1] %vm1862_vm15, %v1861_v24  ;;  %s2794_s2 = spop %2793  ;;  %p3481_p5 = pnand %p3480_p3, %p3474_p2 }
 0x2a7   : > { %v1889_v60 = vstv %s2794_s2  ;;  %s2796_s13 = spop %2795 }
 0x2a8   : > { %1891 = vst.msk [vmem:[%s4620_s1] sm:$0x1] %vm1890_vm0, %v1889_v60  ;;  %v1904_v29 = vstv %s2796_s13 }
 0x2a9   : > { %1906 = vst.msk [vmem:[%s4620_s1] sm:$0x1] %vm1905_vm1, %v1904_v29 }
 0x2aa   : > { %3484 = shalt.err (!%p3481_p5)
}
 0x2ab   : > { %s3485_s7 = scalar_lea.hbm %s4643_s22, 16  ;;  %s3489_s17 = scalar_lea.hbm %s4827_s8, 32 }
 0x2ac   : > { %p3486_p6 = scmp.ne.s32.totalorder %s4643_s22, %s3485_s7  ;;  %p3490_p10 = scmp.lt.s32.totalorder %s4643_s22, %s4827_s8 }
 0x2ad   : > { %p3491_p0 = scmp.lt.s32.totalorder %s3489_s17, %s3485_s7 }
 0x2ae   : > { %p3487_p7 = pnand %p3486_p6, %p3779_p9 }
 0x2af   : > { %p3492_p1 = por %p3491_p0, %p3490_p10 }
 0x2b0   : > { %p3488_p13 = pneg %p3487_p7 }
 0x2b2   : > { %p3493_p2 = pnand %p3492_p1, %p3488_p13 }
 0x2b4   : > { %3496 = shalt.err (!%p3493_p2)
}
 0x2b5   : > { %2833 = dma.vmem_to_hbm [thread:$0]  (%p3779_p9), %s2054_s9, 16, %s4643_s22, %s1933_s27  }
 0x2b6 PF: > { %s4828_s16 = sld [smem:[#allocation44_spill]]  ;;  %p2842_p4 = pnand %p2640_p12, %p3788_p11 }
 0x2b7   : > { %s4830_s24 = sld [smem:[#allocation48_spill]] }
 0x2b8   : > { %p2843_p8 = pneg %p2842_p4 }
 0x2bc   : > { %s2065_s14 = sand.u32 1, %s4828_s16  }
 0x2bd   : > { %s2066_s2 = scalar_lea.sflag [#allocation4], %s2065_s14 }
 0x2be   : > { %3550 = dma.done.wait (%p2843_p8), %s2066_s2, 128  }
 0x2bf   : > { %3552 = vsyncadd (%p2843_p8), %s2066_s2, 4294967168  ;;  %s4831_s15 = sadd.s32 4294967294, %s4830_s24  }
 0x2c0   : > { %s2074_s28 = sand.u32 1, %s4831_s15  }
 0x2c1   : > { %s2075_s5 = scalar_lea.sflag [#allocation25], %s2074_s28 }
 0x2c2   : > { %3554 = dma.done.wait (%p2843_p8), %s2075_s5, 288  }
 0x2c3   : > { %3556 = vsyncadd (%p2843_p8), %s2075_s5, 4294967008  ;;  %s2093_s20 = scalar_lea.sflag [#allocation28], %s2074_s28 }
 0x2c4   : > { %3558 = dma.done.wait (%p2843_p8), %s2093_s20, 256  }
 0x2c5   : > { %3560 = vsyncadd (%p2843_p8), %s2093_s20, 4294967040  ;;  %s2111_s27 = scalar_lea.sflag [#allocation31], %s2074_s28 }
 0x2c6   : > { %3562 = dma.done.wait (%p2843_p8), %s2111_s27, 112  }
 0x2c7   : > { %3564 = vsyncadd (%p2843_p8), %s2111_s27, 4294967184  ;;  %s65_s28 = sadd.s32 1, %s4830_s24   ;;  %s4832_s2 = sld [smem:[#allocation45_spill]] }
 0x2c8   : > { %p62_p9 = scmp.ge.s32.totalorder %s65_s28, 4   ;;  %s4833_s25 = sld [smem:[#allocation46_spill]] }
 0x2c9   : > { %s4834_s26 = sld [smem:[#allocation53_spill]]  ;;  %s4836_s27 = smov %s3583_s3 }
 0x2ca   : > { %s4835_s9 = sld [smem:[#allocation50_spill]] }
 0x2cc   :  { %64 = sbr.rel (!%p62_p9) target bundleno = 47 (0x2f), region = 401 }
 0x2d0   : > { %s4837_s3 = smov %s4835_s9 }
 0x2d1   :  { %2124 = vsyncpa [#allocation3], 1 }
 0x2d2   :  { %2126 = vsyncpa [#allocation3 + $0x1], 1 }
 0x2d3   :  { %2127 = vsyncpa [#allocation6], 1 }
 0x2d4   :  { %2129 = vsyncpa [#allocation6 + $0x1], 1 }
 0x2d5   :  { %2130 = vsyncpa [#allocation9], 1 }
 0x2d6   :  { %2132 = vsyncpa [#allocation9 + $0x1], 1 }
 0x2d7   :  { %2133 = vsyncpa [#allocation12], 1 }
 0x2d8   :  { %2135 = vsyncpa [#allocation12 + $0x1], 1 }
 0x2d9   :  { %2136 = vsyncpa [#allocation15], 1 }
 0x2da   :  { %2138 = vsyncpa [#allocation15 + $0x1], 1 }
 0x2db   :  { %2139 = vsyncpa [#allocation18], 1 }
 0x2dc   :  { %2141 = vsyncpa [#allocation18 + $0x1], 1 }
 0x2dd   :  { %2142 = vsyncpa [#allocation21], 1 }
 0x2de   :  { %2144 = vsyncpa [#allocation21 + $0x1], 1 }
 0x2df   :  { %2145 = vsyncpa [#allocation4], 1 }
 0x2e0   :  { %2147 = vsyncpa [#allocation4 + $0x1], 1 }
 0x2e1   :  { %2148 = vsyncpa [#allocation25], 1 }
 0x2e2   :  { %2150 = vsyncpa [#allocation25 + $0x1], 1 }
 0x2e3   :  { %2151 = vsyncpa [#allocation28], 1 }
 0x2e4   :  { %2153 = vsyncpa [#allocation28 + $0x1], 1 }
 0x2e5   :  { %2154 = vsyncpa [#allocation31], 1 }
 0x2e6   :  { %2156 = vsyncpa [#allocation31 + $0x1], 1 }

</bundles_post_ra>
